<compile_context>
chip_gen: v7x
topology: tpu7x:2x2x1
jax: 0.10.0
libtpu: 0.0.40
codegen_flags: <defaults>
</compile_context>

<pallas_src>
import functools
import math

import numpy as np
import jax
import jax.numpy as jnp
from jax.experimental import pallas as pl
from jax.experimental.pallas import tpu as pltpu


POOL_SIZES = (1, 2, 3, 6)
C1, C2, C3 = 32, 64, 128


def _round_up(x, m):
    return ((x + m - 1) // m) * m


FUSED_C = C1 + C2 + C3 + C3            # 352 actual concat channels (see NOTE)
FUSED_C_PAD = _round_up(FUSED_C, 128)  # 384, lane-dense


@functools.lru_cache(maxsize=None)
def _vmem_limit():
    # Generation-aware scoped-VMEM budget: ~3/4 of physical VMEM, capped at
    # 100 MiB (~48 MiB on v7x's 64 MiB, ~96 MiB on v5e/v6e's 128 MiB).
    try:
        cap = int(pltpu.get_tpu_info().vmem_capacity_bytes)
    except Exception:
        cap = 128 * 1024 * 1024
    return int(min(cap * 3 // 4, 100 * 1024 * 1024))


def _pick_tile(dim, align, cap):
    """Largest tile that is a multiple of `align`, divides `dim`, and is <= cap
    (falls back to the full dim when nothing smaller divides)."""
    if dim <= cap:
        return dim
    best = dim
    for t in range(align, cap + 1, align):
        if dim % t == 0:
            best = t
    return best


# ----------------------------------------------------------------------------
# Generic tiled matmul kernel: out = relu?((A @ B) + bias)
# bf16 operands, f32 VMEM accumulator, K-axis reduction with init/finalize,
# bf16 output written once at the last K step.
# ----------------------------------------------------------------------------
def _mm_kernel(a_ref, b_ref, bias_ref, o_ref, acc_ref, *, relu):
    @pl.when(pl.program_id(2) == 0)
    def _init():
        acc_ref[...] = jnp.zeros_like(acc_ref)

    acc_ref[...] += jnp.dot(a_ref[...], b_ref[...],
                            preferred_element_type=jnp.float32)

    @pl.when(pl.program_id(2) == pl.num_programs(2) - 1)
    def _finalize():
        r = acc_ref[...] + bias_ref[...]
        if relu:
            r = jnp.maximum(r, 0.0)
        o_ref[...] = r.astype(o_ref.dtype)


def pallas_matmul(a, b, bias, relu=False, *, tm_cap=256, tn_cap=256, tk_cap=512):
    """(M,K)bf16 @ (K,N)bf16 + bias(f32) [+ReLU] -> (M,N) bf16, f32 accumulation.

    K and N must already be multiples of 128 (weights are stored that way)."""
    M, K = a.shape
    K2, N = b.shape
    assert K == K2 and K % 128 == 0 and N % 128 == 0, (a.shape, b.shape)

    tm = min(tm_cap, _round_up(M, 8))
    Mp = _round_up(M, tm)
    if Mp != M:
        a = jnp.pad(a, ((0, Mp - M), (0, 0)))
    tk = _pick_tile(K, 128, tk_cap)
    tn = _pick_tile(N, 128, tn_cap)

    grid = (Mp // tm, N // tn, K // tk)
    out = pl.pallas_call(
        functools.partial(_mm_kernel, relu=relu),
        out_shape=jax.ShapeDtypeStruct((Mp, N), jnp.bfloat16),
        grid=grid,
        in_specs=[
            pl.BlockSpec((tm, tk), lambda i, j, k: (i, k)),
            pl.BlockSpec((tk, tn), lambda i, j, k: (k, j)),
            pl.BlockSpec((1, tn), lambda i, j, k: (0, j)),
        ],
        out_specs=pl.BlockSpec((tm, tn), lambda i, j, k: (i, j)),
        scratch_shapes=[pltpu.VMEM((tm, tn), jnp.float32)],
        compiler_params=pltpu.CompilerParams(
            dimension_semantics=("parallel", "parallel", "arbitrary"),
            vmem_limit_bytes=_vmem_limit()),
    )(a.astype(jnp.bfloat16), b.astype(jnp.bfloat16), bias.astype(jnp.float32))
    return out[:M]


# ----------------------------------------------------------------------------
# Conv lowering (im2col -> tiled matmul with fused BN-bias + ReLU)
# ----------------------------------------------------------------------------
def im2col(x, ksize, stride, padding, k_out):
    # TODO(synk): move this 9-tap gather inside the matmul kernel (accumulate
    # shifted taps over the K grid axis) to avoid ~9x activation HBM traffic at
    # realistic resolutions; host-side bf16 im2col kept for lowering robustness.
    N, H, W, C = x.shape
    xp = jnp.pad(x, ((0, 0), (padding, padding), (padding, padding), (0, 0)))
    Ho = (H + 2 * padding - ksize) // stride + 1
    Wo = (W + 2 * padding - ksize) // stride + 1
    cols = []
    for di in range(ksize):
        for dj in range(ksize):
            cols.append(xp[:, di:di + stride * (Ho - 1) + 1:stride,
                              dj:dj + stride * (Wo - 1) + 1:stride, :])
    pat = jnp.concatenate(cols, axis=-1).reshape(N * Ho * Wo, ksize * ksize * C)
    k_real = ksize * ksize * C
    assert k_out >= k_real
    if k_out > k_real:
        pat = jnp.pad(pat, ((0, 0), (0, k_out - k_real)))
    return pat, (N, Ho, Wo)


def conv_bn_relu(x, w, bias, cout, ksize, stride, padding, relu=True):
    cols, (N, Ho, Wo) = im2col(x, ksize, stride, padding, w.shape[0])
    y = pallas_matmul(cols, w, bias, relu=relu)
    return y[:, :cout].reshape(N, Ho, Wo, cout)


# ----------------------------------------------------------------------------
# Constant resampling operators (numpy, built at trace time)
# ----------------------------------------------------------------------------
def adaptive_pool_matrix(out_size, in_size):
    P = np.zeros((out_size, in_size), np.float32)
    for i in range(out_size):
        s = (i * in_size) // out_size
        e = math.ceil((i + 1) * in_size / out_size)
        P[i, s:e] = 1.0 / (e - s)
    return P


def bilinear_matrix(out_size, in_size):
    # F.interpolate(mode='bilinear', align_corners=True), separable 1-D form.
    A = np.zeros((out_size, in_size), np.float32)
    for i in range(out_size):
        src = (i * (in_size - 1) / (out_size - 1)) if out_size > 1 else 0.0
        lo = min(max(int(np.floor(src)), 0), in_size - 1)
        hi = min(lo + 1, in_size - 1)
        frac = src - lo
        A[i, lo] += 1.0 - frac
        A[i, hi] += frac
    return A


def resize2d_matrix(oh, ow, ih, iw):
    # TODO(synk): at realistic resolutions replace this dense Kronecker operator
    # with a separable row-then-column resize inside the kernels (VMEM / FLOPs).
    return np.kron(bilinear_matrix(oh, ih), bilinear_matrix(ow, iw))


def pool2d_matrix(ps, ih, iw):
    return np.kron(adaptive_pool_matrix(ps, ih), adaptive_pool_matrix(ps, iw))


def build_ppm_operators(H3, W3):
    """Stacked pool / upsample / block-mask operators so all four PPM branches
    run as single full-width matmuls inside the fused kernel."""
    hw3 = H3 * W3
    sizes = [ps * ps for ps in POOL_SIZES]
    offs = np.concatenate([[0], np.cumsum(sizes)]).astype(np.int64)
    rp = _round_up(int(offs[-1]), 8)
    cp = C3 // len(POOL_SIZES)
    pstack = np.zeros((rp, hw3), np.float32)
    ucat = np.zeros((hw3, rp), np.float32)
    mask = np.zeros((rp, C3), np.float32)
    for bi, ps in enumerate(POOL_SIZES):
        r0, r1_ = int(offs[bi]), int(offs[bi + 1])
        pstack[r0:r1_, :] = pool2d_matrix(ps, H3, W3)
        ucat[:, r0:r1_] = resize2d_matrix(H3, W3, ps, ps)
        mask[r0:r1_, cp * bi:cp * (bi + 1)] = 1.0   # explicit kill of dead rows/cols
    return pstack, ucat, mask


# ----------------------------------------------------------------------------
# Fused PSP + branch-resize + concat kernel: one call builds the whole padded
# 384-channel fused tensor with a single lane-dense store per grid step.
# ----------------------------------------------------------------------------
def _psp_fuse_kernel(x1_ref, x2_ref, x3_ref, r1_ref, r2_ref, w_ref, b_ref,
                     p_ref, u_ref, m_ref, o_ref, *, pad_c):
    f32 = jnp.float32
    bf16 = jnp.bfloat16
    x3 = x3_ref[...]                                            # (hw3, c3) bf16
    # x1 / x2 bilinear resize (align_corners=True) to x3 resolution.
    x1u = jnp.dot(r1_ref[...], x1_ref[...], preferred_element_type=f32)
    x2u = jnp.dot(r2_ref[...], x2_ref[...], preferred_element_type=f32)
    # All four PPM branches fused: stacked adaptive-avg-pool -> one lane-dense
    # 1x1 conv (BN folded) -> bias -> ReLU -> block mask -> stacked bilinear up.
    pooled = jnp.dot(p_ref[...], x3, preferred_element_type=f32)
    z = jnp.dot(pooled.astype(bf16), w_ref[...], preferred_element_type=f32)
    a = jnp.maximum(z + b_ref[...], 0.0) * m_ref[...]
    ppm = jnp.dot(u_ref[...], a.astype(bf16), preferred_element_type=f32)

    hw3 = x3.shape[0]
    pieces = [x1u.astype(bf16), x2u.astype(bf16), x3, ppm.astype(bf16)]
    if pad_c:
        pieces.append(jnp.zeros((hw3, pad_c), bf16))
    # Single lane-dense (hw3, 384) store instead of narrow masked channel slices.
    o_ref[...] = jnp.concatenate(pieces, axis=-1)


def psp_fuse(x1, x2, x3, w_ppm, b_ppm, pstack, ucat, mask, r1, r2):
    N, H3, W3, c3 = x3.shape
    _, H1, W1, c1 = x1.shape
    _, H2, W2, c2 = x2.shape
    hw1, hw2, hw3 = H1 * W1, H2 * W2, H3 * W3
    real_c = c1 + c2 + c3 + c3
    assert real_c == FUSED_C

    x1f = x1.reshape(N, hw1, c1)
    x2f = x2.reshape(N, hw2, c2)
    x3f = x3.reshape(N, hw3, c3)

    def cspec(arr):
        nd = arr.ndim
        # TODO(synk): mark these grid-invariant operands pipeline_mode=pl.Buffered(1)
        # once validated (halves their VMEM footprint; matters on v7x at scale).
        return pl.BlockSpec(arr.shape, lambda n: (0,) * nd)

    fused = pl.pallas_call(
        functools.partial(_psp_fuse_kernel, pad_c=FUSED_C_PAD - real_c),
        out_shape=jax.ShapeDtypeStruct((N, hw3, FUSED_C_PAD), jnp.bfloat16),
        grid=(N,),
        in_specs=[
            pl.BlockSpec((None, hw1, c1), lambda n: (n, 0, 0)),
            pl.BlockSpec((None, hw2, c2), lambda n: (n, 0, 0)),
            pl.BlockSpec((None, hw3, c3), lambda n: (n, 0, 0)),
            cspec(r1), cspec(r2), cspec(w_ppm), cspec(b_ppm),
            cspec(pstack), cspec(ucat), cspec(mask),
        ],
        out_specs=pl.BlockSpec((None, hw3, FUSED_C_PAD), lambda n: (n, 0, 0)),
        compiler_params=pltpu.CompilerParams(
            dimension_semantics=("parallel",),
            vmem_limit_bytes=_vmem_limit()),
    )(x1f, x2f, x3f, r1, r2, w_ppm, b_ppm, pstack, ucat, mask)
    return fused.reshape(N, H3, W3, FUSED_C_PAD)


# ----------------------------------------------------------------------------
# Fused classifier 1x1 conv + final bilinear upsample, transposed output:
# classes on sublanes, full-resolution HW on lanes -> directly NCHW, only the
# real num_classes rows are written to HBM.
# ----------------------------------------------------------------------------
def _cls_kernel(h_ref, w_ref, b_ref, up_ref, o_ref, zt_ref, *, num_classes):
    @pl.when(pl.program_id(1) == 0)
    def _():
        # zT = W2^T @ h^T via dot_general (no explicit transpose materialized).
        zt = jax.lax.dot_general(
            w_ref[...], h_ref[...],
            dimension_numbers=(((1,), (1,)), ((), ())),
            preferred_element_type=jnp.float32) + b_ref[...]
        zt_ref[...] = zt.astype(zt_ref.dtype)

    out = jnp.dot(zt_ref[...], up_ref[...], preferred_element_type=jnp.float32)
    o_ref[...] = out[:num_classes, :]


def classifier_head(h, w2t, b2, up_t, num_classes, *, tile_cap=512):
    N, H3, W3, C = h.shape
    hw3 = H3 * W3
    nc_pad = w2t.shape[0]
    out_hw = up_t.shape[1]
    tile = _pick_tile(out_hw, 128, tile_cap)
    hf = h.reshape(N, hw3, C)
    grid = (N, out_hw // tile)
    return pl.pallas_call(
        functools.partial(_cls_kernel, num_classes=num_classes),
        out_shape=jax.ShapeDtypeStruct((N, num_classes, out_hw), jnp.float32),
        grid=grid,
        in_specs=[
            pl.BlockSpec((None, hw3, C), lambda n, j: (n, 0, 0)),
            pl.BlockSpec((nc_pad, C), lambda n, j: (0, 0)),
            pl.BlockSpec((nc_pad, 1), lambda n, j: (0, 0)),
            pl.BlockSpec((hw3, tile), lambda n, j: (0, j)),
        ],
        out_specs=pl.BlockSpec((None, num_classes, tile), lambda n, j: (n, 0, j)),
        scratch_shapes=[pltpu.VMEM((nc_pad, hw3), jnp.bfloat16)],
        compiler_params=pltpu.CompilerParams(
            dimension_semantics=("parallel", "arbitrary"),
            vmem_limit_bytes=_vmem_limit()),
    )(hf, w2t, b2, up_t)


# ----------------------------------------------------------------------------
# Parameters (deterministic, synthetic).  BN scale folded into weights; weights
# pre-cast to bf16 and pre-padded to 128-multiples at init (no per-forward pads).
# ----------------------------------------------------------------------------
def bn_fold(gamma, beta, mean, var, eps=1e-5):
    scale = gamma / jnp.sqrt(var + eps)
    return scale, beta - mean * scale
# TODO(synk): BatchNorm is inference-mode only (running stats folded into the
# conv); training-mode batch statistics / running-stat updates are not reproduced.


def make_bn(key, c):
    k1, k2, k3, k4 = jax.random.split(key, 4)
    gamma = jax.random.uniform(k1, (c,), minval=0.5, maxval=1.5, dtype=jnp.float32)
    beta = jax.random.normal(k2, (c,), jnp.float32) * 0.1
    mean = jax.random.normal(k3, (c,), jnp.float32) * 0.1
    var = jax.random.uniform(k4, (c,), minval=0.5, maxval=1.5, dtype=jnp.float32)
    return bn_fold(gamma, beta, mean, var)


def make_conv3x3_bn(key, cin, cout):
    kw, kb = jax.random.split(key)
    k = 9 * cin
    w = jax.random.normal(kw, (k, cout), jnp.float32) * 0.05
    scale, bias = make_bn(kb, cout)
    w = w * scale[None, :]
    kp, npad = _round_up(k, 128), _round_up(cout, 128)
    w = jnp.pad(w, ((0, kp - k), (0, npad - cout))).astype(jnp.bfloat16)
    bias = jnp.pad(bias, (0, npad - cout)).reshape(1, npad)      # f32
    return w, bias


def make_params(key, num_classes):
    ks = jax.random.split(key, 10)
    p = {}
    p["w1"], p["b1"] = make_conv3x3_bn(ks[0], 3, C1)
    p["w2"], p["b2"] = make_conv3x3_bn(ks[1], C1, C2)
    p["w3"], p["b3"] = make_conv3x3_bn(ks[2], C2, C3)

    # PPM: four 1x1 convs (128 -> 32) + BN, stacked into one lane-dense (128,128)
    cp = C3 // len(POOL_SIZES)
    ws, bs = [], []
    for i in range(len(POOL_SIZES)):
        kw, kb = jax.random.split(ks[3 + i])
        w = jax.random.normal(kw, (C3, cp), jnp.float32) * 0.05
        scale, b = make_bn(kb, cp)
        ws.append(w * scale[None, :])
        bs.append(b)
    p["ppm_w"] = jnp.concatenate(ws, axis=1).astype(jnp.bfloat16)   # (128, 128)
    p["ppm_b"] = jnp.concatenate(bs).reshape(1, C3)                 # (1, 128) f32

    # classifier conv1: 3x3 over the actual 352-channel concat (see NOTE), with
    # per-tap zero rows matching the fused tensor's 32 lane-padding channels.
    kw, kb = jax.random.split(ks[7])
    w = jax.random.normal(kw, (9, FUSED_C, 256), jnp.float32) * 0.05
    scale, b = make_bn(kb, 256)
    w = w * scale[None, None, :]
    w = jnp.pad(w, ((0, 0), (0, FUSED_C_PAD - FUSED_C), (0, 0)))
    p["wc1"] = w.reshape(9 * FUSED_C_PAD, 256).astype(jnp.bfloat16)
    p["bc1"] = b.reshape(1, 256)

    # classifier conv2: 1x1, stored transposed (classes on rows) + class padding.
    nc_pad = _round_up(num_classes, 128)
    w2 = jax.random.normal(ks[8], (256, num_classes), jnp.float32) * 0.05
    b2 = jax.random.normal(ks[9], (num_classes,), jnp.float32) * 0.05
    p["wc2_t"] = jnp.pad(w2.T, ((0, nc_pad - num_classes), (0, 0))).astype(jnp.bfloat16)
    p["bc2"] = jnp.pad(b2, (0, nc_pad - num_classes)).reshape(nc_pad, 1)  # f32
    return p


# ----------------------------------------------------------------------------
# ICNet forward
# ----------------------------------------------------------------------------
@functools.partial(jax.jit, static_argnums=(2,))
def icnet_forward(x_nchw, params, num_classes):
    p = params
    x = jnp.transpose(x_nchw, (0, 2, 3, 1)).astype(jnp.bfloat16)   # NCHW -> NHWC
    N, H, W, _ = x.shape

    # three ICNetBranch blocks: Conv3x3 s2 p1 (no bias) + BN + ReLU
    x1 = conv_bn_relu(x,  p["w1"], p["b1"], C1, 3, 2, 1)
    x2 = conv_bn_relu(x1, p["w2"], p["b2"], C2, 3, 2, 1)
    x3 = conv_bn_relu(x2, p["w3"], p["b3"], C3, 3, 2, 1)

    _, H1, W1, _ = x1.shape
    _, H2, W2, _ = x2.shape
    _, H3, W3, _ = x3.shape

    # constant resampling operators (trace-time numpy), bf16 MXU feeds
    bf = jnp.bfloat16
    r1 = jnp.asarray(resize2d_matrix(H3, W3, H1, W1), dtype=bf)
    r2 = jnp.asarray(resize2d_matrix(H3, W3, H2, W2), dtype=bf)
    pstack, ucat, mask = build_ppm_operators(H3, W3)
    pstack = jnp.asarray(pstack, dtype=bf)
    ucat = jnp.asarray(ucat, dtype=bf)
    mask = jnp.asarray(mask, dtype=jnp.float32)
    up_t = jnp.asarray(resize2d_matrix(H, W, H3, W3).T, dtype=bf)   # (hw3, H*W)

    # PSP module + x1/x2 resize + channel concat, one fused Pallas kernel
    x_fused = psp_fuse(x1, x2, x3, p["ppm_w"], p["ppm_b"],
                       pstack, ucat, mask, r1, r2)

    # classifier: 3x3 conv + BN + ReLU, then fused 1x1 conv + final upsample
    h = conv_bn_relu(x_fused, p["wc1"], p["bc1"], 256, 3, 1, 1)
    out = classifier_head(h, p["wc2_t"], p["bc2"], up_t, num_classes)
    return out.reshape(N, num_classes, H, W)                        # already NCHW


if __name__ == "__main__":
    key = jax.random.PRNGKey(0)
    kx, kp = jax.random.split(key)

    N, C, H, W = 2, 3, 16, 16
    num_classes = 5
    x = jax.random.normal(kx, (N, C, H, W), jnp.float32)
    params = make_params(kp, num_classes)

    out = icnet_forward(x, params, num_classes)
    out = jax.block_until_ready(out)
    assert out.shape == (N, num_classes, H, W), out.shape
    assert bool(jnp.all(jnp.isfinite(out)))
    print("KERNEL_OK")
</pallas_src>

<mosaic_0001>
module attributes {stable_mosaic.version = 11 : i64} {
  func.func @_mm_kernel(%arg0: i32, %arg1: i32, %arg2: i32, %arg3: memref<128x128xbf16, #tpu.memory_space<vmem>>, %arg4: memref<128x128xbf16, #tpu.memory_space<vmem>>, %arg5: memref<1x128xf32, #tpu.memory_space<vmem>>, %arg6: memref<128x128xbf16, #tpu.memory_space<vmem>>, %arg7: memref<128x128xf32, #tpu.memory_space<vmem>>) attributes {dimension_semantics = [#tpu.dimension_semantics<parallel>, #tpu.dimension_semantics<parallel>, #tpu.dimension_semantics<arbitrary>], iteration_bounds = array<i64: 1, 1, 1>, scalar_prefetch = 0 : i64, scratch_operands = 1 : i64, tpu.core_type = #tpu.core_type<tc>, window_params = [{transform_indices = @transform_0, window_bounds = array<i64: 128, 128>}, {transform_indices = @transform_1, window_bounds = array<i64: 128, 128>}, {transform_indices = @transform_2, window_bounds = array<i64: 1, 128>}, {transform_indices = @transform_3, window_bounds = array<i64: 128, 128>}]} {
    %c0_i32 = arith.constant 0 : i32
    %0 = arith.cmpi eq, %arg2, %c0_i32 : i32
    %1 = arith.extui %0 : i1 to i32
    %c0_i32_0 = arith.constant 0 : i32
    %2 = arith.cmpi ne, %1, %c0_i32_0 : i32
    scf.if %2 {
      %cst_10 = arith.constant 0.000000e+00 : f32
      %12 = vector.broadcast %cst_10 : f32 to vector<128x128xf32>
      %c0_11 = arith.constant 0 : index
      %c0_12 = arith.constant 0 : index
      %13 = vector.load %arg7[%c0_11, %c0_12] : memref<128x128xf32, #tpu.memory_space<vmem>>, vector<128x128xf32>
      tpu.vector_store %arg7[%c0_11, %c0_12], %12 {strides = array<i32>} : memref<128x128xf32, #tpu.memory_space<vmem>>, vector<128x128xf32>,
    } else {
    }
    %c0 = arith.constant 0 : index
    %c0_1 = arith.constant 0 : index
    %3 = vector.load %arg7[%c0, %c0_1] : memref<128x128xf32, #tpu.memory_space<vmem>>, vector<128x128xf32>
    %c0_2 = arith.constant 0 : index
    %c0_3 = arith.constant 0 : index
    %4 = vector.load %arg3[%c0_2, %c0_3] : memref<128x128xbf16, #tpu.memory_space<vmem>>, vector<128x128xbf16>
    %c0_4 = arith.constant 0 : index
    %c0_5 = arith.constant 0 : index
    %5 = vector.load %arg4[%c0_4, %c0_5] : memref<128x128xbf16, #tpu.memory_space<vmem>>, vector<128x128xbf16>
    %cst = arith.constant dense<0.000000e+00> : vector<128x128xf32>
    %6 = tpu.matmul %4, %5, %cst {dimension_numbers = #tpu.dot_dimension_numbers<[1], [0], [0], [1], [0, 0, 1, 1], [], []>} : vector<128x128xbf16>, vector<128x128xbf16>, vector<128x128xf32> -> vector<128x128xf32>
    %7 = arith.addf %3, %6 : vector<128x128xf32>
    %c0_6 = arith.constant 0 : index
    %c0_7 = arith.constant 0 : index
    %8 = vector.load %arg7[%c0_6, %c0_7] : memref<128x128xf32, #tpu.memory_space<vmem>>, vector<128x128xf32>
    tpu.vector_store %arg7[%c0_6, %c0_7], %7 {strides = array<i32>} : memref<128x128xf32, #tpu.memory_space<vmem>>, vector<128x128xf32>,
    %c0_i32_8 = arith.constant 0 : i32
    %9 = arith.cmpi eq, %arg2, %c0_i32_8 : i32
    %10 = arith.extui %9 : i1 to i32
    %c0_i32_9 = arith.constant 0 : i32
    %11 = arith.cmpi ne, %10, %c0_i32_9 : i32
    scf.if %11 {
      %c0_10 = arith.constant 0 : index
      %c0_11 = arith.constant 0 : index
      %12 = vector.load %arg7[%c0_10, %c0_11] : memref<128x128xf32, #tpu.memory_space<vmem>>, vector<128x128xf32>
      %c0_12 = arith.constant 0 : index
      %c0_13 = arith.constant 0 : index
      %13 = vector.load %arg5[%c0_12, %c0_13] : memref<1x128xf32, #tpu.memory_space<vmem>>, vector<1x128xf32>
      %14 = vector.broadcast %13 : vector<1x128xf32> to vector<128x128xf32>
      %15 = arith.addf %12, %14 : vector<128x128xf32>
      %cst_14 = arith.constant 0.000000e+00 : f32
      %16 = vector.broadcast %cst_14 : f32 to vector<128x128xf32>
      %17 = arith.maximumf %15, %16 : vector<128x128xf32>
      %18 = arith.truncf %17 : vector<128x128xf32> to vector<128x128xbf16>
      %c0_15 = arith.constant 0 : index
      %c0_16 = arith.constant 0 : index
      %19 = vector.load %arg6[%c0_15, %c0_16] : memref<128x128xbf16, #tpu.memory_space<vmem>>, vector<128x128xbf16>
      tpu.vector_store %arg6[%c0_15, %c0_16], %18 {strides = array<i32>} : memref<128x128xbf16, #tpu.memory_space<vmem>>, vector<128x128xbf16>,
    } else {
    }
    return
  }
  func.func @transform_0(%arg0: i32, %arg1: i32, %arg2: i32) -> (i32, i32) {
    %c0_i32 = arith.constant 0 : i32
    return %arg0, %arg2 : i32, i32
  }
  func.func @transform_1(%arg0: i32, %arg1: i32, %arg2: i32) -> (i32, i32) {
    %c0_i32 = arith.constant 0 : i32
    return %arg2, %arg1 : i32, i32
  }
  func.func @transform_2(%arg0: i32, %arg1: i32, %arg2: i32) -> (i32, i32) {
    %c0_i32 = arith.constant 0 : i32
    %c0_i32_0 = arith.constant 0 : i32
    return %c0_i32, %arg1 : i32, i32
  }
  func.func @transform_3(%arg0: i32, %arg1: i32, %arg2: i32) -> (i32, i32) {
    %c0_i32 = arith.constant 0 : i32
    return %arg0, %arg1 : i32, i32
  }
}

module attributes {stable_mosaic.version = 11 : i64} {
  func.func @_mm_kernel(%arg0: i32, %arg1: i32, %arg2: i32, %arg3: memref<32x384xbf16, #tpu.memory_space<vmem>>, %arg4: memref<384x128xbf16, #tpu.memory_space<vmem>>, %arg5: memref<1x128xf32, #tpu.memory_space<vmem>>, %arg6: memref<32x128xbf16, #tpu.memory_space<vmem>>, %arg7: memref<32x128xf32, #tpu.memory_space<vmem>>) attributes {dimension_semantics = [#tpu.dimension_semantics<parallel>, #tpu.dimension_semantics<parallel>, #tpu.dimension_semantics<arbitrary>], iteration_bounds = array<i64: 1, 1, 1>, scalar_prefetch = 0 : i64, scratch_operands = 1 : i64, tpu.core_type = #tpu.core_type<tc>, window_params = [{transform_indices = @transform_0, window_bounds = array<i64: 32, 384>}, {transform_indices = @transform_1, window_bounds = array<i64: 384, 128>}, {transform_indices = @transform_2, window_bounds = array<i64: 1, 128>}, {transform_indices = @transform_3, window_bounds = array<i64: 32, 128>}]} {
    %c0_i32 = arith.constant 0 : i32
    %0 = arith.cmpi eq, %arg2, %c0_i32 : i32
    %1 = arith.extui %0 : i1 to i32
    %c0_i32_0 = arith.constant 0 : i32
    %2 = arith.cmpi ne, %1, %c0_i32_0 : i32
    scf.if %2 {
      %cst_10 = arith.constant 0.000000e+00 : f32
      %12 = vector.broadcast %cst_10 : f32 to vector<32x128xf32>
      %c0_11 = arith.constant 0 : index
      %c0_12 = arith.constant 0 : index
      %13 = vector.load %arg7[%c0_11, %c0_12] : memref<32x128xf32, #tpu.memory_space<vmem>>, vector<32x128xf32>
      tpu.vector_store %arg7[%c0_11, %c0_12], %12 {strides = array<i32>} : memref<32x128xf32, #tpu.memory_space<vmem>>, vector<32x128xf32>,
    } else {
    }
    %c0 = arith.constant 0 : index
    %c0_1 = arith.constant 0 : index
    %3 = vector.load %arg7[%c0, %c0_1] : memref<32x128xf32, #tpu.memory_space<vmem>>, vector<32x128xf32>
    %c0_2 = arith.constant 0 : index
    %c0_3 = arith.constant 0 : index
    %4 = vector.load %arg3[%c0_2, %c0_3] : memref<32x384xbf16, #tpu.memory_space<vmem>>, vector<32x384xbf16>
    %c0_4 = arith.constant 0 : index
    %c0_5 = arith.constant 0 : index
    %5 = vector.load %arg4[%c0_4, %c0_5] : memref<384x128xbf16, #tpu.memory_space<vmem>>, vector<384x128xbf16>
    %cst = arith.constant dense<0.000000e+00> : vector<32x128xf32>
    %6 = tpu.matmul %4, %5, %cst {dimension_numbers = #tpu.dot_dimension_numbers<[1], [0], [0], [1], [0, 0, 1, 1], [], []>} : vector<32x384xbf16>, vector<384x128xbf16>, vector<32x128xf32> -> vector<32x128xf32>
    %7 = arith.addf %3, %6 : vector<32x128xf32>
    %c0_6 = arith.constant 0 : index
    %c0_7 = arith.constant 0 : index
    %8 = vector.load %arg7[%c0_6, %c0_7] : memref<32x128xf32, #tpu.memory_space<vmem>>, vector<32x128xf32>
    tpu.vector_store %arg7[%c0_6, %c0_7], %7 {strides = array<i32>} : memref<32x128xf32, #tpu.memory_space<vmem>>, vector<32x128xf32>,
    %c0_i32_8 = arith.constant 0 : i32
    %9 = arith.cmpi eq, %arg2, %c0_i32_8 : i32
    %10 = arith.extui %9 : i1 to i32
    %c0_i32_9 = arith.constant 0 : i32
    %11 = arith.cmpi ne, %10, %c0_i32_9 : i32
    scf.if %11 {
      %c0_10 = arith.constant 0 : index
      %c0_11 = arith.constant 0 : index
      %12 = vector.load %arg7[%c0_10, %c0_11] : memref<32x128xf32, #tpu.memory_space<vmem>>, vector<32x128xf32>
      %c0_12 = arith.constant 0 : index
      %c0_13 = arith.constant 0 : index
      %13 = vector.load %arg5[%c0_12, %c0_13] : memref<1x128xf32, #tpu.memory_space<vmem>>, vector<1x128xf32>
      %14 = vector.broadcast %13 : vector<1x128xf32> to vector<32x128xf32>
      %15 = arith.addf %12, %14 : vector<32x128xf32>
      %cst_14 = arith.constant 0.000000e+00 : f32
      %16 = vector.broadcast %cst_14 : f32 to vector<32x128xf32>
      %17 = arith.maximumf %15, %16 : vector<32x128xf32>
      %18 = arith.truncf %17 : vector<32x128xf32> to vector<32x128xbf16>
      %c0_15 = arith.constant 0 : index
      %c0_16 = arith.constant 0 : index
      %19 = vector.load %arg6[%c0_15, %c0_16] : memref<32x128xbf16, #tpu.memory_space<vmem>>, vector<32x128xbf16>
      tpu.vector_store %arg6[%c0_15, %c0_16], %18 {strides = array<i32>} : memref<32x128xbf16, #tpu.memory_space<vmem>>, vector<32x128xbf16>,
    } else {
    }
    return
  }
  func.func @transform_0(%arg0: i32, %arg1: i32, %arg2: i32) -> (i32, i32) {
    %c0_i32 = arith.constant 0 : i32
    return %arg0, %arg2 : i32, i32
  }
  func.func @transform_1(%arg0: i32, %arg1: i32, %arg2: i32) -> (i32, i32) {
    %c0_i32 = arith.constant 0 : i32
    return %arg2, %arg1 : i32, i32
  }
  func.func @transform_2(%arg0: i32, %arg1: i32, %arg2: i32) -> (i32, i32) {
    %c0_i32 = arith.constant 0 : i32
    %c0_i32_0 = arith.constant 0 : i32
    return %c0_i32, %arg1 : i32, i32
  }
  func.func @transform_3(%arg0: i32, %arg1: i32, %arg2: i32) -> (i32, i32) {
    %c0_i32 = arith.constant 0 : i32
    return %arg0, %arg1 : i32, i32
  }
}

module attributes {stable_mosaic.version = 11 : i64} {
  func.func @_mm_kernel(%arg0: i32, %arg1: i32, %arg2: i32, %arg3: memref<8x128xbf16, #tpu.memory_space<vmem>>, %arg4: memref<128x128xbf16, #tpu.memory_space<vmem>>, %arg5: memref<1x128xf32, #tpu.memory_space<vmem>>, %arg6: memref<8x128xbf16, #tpu.memory_space<vmem>>, %arg7: memref<8x128xf32, #tpu.memory_space<vmem>>) attributes {dimension_semantics = [#tpu.dimension_semantics<parallel>, #tpu.dimension_semantics<parallel>, #tpu.dimension_semantics<arbitrary>], iteration_bounds = array<i64: 1, 1, 5>, scalar_prefetch = 0 : i64, scratch_operands = 1 : i64, tpu.core_type = #tpu.core_type<tc>, window_params = [{transform_indices = @transform_0, window_bounds = array<i64: 8, 128>}, {transform_indices = @transform_1, window_bounds = array<i64: 128, 128>}, {transform_indices = @transform_2, window_bounds = array<i64: 1, 128>}, {transform_indices = @transform_3, window_bounds = array<i64: 8, 128>}]} {
    %c0_i32 = arith.constant 0 : i32
    %0 = arith.cmpi eq, %arg2, %c0_i32 : i32
    %1 = arith.extui %0 : i1 to i32
    %c0_i32_0 = arith.constant 0 : i32
    %2 = arith.cmpi ne, %1, %c0_i32_0 : i32
    scf.if %2 {
      %cst_9 = arith.constant 0.000000e+00 : f32
      %12 = vector.broadcast %cst_9 : f32 to vector<8x128xf32>
      %c0_10 = arith.constant 0 : index
      %c0_11 = arith.constant 0 : index
      %13 = vector.load %arg7[%c0_10, %c0_11] : memref<8x128xf32, #tpu.memory_space<vmem>>, vector<8x128xf32>
      tpu.vector_store %arg7[%c0_10, %c0_11], %12 {strides = array<i32>} : memref<8x128xf32, #tpu.memory_space<vmem>>, vector<8x128xf32>,
    } else {
    }
    %c0 = arith.constant 0 : index
    %c0_1 = arith.constant 0 : index
    %3 = vector.load %arg7[%c0, %c0_1] : memref<8x128xf32, #tpu.memory_space<vmem>>, vector<8x128xf32>
    %c0_2 = arith.constant 0 : index
    %c0_3 = arith.constant 0 : index
    %4 = vector.load %arg3[%c0_2, %c0_3] : memref<8x128xbf16, #tpu.memory_space<vmem>>, vector<8x128xbf16>
    %c0_4 = arith.constant 0 : index
    %c0_5 = arith.constant 0 : index
    %5 = vector.load %arg4[%c0_4, %c0_5] : memref<128x128xbf16, #tpu.memory_space<vmem>>, vector<128x128xbf16>
    %cst = arith.constant dense<0.000000e+00> : vector<8x128xf32>
    %6 = tpu.matmul %4, %5, %cst {dimension_numbers = #tpu.dot_dimension_numbers<[1], [0], [0], [1], [0, 0, 1, 1], [], []>} : vector<8x128xbf16>, vector<128x128xbf16>, vector<8x128xf32> -> vector<8x128xf32>
    %7 = arith.addf %3, %6 : vector<8x128xf32>
    %c0_6 = arith.constant 0 : index
    %c0_7 = arith.constant 0 : index
    %8 = vector.load %arg7[%c0_6, %c0_7] : memref<8x128xf32, #tpu.memory_space<vmem>>, vector<8x128xf32>
    tpu.vector_store %arg7[%c0_6, %c0_7], %7 {strides = array<i32>} : memref<8x128xf32, #tpu.memory_space<vmem>>, vector<8x128xf32>,
    %c4_i32 = arith.constant 4 : i32
    %9 = arith.cmpi eq, %arg2, %c4_i32 : i32
    %10 = arith.extui %9 : i1 to i32
    %c0_i32_8 = arith.constant 0 : i32
    %11 = arith.cmpi ne, %10, %c0_i32_8 : i32
    scf.if %11 {
      %c0_9 = arith.constant 0 : index
      %c0_10 = arith.constant 0 : index
      %12 = vector.load %arg7[%c0_9, %c0_10] : memref<8x128xf32, #tpu.memory_space<vmem>>, vector<8x128xf32>
      %c0_11 = arith.constant 0 : index
      %c0_12 = arith.constant 0 : index
      %13 = vector.load %arg5[%c0_11, %c0_12] : memref<1x128xf32, #tpu.memory_space<vmem>>, vector<1x128xf32>
      %14 = vector.broadcast %13 : vector<1x128xf32> to vector<8x128xf32>
      %15 = arith.addf %12, %14 : vector<8x128xf32>
      %cst_13 = arith.constant 0.000000e+00 : f32
      %16 = vector.broadcast %cst_13 : f32 to vector<8x128xf32>
      %17 = arith.maximumf %15, %16 : vector<8x128xf32>
      %18 = arith.truncf %17 : vector<8x128xf32> to vector<8x128xbf16>
      %c0_14 = arith.constant 0 : index
      %c0_15 = arith.constant 0 : index
      %19 = vector.load %arg6[%c0_14, %c0_15] : memref<8x128xbf16, #tpu.memory_space<vmem>>, vector<8x128xbf16>
      tpu.vector_store %arg6[%c0_14, %c0_15], %18 {strides = array<i32>} : memref<8x128xbf16, #tpu.memory_space<vmem>>, vector<8x128xbf16>,
    } else {
    }
    return
  }
  func.func @transform_0(%arg0: i32, %arg1: i32, %arg2: i32) -> (i32, i32) {
    %c0_i32 = arith.constant 0 : i32
    return %arg0, %arg2 : i32, i32
  }
  func.func @transform_1(%arg0: i32, %arg1: i32, %arg2: i32) -> (i32, i32) {
    %c0_i32 = arith.constant 0 : i32
    return %arg2, %arg1 : i32, i32
  }
  func.func @transform_2(%arg0: i32, %arg1: i32, %arg2: i32) -> (i32, i32) {
    %c0_i32 = arith.constant 0 : i32
    %c0_i32_0 = arith.constant 0 : i32
    return %c0_i32, %arg1 : i32, i32
  }
  func.func @transform_3(%arg0: i32, %arg1: i32, %arg2: i32) -> (i32, i32) {
    %c0_i32 = arith.constant 0 : i32
    return %arg0, %arg1 : i32, i32
  }
}

module attributes {stable_mosaic.version = 11 : i64} {
  func.func @_psp_fuse_kernel(%arg0: i32, %arg1: memref<1x64x32xbf16, #tpu.memory_space<vmem>>, %arg2: memref<1x16x64xbf16, #tpu.memory_space<vmem>>, %arg3: memref<1x4x128xbf16, #tpu.memory_space<vmem>>, %arg4: memref<4x64xbf16, #tpu.memory_space<vmem>>, %arg5: memref<4x16xbf16, #tpu.memory_space<vmem>>, %arg6: memref<128x128xbf16, #tpu.memory_space<vmem>>, %arg7: memref<1x128xf32, #tpu.memory_space<vmem>>, %arg8: memref<56x4xbf16, #tpu.memory_space<vmem>>, %arg9: memref<4x56xbf16, #tpu.memory_space<vmem>>, %arg10: memref<56x128xf32, #tpu.memory_space<vmem>>, %arg11: memref<1x4x384xbf16, #tpu.memory_space<vmem>>) attributes {dimension_semantics = [#tpu.dimension_semantics<parallel>], iteration_bounds = array<i64: 2>, scalar_prefetch = 0 : i64, scratch_operands = 0 : i64, tpu.core_type = #tpu.core_type<tc>, window_params = [{transform_indices = @transform_0, window_bounds = array<i64: 1, 64, 32>}, {transform_indices = @transform_1, window_bounds = array<i64: 1, 16, 64>}, {transform_indices = @transform_2, window_bounds = array<i64: 1, 4, 128>}, {pipeline_mode = #tpu.pipeline_mode<synchronous>, transform_indices = @transform_3, window_bounds = array<i64: 4, 64>}, {pipeline_mode = #tpu.pipeline_mode<synchronous>, transform_indices = @transform_4, window_bounds = array<i64: 4, 16>}, {pipeline_mode = #tpu.pipeline_mode<synchronous>, transform_indices = @transform_5, window_bounds = array<i64: 128, 128>}, {pipeline_mode = #tpu.pipeline_mode<synchronous>, transform_indices = @transform_6, window_bounds = array<i64: 1, 128>}, {pipeline_mode = #tpu.pipeline_mode<synchronous>, transform_indices = @transform_7, window_bounds = array<i64: 56, 4>}, {pipeline_mode = #tpu.pipeline_mode<synchronous>, transform_indices = @transform_8, window_bounds = array<i64: 4, 56>}, {pipeline_mode = #tpu.pipeline_mode<synchronous>, transform_indices = @transform_9, window_bounds = array<i64: 56, 128>}, {transform_indices = @transform_10, window_bounds = array<i64: 1, 4, 384>}]} {
    %c0 = arith.constant 0 : index
    %c0_0 = arith.constant 0 : index
    %c0_1 = arith.constant 0 : index
    %0 = vector.load %arg3[%c0, %c0_0, %c0_1] : memref<1x4x128xbf16, #tpu.memory_space<vmem>>, vector<1x4x128xbf16>
    %1 = vector.shape_cast %0 : vector<1x4x128xbf16> to vector<4x128xbf16>
    %c0_2 = arith.constant 0 : index
    %c0_3 = arith.constant 0 : index
    %2 = vector.load %arg4[%c0_2, %c0_3] : memref<4x64xbf16, #tpu.memory_space<vmem>>, vector<4x64xbf16>
    %c0_4 = arith.constant 0 : index
    %c0_5 = arith.constant 0 : index
    %c0_6 = arith.constant 0 : index
    %3 = vector.load %arg1[%c0_4, %c0_5, %c0_6] : memref<1x64x32xbf16, #tpu.memory_space<vmem>>, vector<1x64x32xbf16>
    %4 = vector.shape_cast %3 : vector<1x64x32xbf16> to vector<64x32xbf16>
    %cst = arith.constant dense<0.000000e+00> : vector<4x32xf32>
    %5 = tpu.matmul %2, %4, %cst {dimension_numbers = #tpu.dot_dimension_numbers<[1], [0], [0], [1], [0, 0, 1, 1], [], []>} : vector<4x64xbf16>, vector<64x32xbf16>, vector<4x32xf32> -> vector<4x32xf32>
    %c0_7 = arith.constant 0 : index
    %c0_8 = arith.constant 0 : index
    %6 = vector.load %arg5[%c0_7, %c0_8] : memref<4x16xbf16, #tpu.memory_space<vmem>>, vector<4x16xbf16>
    %c0_9 = arith.constant 0 : index
    %c0_10 = arith.constant 0 : index
    %c0_11 = arith.constant 0 : index
    %7 = vector.load %arg2[%c0_9, %c0_10, %c0_11] : memref<1x16x64xbf16, #tpu.memory_space<vmem>>, vector<1x16x64xbf16>
    %8 = vector.shape_cast %7 : vector<1x16x64xbf16> to vector<16x64xbf16>
    %cst_12 = arith.constant dense<0.000000e+00> : vector<4x64xf32>
    %9 = tpu.matmul %6, %8, %cst_12 {dimension_numbers = #tpu.dot_dimension_numbers<[1], [0], [0], [1], [0, 0, 1, 1], [], []>} : vector<4x16xbf16>, vector<16x64xbf16>, vector<4x64xf32> -> vector<4x64xf32>
    %c0_13 = arith.constant 0 : index
    %c0_14 = arith.constant 0 : index
    %10 = vector.load %arg8[%c0_13, %c0_14] : memref<56x4xbf16, #tpu.memory_space<vmem>>, vector<56x4xbf16>
    %cst_15 = arith.constant dense<0.000000e+00> : vector<56x128xf32>
    %11 = tpu.matmul %10, %1, %cst_15 {dimension_numbers = #tpu.dot_dimension_numbers<[1], [0], [0], [1], [0, 0, 1, 1], [], []>} : vector<56x4xbf16>, vector<4x128xbf16>, vector<56x128xf32> -> vector<56x128xf32>
    %12 = arith.truncf %11 : vector<56x128xf32> to vector<56x128xbf16>
    %c0_16 = arith.constant 0 : index
    %c0_17 = arith.constant 0 : index
    %13 = vector.load %arg6[%c0_16, %c0_17] : memref<128x128xbf16, #tpu.memory_space<vmem>>, vector<128x128xbf16>
    %cst_18 = arith.constant dense<0.000000e+00> : vector<56x128xf32>
    %14 = tpu.matmul %12, %13, %cst_18 {dimension_numbers = #tpu.dot_dimension_numbers<[1], [0], [0], [1], [0, 0, 1, 1], [], []>} : vector<56x128xbf16>, vector<128x128xbf16>, vector<56x128xf32> -> vector<56x128xf32>
    %c0_19 = arith.constant 0 : index
    %c0_20 = arith.constant 0 : index
    %15 = vector.load %arg7[%c0_19, %c0_20] : memref<1x128xf32, #tpu.memory_space<vmem>>, vector<1x128xf32>
    %16 = vector.broadcast %15 : vector<1x128xf32> to vector<56x128xf32>
    %17 = arith.addf %14, %16 : vector<56x128xf32>
    %cst_21 = arith.constant 0.000000e+00 : f32
    %18 = vector.broadcast %cst_21 : f32 to vector<56x128xf32>
    %19 = arith.maximumf %17, %18 : vector<56x128xf32>
    %c0_22 = arith.constant 0 : index
    %c0_23 = arith.constant 0 : index
    %20 = vector.load %arg10[%c0_22, %c0_23] : memref<56x128xf32, #tpu.memory_space<vmem>>, vector<56x128xf32>
    %21 = arith.mulf %19, %20 : vector<56x128xf32>
    %c0_24 = arith.constant 0 : index
    %c0_25 = arith.constant 0 : index
    %22 = vector.load %arg9[%c0_24, %c0_25] : memref<4x56xbf16, #tpu.memory_space<vmem>>, vector<4x56xbf16>
    %23 = arith.truncf %21 : vector<56x128xf32> to vector<56x128xbf16>
    %cst_26 = arith.constant dense<0.000000e+00> : vector<4x128xf32>
    %24 = tpu.matmul %22, %23, %cst_26 {dimension_numbers = #tpu.dot_dimension_numbers<[1], [0], [0], [1], [0, 0, 1, 1], [], []>} : vector<4x56xbf16>, vector<56x128xbf16>, vector<4x128xf32> -> vector<4x128xf32>
    %25 = arith.truncf %5 : vector<4x32xf32> to vector<4x32xbf16>
    %26 = arith.truncf %9 : vector<4x64xf32> to vector<4x64xbf16>
    %27 = arith.truncf %24 : vector<4x128xf32> to vector<4x128xbf16>
    %cst_27 = arith.constant 0.000000e+00 : bf16
    %28 = vector.broadcast %cst_27 : bf16 to vector<4x32xbf16>
    %29 = tpu.concatenate %25, %26, %1, %27, %28 in 1 : vector<4x32xbf16>, vector<4x64xbf16>, vector<4x128xbf16>, vector<4x128xbf16>, vector<4x32xbf16> -> vector<4x384xbf16>
    %c0_28 = arith.constant 0 : index
    %c0_29 = arith.constant 0 : index
    %c0_30 = arith.constant 0 : index
    %30 = vector.load %arg11[%c0_28, %c0_29, %c0_30] : memref<1x4x384xbf16, #tpu.memory_space<vmem>>, vector<1x4x384xbf16>
    %31 = vector.shape_cast %30 : vector<1x4x384xbf16> to vector<4x384xbf16>
    %32 = vector.shape_cast %29 : vector<4x384xbf16> to vector<1x4x384xbf16>
    tpu.vector_store %arg11[%c0_28, %c0_29, %c0_30], %32 {strides = array<i32>} : memref<1x4x384xbf16, #tpu.memory_space<vmem>>, vector<1x4x384xbf16>,
    return
  }
  func.func @transform_0(%arg0: i32) -> (i32, i32, i32) {
    %c0_i32 = arith.constant 0 : i32
    %c0_i32_0 = arith.constant 0 : i32
    %c0_i32_1 = arith.constant 0 : i32
    return %arg0, %c0_i32, %c0_i32_0 : i32, i32, i32
  }
  func.func @transform_1(%arg0: i32) -> (i32, i32, i32) {
    %c0_i32 = arith.constant 0 : i32
    %c0_i32_0 = arith.constant 0 : i32
    %c0_i32_1 = arith.constant 0 : i32
    return %arg0, %c0_i32, %c0_i32_0 : i32, i32, i32
  }
  func.func @transform_2(%arg0: i32) -> (i32, i32, i32) {
    %c0_i32 = arith.constant 0 : i32
    %c0_i32_0 = arith.constant 0 : i32
    %c0_i32_1 = arith.constant 0 : i32
    return %arg0, %c0_i32, %c0_i32_0 : i32, i32, i32
  }
  func.func @transform_3(%arg0: i32) -> (i32, i32) {
    %c0_i32 = arith.constant 0 : i32
    %c0_i32_0 = arith.constant 0 : i32
    %c0_i32_1 = arith.constant 0 : i32
    return %c0_i32, %c0_i32_0 : i32, i32
  }
  func.func @transform_4(%arg0: i32) -> (i32, i32) {
    %c0_i32 = arith.constant 0 : i32
    %c0_i32_0 = arith.constant 0 : i32
    %c0_i32_1 = arith.constant 0 : i32
    return %c0_i32, %c0_i32_0 : i32, i32
  }
  func.func @transform_5(%arg0: i32) -> (i32, i32) {
    %c0_i32 = arith.constant 0 : i32
    %c0_i32_0 = arith.constant 0 : i32
    %c0_i32_1 = arith.constant 0 : i32
    return %c0_i32, %c0_i32_0 : i32, i32
  }
  func.func @transform_6(%arg0: i32) -> (i32, i32) {
    %c0_i32 = arith.constant 0 : i32
    %c0_i32_0 = arith.constant 0 : i32
    %c0_i32_1 = arith.constant 0 : i32
    return %c0_i32, %c0_i32_0 : i32, i32
  }
  func.func @transform_7(%arg0: i32) -> (i32, i32) {
    %c0_i32 = arith.constant 0 : i32
    %c0_i32_0 = arith.constant 0 : i32
    %c0_i32_1 = arith.constant 0 : i32
    return %c0_i32, %c0_i32_0 : i32, i32
  }
  func.func @transform_8(%arg0: i32) -> (i32, i32) {
    %c0_i32 = arith.constant 0 : i32
    %c0_i32_0 = arith.constant 0 : i32
    %c0_i32_1 = arith.constant 0 : i32
    return %c0_i32, %c0_i32_0 : i32, i32
  }
  func.func @transform_9(%arg0: i32) -> (i32, i32) {
    %c0_i32 = arith.constant 0 : i32
    %c0_i32_0 = arith.constant 0 : i32
    %c0_i32_1 = arith.constant 0 : i32
    return %c0_i32, %c0_i32_0 : i32, i32
  }
  func.func @transform_10(%arg0: i32) -> (i32, i32, i32) {
    %c0_i32 = arith.constant 0 : i32
    %c0_i32_0 = arith.constant 0 : i32
    %c0_i32_1 = arith.constant 0 : i32
    return %arg0, %c0_i32, %c0_i32_0 : i32, i32, i32
  }
}

module attributes {stable_mosaic.version = 11 : i64} {
  func.func @_mm_kernel(%arg0: i32, %arg1: i32, %arg2: i32, %arg3: memref<8x384xbf16, #tpu.memory_space<vmem>>, %arg4: memref<384x256xbf16, #tpu.memory_space<vmem>>, %arg5: memref<1x256xf32, #tpu.memory_space<vmem>>, %arg6: memref<8x256xbf16, #tpu.memory_space<vmem>>, %arg7: memref<8x256xf32, #tpu.memory_space<vmem>>) attributes {dimension_semantics = [#tpu.dimension_semantics<parallel>, #tpu.dimension_semantics<parallel>, #tpu.dimension_semantics<arbitrary>], iteration_bounds = array<i64: 1, 1, 9>, scalar_prefetch = 0 : i64, scratch_operands = 1 : i64, tpu.core_type = #tpu.core_type<tc>, window_params = [{transform_indices = @transform_0, window_bounds = array<i64: 8, 384>}, {transform_indices = @transform_1, window_bounds = array<i64: 384, 256>}, {transform_indices = @transform_2, window_bounds = array<i64: 1, 256>}, {transform_indices = @transform_3, window_bounds = array<i64: 8, 256>}]} {
    %c0_i32 = arith.constant 0 : i32
    %0 = arith.cmpi eq, %arg2, %c0_i32 : i32
    %1 = arith.extui %0 : i1 to i32
    %c0_i32_0 = arith.constant 0 : i32
    %2 = arith.cmpi ne, %1, %c0_i32_0 : i32
    scf.if %2 {
      %cst_9 = arith.constant 0.000000e+00 : f32
      %12 = vector.broadcast %cst_9 : f32 to vector<8x256xf32>
      %c0_10 = arith.constant 0 : index
      %c0_11 = arith.constant 0 : index
      %13 = vector.load %arg7[%c0_10, %c0_11] : memref<8x256xf32, #tpu.memory_space<vmem>>, vector<8x256xf32>
      tpu.vector_store %arg7[%c0_10, %c0_11], %12 {strides = array<i32>} : memref<8x256xf32, #tpu.memory_space<vmem>>, vector<8x256xf32>,
    } else {
    }
    %c0 = arith.constant 0 : index
    %c0_1 = arith.constant 0 : index
    %3 = vector.load %arg7[%c0, %c0_1] : memref<8x256xf32, #tpu.memory_space<vmem>>, vector<8x256xf32>
    %c0_2 = arith.constant 0 : index
    %c0_3 = arith.constant 0 : index
    %4 = vector.load %arg3[%c0_2, %c0_3] : memref<8x384xbf16, #tpu.memory_space<vmem>>, vector<8x384xbf16>
    %c0_4 = arith.constant 0 : index
    %c0_5 = arith.constant 0 : index
    %5 = vector.load %arg4[%c0_4, %c0_5] : memref<384x256xbf16, #tpu.memory_space<vmem>>, vector<384x256xbf16>
    %cst = arith.constant dense<0.000000e+00> : vector<8x256xf32>
    %6 = tpu.matmul %4, %5, %cst {dimension_numbers = #tpu.dot_dimension_numbers<[1], [0], [0], [1], [0, 0, 1, 1], [], []>} : vector<8x384xbf16>, vector<384x256xbf16>, vector<8x256xf32> -> vector<8x256xf32>
    %7 = arith.addf %3, %6 : vector<8x256xf32>
    %c0_6 = arith.constant 0 : index
    %c0_7 = arith.constant 0 : index
    %8 = vector.load %arg7[%c0_6, %c0_7] : memref<8x256xf32, #tpu.memory_space<vmem>>, vector<8x256xf32>
    tpu.vector_store %arg7[%c0_6, %c0_7], %7 {strides = array<i32>} : memref<8x256xf32, #tpu.memory_space<vmem>>, vector<8x256xf32>,
    %c8_i32 = arith.constant 8 : i32
    %9 = arith.cmpi eq, %arg2, %c8_i32 : i32
    %10 = arith.extui %9 : i1 to i32
    %c0_i32_8 = arith.constant 0 : i32
    %11 = arith.cmpi ne, %10, %c0_i32_8 : i32
    scf.if %11 {
      %c0_9 = arith.constant 0 : index
      %c0_10 = arith.constant 0 : index
      %12 = vector.load %arg7[%c0_9, %c0_10] : memref<8x256xf32, #tpu.memory_space<vmem>>, vector<8x256xf32>
      %c0_11 = arith.constant 0 : index
      %c0_12 = arith.constant 0 : index
      %13 = vector.load %arg5[%c0_11, %c0_12] : memref<1x256xf32, #tpu.memory_space<vmem>>, vector<1x256xf32>
      %14 = vector.broadcast %13 : vector<1x256xf32> to vector<8x256xf32>
      %15 = arith.addf %12, %14 : vector<8x256xf32>
      %cst_13 = arith.constant 0.000000e+00 : f32
      %16 = vector.broadcast %cst_13 : f32 to vector<8x256xf32>
      %17 = arith.maximumf %15, %16 : vector<8x256xf32>
      %18 = arith.truncf %17 : vector<8x256xf32> to vector<8x256xbf16>
      %c0_14 = arith.constant 0 : index
      %c0_15 = arith.constant 0 : index
      %19 = vector.load %arg6[%c0_14, %c0_15] : memref<8x256xbf16, #tpu.memory_space<vmem>>, vector<8x256xbf16>
      tpu.vector_store %arg6[%c0_14, %c0_15], %18 {strides = array<i32>} : memref<8x256xbf16, #tpu.memory_space<vmem>>, vector<8x256xbf16>,
    } else {
    }
    return
  }
  func.func @transform_0(%arg0: i32, %arg1: i32, %arg2: i32) -> (i32, i32) {
    %c0_i32 = arith.constant 0 : i32
    return %arg0, %arg2 : i32, i32
  }
  func.func @transform_1(%arg0: i32, %arg1: i32, %arg2: i32) -> (i32, i32) {
    %c0_i32 = arith.constant 0 : i32
    return %arg2, %arg1 : i32, i32
  }
  func.func @transform_2(%arg0: i32, %arg1: i32, %arg2: i32) -> (i32, i32) {
    %c0_i32 = arith.constant 0 : i32
    %c0_i32_0 = arith.constant 0 : i32
    return %c0_i32, %arg1 : i32, i32
  }
  func.func @transform_3(%arg0: i32, %arg1: i32, %arg2: i32) -> (i32, i32) {
    %c0_i32 = arith.constant 0 : i32
    return %arg0, %arg1 : i32, i32
  }
}

module attributes {stable_mosaic.version = 11 : i64} {
  func.func @_cls_kernel(%arg0: i32, %arg1: i32, %arg2: memref<1x4x256xbf16, #tpu.memory_space<vmem>>, %arg3: memref<128x256xbf16, #tpu.memory_space<vmem>>, %arg4: memref<128x1xf32, #tpu.memory_space<vmem>>, %arg5: memref<4x256xbf16, #tpu.memory_space<vmem>>, %arg6: memref<1x5x256xf32, #tpu.memory_space<vmem>>, %arg7: memref<128x4xbf16, #tpu.memory_space<vmem>>) attributes {dimension_semantics = [#tpu.dimension_semantics<parallel>, #tpu.dimension_semantics<arbitrary>], iteration_bounds = array<i64: 2, 1>, scalar_prefetch = 0 : i64, scratch_operands = 1 : i64, tpu.core_type = #tpu.core_type<tc>, window_params = [{transform_indices = @transform_0, window_bounds = array<i64: 1, 4, 256>}, {pipeline_mode = #tpu.pipeline_mode<synchronous>, transform_indices = @transform_1, window_bounds = array<i64: 128, 256>}, {pipeline_mode = #tpu.pipeline_mode<synchronous>, transform_indices = @transform_2, window_bounds = array<i64: 128, 1>}, {transform_indices = @transform_3, window_bounds = array<i64: 4, 256>}, {transform_indices = @transform_4, window_bounds = array<i64: 1, 5, 256>}]} {
    %c0_i32 = arith.constant 0 : i32
    %0 = arith.cmpi eq, %arg1, %c0_i32 : i32
    %1 = arith.extui %0 : i1 to i32
    %c0_i32_0 = arith.constant 0 : i32
    %2 = arith.cmpi ne, %1, %c0_i32_0 : i32
    scf.if %2 {
      %c0_7 = arith.constant 0 : index
      %c0_8 = arith.constant 0 : index
      %10 = vector.load %arg3[%c0_7, %c0_8] : memref<128x256xbf16, #tpu.memory_space<vmem>>, vector<128x256xbf16>
      %c0_9 = arith.constant 0 : index
      %c0_10 = arith.constant 0 : index
      %c0_11 = arith.constant 0 : index
      %11 = vector.load %arg2[%c0_9, %c0_10, %c0_11] : memref<1x4x256xbf16, #tpu.memory_space<vmem>>, vector<1x4x256xbf16>
      %12 = vector.shape_cast %11 : vector<1x4x256xbf16> to vector<4x256xbf16>
      %cst_12 = arith.constant dense<0.000000e+00> : vector<128x4xf32>
      %13 = tpu.matmul %10, %12, %cst_12 {dimension_numbers = #tpu.dot_dimension_numbers<[1], [1], [0], [0], [0, 0, 1, 0], [], []>} : vector<128x256xbf16>, vector<4x256xbf16>, vector<128x4xf32> -> vector<128x4xf32>
      %c0_13 = arith.constant 0 : index
      %c0_14 = arith.constant 0 : index
      %14 = vector.load %arg4[%c0_13, %c0_14] : memref<128x1xf32, #tpu.memory_space<vmem>>, vector<128x1xf32>
      %15 = vector.broadcast %14 : vector<128x1xf32> to vector<128x4xf32>
      %16 = arith.addf %13, %15 : vector<128x4xf32>
      %17 = arith.truncf %16 : vector<128x4xf32> to vector<128x4xbf16>
      %c0_15 = arith.constant 0 : index
      %c0_16 = arith.constant 0 : index
      %18 = vector.load %arg7[%c0_15, %c0_16] : memref<128x4xbf16, #tpu.memory_space<vmem>>, vector<128x4xbf16>
      tpu.vector_store %arg7[%c0_15, %c0_16], %17 {strides = array<i32>} : memref<128x4xbf16, #tpu.memory_space<vmem>>, vector<128x4xbf16>,
    } else {
    }
    %c0 = arith.constant 0 : index
    %c0_1 = arith.constant 0 : index
    %3 = vector.load %arg7[%c0, %c0_1] : memref<128x4xbf16, #tpu.memory_space<vmem>>, vector<128x4xbf16>
    %c0_2 = arith.constant 0 : index
    %c0_3 = arith.constant 0 : index
    %4 = vector.load %arg5[%c0_2, %c0_3] : memref<4x256xbf16, #tpu.memory_space<vmem>>, vector<4x256xbf16>
    %cst = arith.constant dense<0.000000e+00> : vector<128x256xf32>
    %5 = tpu.matmul %3, %4, %cst {dimension_numbers = #tpu.dot_dimension_numbers<[1], [0], [0], [1], [0, 0, 1, 1], [], []>} : vector<128x4xbf16>, vector<4x256xbf16>, vector<128x256xf32> -> vector<128x256xf32>
    %6 = vector.extract_strided_slice %5 {offsets = [0, 0], sizes = [5, 256], strides = [1, 1]} : vector<128x256xf32> to vector<5x256xf32>
    %c0_4 = arith.constant 0 : index
    %c0_5 = arith.constant 0 : index
    %c0_6 = arith.constant 0 : index
    %7 = vector.load %arg6[%c0_4, %c0_5, %c0_6] : memref<1x5x256xf32, #tpu.memory_space<vmem>>, vector<1x5x256xf32>
    %8 = vector.shape_cast %7 : vector<1x5x256xf32> to vector<5x256xf32>
    %9 = vector.shape_cast %6 : vector<5x256xf32> to vector<1x5x256xf32>
    tpu.vector_store %arg6[%c0_4, %c0_5, %c0_6], %9 {strides = array<i32>} : memref<1x5x256xf32, #tpu.memory_space<vmem>>, vector<1x5x256xf32>,
    return
  }
  func.func @transform_0(%arg0: i32, %arg1: i32) -> (i32, i32, i32) {
    %c0_i32 = arith.constant 0 : i32
    %c0_i32_0 = arith.constant 0 : i32
    %c0_i32_1 = arith.constant 0 : i32
    return %arg0, %c0_i32, %c0_i32_0 : i32, i32, i32
  }
  func.func @transform_1(%arg0: i32, %arg1: i32) -> (i32, i32) {
    %c0_i32 = arith.constant 0 : i32
    %c0_i32_0 = arith.constant 0 : i32
    %c0_i32_1 = arith.constant 0 : i32
    return %c0_i32, %c0_i32_0 : i32, i32
  }
  func.func @transform_2(%arg0: i32, %arg1: i32) -> (i32, i32) {
    %c0_i32 = arith.constant 0 : i32
    %c0_i32_0 = arith.constant 0 : i32
    %c0_i32_1 = arith.constant 0 : i32
    return %c0_i32, %c0_i32_0 : i32, i32
  }
  func.func @transform_3(%arg0: i32, %arg1: i32) -> (i32, i32) {
    %c0_i32 = arith.constant 0 : i32
    %c0_i32_0 = arith.constant 0 : i32
    return %c0_i32, %arg1 : i32, i32
  }
  func.func @transform_4(%arg0: i32, %arg1: i32) -> (i32, i32, i32) {
    %c0_i32 = arith.constant 0 : i32
    %c0_i32_0 = arith.constant 0 : i32
    return %arg0, %c0_i32, %arg1 : i32, i32, i32
  }
}

</mosaic_0001>

<bundles_post_ra>
// kernel: icnet_forward.6
= control target key start
LH: loop header
LB: loop body
LE: loop exit
PB: predicated region body
PF: predicated region fallthrough
CT: control target
= control target key end

     0   :  { %8 = vsyncpa [#allocation4], 0  ;;  %s870_s0 = inlined_call_operand.hbm [shape: bf16[128,128], index: 0, kind: input, shape index: {}]   ;;  %s871_s1 = inlined_call_operand.hbm [shape: bf16[128,128], index: 1, kind: input, shape index: {}]   ;;  %s872_s2 = inlined_call_operand.hbm [shape: f32[1,128], index: 2, kind: input, shape index: {}]   ;;  %s873_s3 = inlined_call_operand.hbm [shape: bf16[128,128], index: 3, kind: output, shape index: {}]  }
   0x1   :  { %9 = vsyncpa [#allocation7], 0 }
   0x2   :  { %10 = vsyncpa [#allocation5], 0  ;;  %s780_s12 = smov [#allocation6]   ;;  %s781_s14 = smov [#allocation3]  }
   0x3   :  { %s28_s13 = sshll.u32 %s780_s12, 4  ;;  %s16_s15 = sshll.u32 %s781_s14, 4  ;;  %s29_s13 = int_to_ptr.vmem [resolvable:$true] %s28_s13  ;;  %s806_s15 = int_to_ptr.vmem [resolvable:$true] %s16_s15 }
   0x4   :  { %s686_s18 = scalar_lea.hbm %s871_s1, 1024 }
   0x5   :  { %p687_p0 = scmp.ne.s32.totalorder %s871_s1, %s686_s18  ;;  %p690_p1 = scmp.lt.u32.totalorder %s686_s18, %s871_s1 }
   0x7   :  { %p692_p2 = pnand %p690_p1, %p687_p0 }
   0x9   :  { %695 = shalt.err (!%p692_p2)
}
   0xa   :  { %s696_s23 = scalar_lea.vmem %s29_s13, 1024  ;;  %p701_p4 = scmp.lt.s32.totalorder %s29_s13, %s29_s13 }
   0xb   :  { %p697_p3 = scmp.ne.s32.totalorder %s29_s13, %s696_s23  ;;  %p702_p5 = scmp.lt.s32.totalorder %s696_s23, %s696_s23 }
   0xd   :  { %p703_p6 = por %p702_p5, %p701_p4 }
   0xf   :  { %p704_p7 = pnand %p703_p6, %p697_p3 }
  0x11   :  { %707 = shalt.err (!%p704_p7)
}
  0x12   :  { %s782_s24 = smov 64   ;;  %s783_s25 = smov 4  }
  0x13   :  { %34 = dma.hbm_to_vmem [thread:$0]  %s871_s1, 1024, %s29_s13, [#allocation7], %s782_s24, %s782_s24, %s783_s25  }
  0x14   :  { %s708_s30 = scalar_lea.hbm %s870_s0, 1024 }
  0x15   :  { %p709_p8 = scmp.ne.s32.totalorder %s870_s0, %s708_s30  ;;  %p712_p9 = scmp.lt.u32.totalorder %s708_s30, %s870_s0 }
  0x17   :  { %p714_p10 = pnand %p712_p9, %p709_p8 }
  0x19   :  { %717 = shalt.err (!%p714_p10)
}
  0x1a   :  { %s718_s8 = scalar_lea.vmem %s806_s15, 1024  ;;  %p723_p12 = scmp.lt.s32.totalorder %s806_s15, %s806_s15 }
  0x1b   :  { %p719_p11 = scmp.ne.s32.totalorder %s806_s15, %s718_s8  ;;  %p724_p13 = scmp.lt.s32.totalorder %s718_s8, %s718_s8 }
  0x1d   :  { %p725_p0 = por %p724_p13, %p723_p12 }
  0x1f   :  { %p726_p1 = pnand %p725_p0, %p719_p11 }
  0x21   :  { %729 = shalt.err (!%p726_p1)
}
  0x22   :  { %22 = dma.hbm_to_vmem [thread:$0]  %s870_s0, 1024, %s806_s15, [#allocation4], %s782_s24, %s782_s24, %s783_s25  }
  0x23   :  { %s784_s10 = smov [#allocation8]   ;;  %s730_s14 = scalar_lea.hbm %s872_s2, 16 }
  0x24   :  { %s41_s11 = sshll.u32 %s784_s10, 4  ;;  %p731_p2 = scmp.ne.s32.totalorder %s872_s2, %s730_s14  ;;  %s42_s11 = int_to_ptr.vmem [resolvable:$true] %s41_s11 }
  0x25   :  { %p734_p3 = scmp.lt.u32.totalorder %s730_s14, %s872_s2 }
  0x27   :  { %p736_p4 = pnand %p734_p3, %p731_p2 }
  0x29   :  { %739 = shalt.err (!%p736_p4)
}
  0x2a   :  { %s740_s20 = scalar_lea.vmem %s42_s11, 16  ;;  %s744_s0 = scalar_lea.vmem %s42_s11, 32 }
  0x2b   :  { %p741_p5 = scmp.ne.s32.totalorder %s42_s11, %s740_s20  ;;  %p745_p6 = scmp.lt.s32.totalorder %s42_s11, %s42_s11 }
  0x2c   :  { %p746_p7 = scmp.lt.s32.totalorder %s744_s0, %s740_s20 }
  0x2e   :  { %p747_p8 = por %p746_p7, %p745_p6 }
  0x30   :  { %p748_p9 = pnand %p747_p8, %p741_p5 }
  0x32   :  { %751 = shalt.err (!%p748_p9)
}
  0x33   :  { %44 = dma.hbm_to_vmem [thread:$0]  %s872_s2, 16, %s42_s11, [#allocation7]  }
  0x34   :  { %774 = dma.done.wait [#allocation4], 1024  }
  0x35   :  { %775 = vsyncadd [#allocation4], 4294966272 }
  0x36   :  { %776 = dma.done.wait [#allocation7], 1040  }
  0x37   :  { %777 = vsyncadd [#allocation7], 4294966256  ;;  %v670_v0 = vld [vmem:[#allocation6] sm:$0xff]   ;;  %v671_v1 = vld [vmem:[#allocation6 + $0x8] sm:$0xff]   ;;  %s785_s2 = smov [#allocation9]  }
  0x38   :  { %616 = vmatprep.subr.bf16.mxu0 %v670_v0  ;;  %648 = vmatprep.subr.bf16.mxu1 %v670_v0  ;;  %v672_v2 = vld [vmem:[#allocation6 + $0x10] sm:$0xff]   ;;  %v673_v3 = vld [vmem:[#allocation6 + $0x18] sm:$0xff]   ;;  %v678_v4 = vld [vmem:[#allocation3] sm:$0xff]   ;;  %s491_s22 = sshll.u32 %s785_s2, 4  ;;  %s492_s22 = int_to_ptr.vmem [resolvable:$true] %s491_s22 }
  0x39   :  { %617 = vmatpush3.bf16.msra.mxu0 %v670_v0  ;;  %656 = vmatpush3.bf16.msra.mxu1 %v670_v0  ;;  %v679_v5 = vld [vmem:[#allocation3 + $0x20] sm:$0xff]   ;;  %v675_v7 = vld [vmem:[#allocation6 + $0x28] sm:$0xff]   ;;  %v676_v8 = vld [vmem:[#allocation6 + $0x30] sm:$0xff]   ;;  %s752_s23 = scalar_lea.vmem %s492_s22, 1024  ;;  %p757_p11 = scmp.lt.s32.totalorder %s492_s22, %s492_s22 }
  0x3a   :  { %618 = vmatprep.subr.bf16.mxu0 %v671_v1  ;;  %649 = vmatprep.subr.bf16.mxu1 %v671_v1  ;;  %v674_v6 = vld [vmem:[#allocation6 + $0x20] sm:$0xff]   ;;  %v677_v9 = vld [vmem:[#allocation6 + $0x38] sm:$0xff]   ;;  %v680_v10 = vld [vmem:[#allocation3 + $0x8] sm:$0xff]   ;;  %p753_p10 = scmp.ne.s32.totalorder %s492_s22, %s752_s23  ;;  %p758_p12 = scmp.lt.s32.totalorder %s752_s23, %s752_s23 }
  0x3b   :  { %632 = vmatprep.mubr.bf16.mxu0 %v678_v4  ;;  %640 = vmatprep.mubr.bf16.mxu1 %v679_v5  ;;  %v681_v11 = vld [vmem:[#allocation3 + $0x28] sm:$0xff]   ;;  %v682_v12 = vld [vmem:[#allocation3 + $0x10] sm:$0xff]   ;;  %v684_v14 = vld [vmem:[#allocation3 + $0x18] sm:$0xff]  }
  0x3c   :  { %v683_v13 = vld [vmem:[#allocation3 + $0x30] sm:$0xff]   ;;  %v685_v15 = vld [vmem:[#allocation3 + $0x38] sm:$0xff]   ;;  %v520_v16 = vld [vmem:[#allocation8] ss:$0 sm:$0xff]  ;;  %p759_p13 = por %p758_p12, %p757_p11 }
  0x3d   :  { %619 = vmatpush3.bf16.msra.mxu0 %v671_v1  ;;  %657 = vmatpush3.bf16.msra.mxu1 %v671_v1 }
  0x3e   :  { %620 = vmatprep.subr.bf16.mxu0 %v672_v2  ;;  %650 = vmatprep.subr.bf16.mxu1 %v672_v2  ;;  %p760_p0 = pnand %p759_p13, %p753_p10 }
  0x41   :  { %621 = vmatpush3.bf16.msra.mxu0 %v672_v2  ;;  %658 = vmatpush3.bf16.msra.mxu1 %v672_v2 }
  0x42   :  { %622 = vmatprep.subr.bf16.mxu0 %v673_v3  ;;  %651 = vmatprep.subr.bf16.mxu1 %v673_v3 }
  0x45   :  { %623 = vmatpush3.bf16.msra.mxu0 %v673_v3  ;;  %659 = vmatpush3.bf16.msra.mxu1 %v673_v3 }
  0x46   :  { %624 = vmatprep.subr.bf16.mxu0 %v674_v6  ;;  %652 = vmatprep.subr.bf16.mxu1 %v674_v6 }
  0x49   :  { %625 = vmatpush3.bf16.msra.mxu0 %v674_v6  ;;  %660 = vmatpush3.bf16.msra.mxu1 %v674_v6 }
  0x4a   :  { %626 = vmatprep.subr.bf16.mxu0 %v675_v7  ;;  %653 = vmatprep.subr.bf16.mxu1 %v675_v7 }
  0x4d   :  { %627 = vmatpush3.bf16.msra.mxu0 %v675_v7  ;;  %661 = vmatpush3.bf16.msra.mxu1 %v675_v7 }
  0x4e   :  { %628 = vmatprep.subr.bf16.mxu0 %v676_v8  ;;  %654 = vmatprep.subr.bf16.mxu1 %v676_v8 }
  0x51   :  { %629 = vmatpush3.bf16.msra.mxu0 %v676_v8  ;;  %662 = vmatpush3.bf16.msra.mxu1 %v676_v8 }
  0x52   :  { %630 = vmatprep.subr.bf16.mxu0 %v677_v9  ;;  %655 = vmatprep.subr.bf16.mxu1 %v677_v9 }
  0x55   :  { %631 = vmatpush3.bf16.msra.mxu0 %v677_v9  ;;  %663 = vmatpush3.bf16.msra.mxu1 %v677_v9 }
  0x58   :  { %633 = vmatmul.mubr.bf16.vlgmr.msra.gmra.mrb[0].mxu0 %v680_v10  ;;  %641 = vmatmul.mubr.bf16.vlgmr.msra.gmra.mrb[0].mxu1 %v681_v11 }
  0x59   :  { %636 = vmatprep.mubr.bf16.mxu0 %v682_v12  ;;  %644 = vmatprep.mubr.bf16.mxu1 %v683_v13 }
  0x60   :  { %637 = vmatmul.mubr.bf16.gmra.mrb[4].mxu0 %v684_v14  ;;  %645 = vmatmul.mubr.bf16.gmra.mrb[4].mxu1 %v685_v15 }
 0x12b   :  { %v634_v17 = vpop.f32.mrb[0].mxu0  ;;  %v642_v18 = vpop.f32.mrb[0].mxu1 }
 0x12c   :  { %v376_v19 = vadd.f32 %v634_v17, %v520_v16  ;;  %v384_v20 = vadd.f32 %v642_v18, %v520_v16  ;;  %v253_v21 = vpop.f32.mrb[1].mxu0  ;;  %v285_v22 = vpop.f32.mrb[1].mxu1 }
 0x12d   :  { %v374_v23 = vadd.f32 %v520_v16, %v253_v21  ;;  %v382_v24 = vadd.f32 %v520_v16, %v285_v22  ;;  %v635_v25 = vpop.f32.mrb[2].mxu0  ;;  %v643_v26 = vpop.f32.mrb[2].mxu1 }
 0x12e   :  { %v377_v27 = vadd.f32 %v635_v25, %v520_v16  ;;  %v385_v28 = vadd.f32 %v643_v26, %v520_v16  ;;  %v256_v29 = vpop.f32.mrb[3].mxu0  ;;  %v288_v30 = vpop.f32.mrb[3].mxu1  ;;  %v392_v33 = vmax.f32 %v376_v19, 0.0  ;;  %v400_v34 = vmax.f32 %v384_v20, 0.0 }
 0x12f   :  { %v375_v31 = vadd.f32 %v520_v16, %v256_v29  ;;  %v383_v32 = vadd.f32 %v520_v16, %v288_v30  ;;  %v390_v37 = vmax.f32 %v374_v23, 0.0  ;;  %v398_v38 = vmax.f32 %v382_v24, 0.0 }
 0x130   :  { %v393_v35 = vmax.f32 %v377_v27, 0.0  ;;  %v401_v36 = vmax.f32 %v385_v28, 0.0 }
 0x131   :  { %v391_v39 = vmax.f32 %v375_v31, 0.0  ;;  %v399_v40 = vmax.f32 %v383_v32, 0.0 }
 0x132   :  { %v561_v41 = vpack.c.bf16 %v393_v35, %v392_v33  ;;  %v581_v42 = vpack.c.bf16 %v401_v36, %v400_v34 }
 0x133   :  { %v556_v43 = vpack.c.bf16 %v391_v39, %v390_v37  ;;  %v576_v44 = vpack.c.bf16 %v399_v40, %v398_v38  ;;  %v638_v45 = vpop.f32.mrb[4].mxu0  ;;  %v646_v46 = vpop.f32.mrb[4].mxu1 }
 0x134   :  { %593 = vst [vmem:[#allocation9 + $0x8] sm:$0xff] %v561_v41   ;;  %597 = vst [vmem:[#allocation9 + $0x28] sm:$0xff] %v581_v42   ;;  %v380_v47 = vadd.f32 %v638_v45, %v520_v16  ;;  %v388_v48 = vadd.f32 %v646_v46, %v520_v16  ;;  %v269_v49 = vpop.f32.mrb[5].mxu0  ;;  %v301_v50 = vpop.f32.mrb[5].mxu1 }
 0x135   :  { %557 = vst [vmem:[#allocation9] sm:$0xff] %v556_v43   ;;  %596 = vst [vmem:[#allocation9 + $0x20] sm:$0xff] %v576_v44   ;;  %v378_v51 = vadd.f32 %v520_v16, %v269_v49  ;;  %v386_v52 = vadd.f32 %v520_v16, %v301_v50  ;;  %v639_v53 = vpop.f32.mrb[6].mxu0  ;;  %v647_v54 = vpop.f32.mrb[6].mxu1 }
 0x136   :  { %v381_v55 = vadd.f32 %v639_v53, %v520_v16  ;;  %v389_v56 = vadd.f32 %v647_v54, %v520_v16  ;;  %v272_v57 = vpop.f32.mrb[7].mxu0  ;;  %v304_v58 = vpop.f32.mrb[7].mxu1  ;;  %v396_v61 = vmax.f32 %v380_v47, 0.0  ;;  %v404_v62 = vmax.f32 %v388_v48, 0.0 }
 0x137   :  { %v379_v59 = vadd.f32 %v520_v16, %v272_v57  ;;  %v387_v60 = vadd.f32 %v520_v16, %v304_v58  ;;  %v394_v1 = vmax.f32 %v378_v51, 0.0  ;;  %v402_v2 = vmax.f32 %v386_v52, 0.0 }
 0x138   :  { %v397_v63 = vmax.f32 %v381_v55, 0.0  ;;  %v405_v0 = vmax.f32 %v389_v56, 0.0 }
 0x139   :  { %v395_v3 = vmax.f32 %v379_v59, 0.0  ;;  %v403_v4 = vmax.f32 %v387_v60, 0.0 }
 0x13a   :  { %v571_v5 = vpack.c.bf16 %v397_v63, %v396_v61  ;;  %v591_v6 = vpack.c.bf16 %v405_v0, %v404_v62 }
 0x13b   :  { %v566_v7 = vpack.c.bf16 %v395_v3, %v394_v1  ;;  %v586_v8 = vpack.c.bf16 %v403_v4, %v402_v2 }
 0x13c   :  { %595 = vst [vmem:[#allocation9 + $0x18] sm:$0xff] %v571_v5   ;;  %599 = vst [vmem:[#allocation9 + $0x38] sm:$0xff] %v591_v6  }
 0x13d   :  { %594 = vst [vmem:[#allocation9 + $0x10] sm:$0xff] %v566_v7   ;;  %598 = vst [vmem:[#allocation9 + $0x30] sm:$0xff] %v586_v8  }
 0x13e   :  { %763 = shalt.err (!%p760_p0)
}
 0x13f   :  { %s764_s28 = scalar_lea.hbm %s873_s3, 1024 }
 0x140   :  { %p765_p1 = scmp.ne.s32.totalorder %s873_s3, %s764_s28  ;;  %p768_p2 = scmp.lt.u32.totalorder %s764_s28, %s873_s3 }
 0x142   :  { %p770_p3 = pnand %p768_p2, %p765_p1 }
 0x144   :  { %773 = shalt.err (!%p770_p3)
}
 0x145   :  { %497 = dma.vmem_to_hbm [thread:$0]  %s492_s22, 1024, %s873_s3, [#allocation5], %s782_s24, %s782_s24, %s783_s25  }
 0x146   :  { %778 = dma.done.wait [#allocation5], 1024  }
 0x147   :  { %779 = vsyncadd [#allocation5], 4294966272 }
 0x148   :  { %501 = vsyncpa [#allocation4], 1 }
 0x149   :  { %502 = vsyncpa [#allocation7], 1 }
 0x14a   :  { %503 = vsyncpa [#allocation5], 1 }

// kernel: icnet_forward.7
= control target key start
LH: loop header
LB: loop body
LE: loop exit
PB: predicated region body
PF: predicated region fallthrough
CT: control target
= control target key end

     0   :  { %8 = vsyncpa [#allocation4], 0  ;;  %s789_s0 = inlined_call_operand.hbm [shape: bf16[32,384], index: 0, kind: input, shape index: {}]   ;;  %s790_s1 = inlined_call_operand.hbm [shape: bf16[384,128], index: 1, kind: input, shape index: {}]   ;;  %s791_s2 = inlined_call_operand.hbm [shape: f32[1,128], index: 2, kind: input, shape index: {}]   ;;  %s792_s3 = inlined_call_operand.hbm [shape: bf16[32,128], index: 3, kind: output, shape index: {}]  }
   0x1   :  { %9 = vsyncpa [#allocation7], 0 }
   0x2   :  { %10 = vsyncpa [#allocation5], 0  ;;  %s707_s12 = smov [#allocation6]   ;;  %s613_s16 = scalar_lea.hbm %s790_s1, 3072 }
   0x3   :  { %s28_s13 = sshll.u32 %s707_s12, 4  ;;  %p614_p0 = scmp.ne.s32.totalorder %s790_s1, %s613_s16  ;;  %s29_s13 = int_to_ptr.vmem [resolvable:$true] %s28_s13 }
   0x4   :  { %p617_p1 = scmp.lt.u32.totalorder %s613_s16, %s790_s1 }
   0x6   :  { %p619_p2 = pnand %p617_p1, %p614_p0 }
   0x8   :  { %622 = shalt.err (!%p619_p2)
}
   0x9   :  { %s623_s21 = scalar_lea.vmem %s29_s13, 3072  ;;  %p628_p4 = scmp.lt.s32.totalorder %s29_s13, %s29_s13 }
   0xa   :  { %p624_p3 = scmp.ne.s32.totalorder %s29_s13, %s623_s21  ;;  %p629_p5 = scmp.lt.s32.totalorder %s623_s21, %s623_s21 }
   0xc   :  { %p630_p6 = por %p629_p5, %p628_p4 }
   0xe   :  { %p631_p7 = pnand %p630_p6, %p624_p3 }
  0x10   :  { %634 = shalt.err (!%p631_p7)
}
  0x11   :  { %s708_s22 = smov 64   ;;  %s709_s23 = smov 4  }
  0x12   :  { %34 = dma.hbm_to_vmem [thread:$0]  %s790_s1, 3072, %s29_s13, [#allocation7], %s708_s22, %s708_s22, %s709_s23  }
  0x13   :  { %s710_s26 = smov [#allocation3]   ;;  %s635_s30 = scalar_lea.hbm %s789_s0, 768 }
  0x14   :  { %s16_s27 = sshll.u32 %s710_s26, 4  ;;  %p636_p8 = scmp.ne.s32.totalorder %s789_s0, %s635_s30  ;;  %s17_s27 = int_to_ptr.vmem [resolvable:$true] %s16_s27 }
  0x15   :  { %p639_p9 = scmp.lt.u32.totalorder %s635_s30, %s789_s0 }
  0x17   :  { %p641_p10 = pnand %p639_p9, %p636_p8 }
  0x19   :  { %644 = shalt.err (!%p641_p10)
}
  0x1a   :  { %s645_s8 = scalar_lea.vmem %s17_s27, 768  ;;  %p650_p12 = scmp.lt.s32.totalorder %s17_s27, %s17_s27 }
  0x1b   :  { %p646_p11 = scmp.ne.s32.totalorder %s17_s27, %s645_s8  ;;  %p651_p13 = scmp.lt.s32.totalorder %s645_s8, %s645_s8 }
  0x1d   :  { %p652_p0 = por %p651_p13, %p650_p12 }
  0x1f   :  { %p653_p1 = pnand %p652_p0, %p646_p11 }
  0x21   :  { %656 = shalt.err (!%p653_p1)
}
  0x22   :  { %s711_s1 = smov 192   ;;  %s712_s9 = smov 12  }
  0x23   :  { %22 = dma.hbm_to_vmem [thread:$0]  %s789_s0, 768, %s17_s27, [#allocation4], %s711_s1, %s711_s1, %s712_s9  }
  0x24   :  { %s713_s12 = smov [#allocation8]   ;;  %s657_s16 = scalar_lea.hbm %s791_s2, 16 }
  0x25   :  { %s41_s13 = sshll.u32 %s713_s12, 4  ;;  %p658_p2 = scmp.ne.s32.totalorder %s791_s2, %s657_s16  ;;  %s42_s13 = int_to_ptr.vmem [resolvable:$true] %s41_s13 }
  0x26   :  { %p661_p3 = scmp.lt.u32.totalorder %s657_s16, %s791_s2 }
  0x28   :  { %p663_p4 = pnand %p661_p3, %p658_p2 }
  0x2a   :  { %666 = shalt.err (!%p663_p4)
}
  0x2b   :  { %s667_s21 = scalar_lea.vmem %s42_s13, 16  ;;  %s671_s0 = scalar_lea.vmem %s42_s13, 32 }
  0x2c   :  { %p668_p5 = scmp.ne.s32.totalorder %s42_s13, %s667_s21  ;;  %p672_p6 = scmp.lt.s32.totalorder %s42_s13, %s42_s13 }
  0x2d   :  { %p673_p7 = scmp.lt.s32.totalorder %s671_s0, %s667_s21 }
  0x2f   :  { %p674_p8 = por %p673_p7, %p672_p6 }
  0x31   :  { %p675_p9 = pnand %p674_p8, %p668_p5 }
  0x33   :  { %678 = shalt.err (!%p675_p9)
}
  0x34   :  { %44 = dma.hbm_to_vmem [thread:$0]  %s791_s2, 16, %s42_s13, [#allocation7]  }
  0x35   :  { %701 = dma.done.wait [#allocation4], 768  }
  0x36   :  { %702 = vsyncadd [#allocation4], 4294966528 }
  0x37   :  { %703 = dma.done.wait [#allocation7], 3088  }
  0x38   :  { %704 = vsyncadd [#allocation7], 4294964208  ;;  %v581_v0 = vld [vmem:[#allocation6 + $0x40] sm:$0xff]   ;;  %v584_v3 = vld [vmem:[#allocation6 + $0x48] sm:$0xff]   ;;  %s714_s2 = smov [#allocation9]  }
  0x39   :  { %v582_v1 = vld [vmem:[#allocation6] sm:$0xff]   ;;  %515 = vmatprep.subr.bf16.mxu0 %v581_v0  ;;  %v585_v4 = vld [vmem:[#allocation6 + $0x8] sm:$0xff]   ;;  %v587_v6 = vld [vmem:[#allocation6 + $0x50] sm:$0xff]   ;;  %s452_s26 = sshll.u32 %s714_s2, 4  ;;  %s453_s26 = int_to_ptr.vmem [resolvable:$true] %s452_s26 }
  0x3a   :  { %v583_v2 = vld [vmem:[#allocation6 + $0x80] sm:$0xff]   ;;  %516 = vmatpush3.bf16.msra.mxu0 %v582_v1  ;;  %v586_v5 = vld [vmem:[#allocation6 + $0x88] sm:$0xff]   ;;  %v588_v7 = vld [vmem:[#allocation6 + $0x10] sm:$0xff]   ;;  %s679_s27 = scalar_lea.vmem %s453_s26, 256  ;;  %p684_p11 = scmp.lt.s32.totalorder %s453_s26, %s453_s26 }
  0x3b   :  { %553 = vmatprep.subr.bf16.mxu1 %v583_v2  ;;  %517 = vmatprep.subr.bf16.mxu0 %v584_v3  ;;  %v589_v8 = vld [vmem:[#allocation6 + $0x90] sm:$0xff]   ;;  %v590_v9 = vld [vmem:[#allocation6 + $0x58] sm:$0xff]   ;;  %v593_v12 = vld [vmem:[#allocation6 + $0x60] sm:$0xff]   ;;  %p680_p10 = scmp.ne.s32.totalorder %s453_s26, %s679_s27  ;;  %p685_p12 = scmp.lt.s32.totalorder %s679_s27, %s679_s27 }
  0x3c   :  { %554 = vmatpush3.bf16.msra.mxu1 %v583_v2  ;;  %v591_v10 = vld [vmem:[#allocation6 + $0x18] sm:$0xff]   ;;  %v595_v13 = vld [vmem:[#allocation6 + $0xa0] sm:$0xff]   ;;  %v596_v15 = vld [vmem:[#allocation6 + $0x68] sm:$0xff]  }
  0x3d   :  { %555 = vmatprep.subr.bf16.mxu1 %v586_v5  ;;  %v592_v11 = vld [vmem:[#allocation6 + $0x98] sm:$0xff]   ;;  %v594_v14 = vld [vmem:[#allocation6 + $0x20] sm:$0xff]   ;;  %v598_v16 = vld [vmem:[#allocation6 + $0xa8] sm:$0xff]   ;;  %p686_p13 = por %p685_p12, %p684_p11 }
  0x3e   :  { %518 = vmatpush3.bf16.msra.mxu0 %v585_v4  ;;  %v597_v17 = vld [vmem:[#allocation6 + $0x28] sm:$0xff]   ;;  %v599_v18 = vld [vmem:[#allocation6 + $0x70] sm:$0xff]   ;;  %v602_v21 = vld [vmem:[#allocation6 + $0x78] sm:$0xff]  }
  0x3f   :  { %519 = vmatprep.subr.bf16.mxu0 %v587_v6  ;;  %v600_v19 = vld [vmem:[#allocation6 + $0x30] sm:$0xff]   ;;  %v604_v22 = vld [vmem:[#allocation6 + $0xb8] sm:$0xff]   ;;  %v495_v37 = vld [vmem:[#allocation8] ss:$0 sm:$0xff]  ;;  %p687_p0 = pnand %p686_p13, %p680_p10 }
  0x40   :  { %556 = vmatpush3.bf16.msra.mxu1 %v586_v5  ;;  %v601_v20 = vld [vmem:[#allocation6 + $0xb0] sm:$0xff]   ;;  %v608_v24 = vld [vmem:[#allocation3 + $0x8] ss:$12 sps:$4 sm:$0xff]  }
  0x41   :  { %557 = vmatprep.subr.bf16.mxu1 %v589_v8  ;;  %v607_v23 = vld [vmem:[#allocation3 + $0x4] ss:$12 sps:$4 sm:$0xff]   ;;  %v603_v25 = vld [vmem:[#allocation6 + $0x38] sm:$0xff]   ;;  %569 = vmatprep.mubr.bf16.mxu1 %v608_v24 }
  0x42   :  { %520 = vmatpush3.bf16.msra.mxu0 %v588_v7  ;;  %331 = vmatprep.mubr.bf16.mxu0 %v607_v23  ;;  %v605_v26 = vld [vmem:[#allocation3] ss:$12 sps:$4 sm:$0xff]   ;;  %v610_v27 = vld [vmem:[#allocation3 + $0x1c] ss:$12 sps:$4 sm:$0xff]   ;;  %v612_v29 = vld [vmem:[#allocation3 + $0x18] ss:$12 sps:$4 sm:$0xff]  }
  0x43   :  { %521 = vmatprep.subr.bf16.mxu0 %v590_v9  ;;  %v609_v28 = vld [vmem:[#allocation3 + $0x20] ss:$12 sps:$4 sm:$0xff]  }
  0x44   :  { %558 = vmatpush3.bf16.msra.mxu1 %v589_v8 }
  0x45   :  { %559 = vmatprep.subr.bf16.mxu1 %v592_v11 }
  0x46   :  { %522 = vmatpush3.bf16.msra.mxu0 %v591_v10 }
  0x47   :  { %523 = vmatprep.subr.bf16.mxu0 %v593_v12 }
  0x48   :  { %560 = vmatpush3.bf16.msra.mxu1 %v592_v11 }
  0x49   :  { %561 = vmatprep.subr.bf16.mxu1 %v595_v13 }
  0x4a   :  { %524 = vmatpush3.bf16.msra.mxu0 %v594_v14 }
  0x4b   :  { %525 = vmatprep.subr.bf16.mxu0 %v596_v15 }
  0x4c   :  { %562 = vmatpush3.bf16.msra.mxu1 %v595_v13 }
  0x4d   :  { %563 = vmatprep.subr.bf16.mxu1 %v598_v16 }
  0x4e   :  { %526 = vmatpush3.bf16.msra.mxu0 %v597_v17 }
  0x4f   :  { %527 = vmatprep.subr.bf16.mxu0 %v599_v18 }
  0x50   :  { %564 = vmatpush3.bf16.msra.mxu1 %v598_v16 }
  0x51   :  { %565 = vmatprep.subr.bf16.mxu1 %v601_v20 }
  0x52   :  { %528 = vmatpush3.bf16.msra.mxu0 %v600_v19 }
  0x53   :  { %529 = vmatprep.subr.bf16.mxu0 %v602_v21 }
  0x54   :  { %566 = vmatpush3.bf16.msra.mxu1 %v601_v20 }
  0x55   :  { %567 = vmatprep.subr.bf16.mxu1 %v604_v22 }
  0x56   :  { %530 = vmatpush3.bf16.msra.mxu0 %v603_v25 }
  0x58   :  { %568 = vmatpush3.bf16.msra.mxu1 %v604_v22 }
  0x59   :  { %332 = vmatmul.mubr.bf16.vlgmr.msra.gmra.mrb[0].mxu0 %v605_v26 }
  0x5a   :  { %339 = vmatprep.mubr.bf16.mxu0 %v610_v27 }
  0x5b   :  { %570 = vmatmul.mubr.bf16.vlgmr.msra.gmra.mrb[0].mxu1 %v609_v28 }
  0x61   :  { %340 = vmatmul.mubr.bf16.gmra.mrb[4].mxu0 %v612_v29 }
 0x12c   :  { %v531_v30 = vpop.f32.mrb[0].mxu0 }
 0x12d   :  { %v532_v31 = vpop.f32.mrb[1].mxu0 }
 0x12e   :  { %v533_v32 = vadd.f32 %v532_v31, %v531_v30  ;;  %v534_v33 = vpop.f32.mrb[2].mxu0  ;;  %v571_v34 = vpop.f32.mrb[0].mxu1 }
 0x12f   :  { %v535_v35 = vpop.f32.mrb[3].mxu0  ;;  %v382_v36 = vpop.f32.mrb[1].mxu1 }
 0x130   :  { %v536_v38 = vadd.f32 %v535_v35, %v534_v33  ;;  %v383_v39 = vadd.f32 %v533_v32, %v382_v36  ;;  %v572_v40 = vpop.f32.mrb[2].mxu1 }
 0x131   :  { %v385_v41 = vpop.f32.mrb[3].mxu1 }
 0x132   :  { %v419_v42 = vadd.f32 %v495_v37, %v383_v39  ;;  %v386_v43 = vadd.f32 %v536_v38, %v385_v41 }
 0x134   :  { %v420_v44 = vadd.f32 %v495_v37, %v386_v43  ;;  %v537_v45 = vpop.f32.mrb[4].mxu0  ;;  %v423_v47 = vmax.f32 %v419_v42, 0.0 }
 0x135   :  { %v538_v46 = vpop.f32.mrb[5].mxu0 }
 0x136   :  { %v424_v48 = vmax.f32 %v420_v44, 0.0  ;;  %v539_v49 = vadd.f32 %v538_v46, %v537_v45  ;;  %v540_v50 = vpop.f32.mrb[6].mxu0 }
 0x137   :  { %v541_v51 = vpop.f32.mrb[7].mxu0 }
 0x138   :  { %v507_v52 = vpack.c.bf16 %v424_v48, %v423_v47  ;;  %v391_v53 = vadd.f32 %v571_v34, %v539_v49  ;;  %v542_v54 = vadd.f32 %v541_v51, %v540_v50 }
 0x13a   :  { %508 = vst [vmem:[#allocation9] sm:$0xff] %v507_v52   ;;  %v421_v55 = vadd.f32 %v495_v37, %v391_v53  ;;  %v394_v56 = vadd.f32 %v572_v40, %v542_v54 }
 0x13c   :  { %v422_v57 = vadd.f32 %v495_v37, %v394_v56  ;;  %v425_v58 = vmax.f32 %v421_v55, 0.0 }
 0x13e   :  { %v426_v59 = vmax.f32 %v422_v57, 0.0 }
 0x140   :  { %v512_v60 = vpack.c.bf16 %v426_v59, %v425_v58 }
 0x142   :  { %514 = vst [vmem:[#allocation9 + $0x8] sm:$0xff] %v512_v60  }
 0x143   :  { %690 = shalt.err (!%p687_p0)
}
 0x144   :  { %s691_s30 = scalar_lea.hbm %s792_s3, 256 }
 0x145   :  { %p692_p1 = scmp.ne.s32.totalorder %s792_s3, %s691_s30  ;;  %p695_p2 = scmp.lt.u32.totalorder %s691_s30, %s792_s3 }
 0x147   :  { %p697_p3 = pnand %p695_p2, %p692_p1 }
 0x149   :  { %700 = shalt.err (!%p697_p3)
}
 0x14a   :  { %458 = dma.vmem_to_hbm [thread:$0]  %s453_s26, 256, %s792_s3, [#allocation5], %s708_s22, %s708_s22, %s709_s23  }
 0x14b   :  { %705 = dma.done.wait [#allocation5], 256  }
 0x14c   :  { %706 = vsyncadd [#allocation5], 4294967040 }
 0x14d   :  { %462 = vsyncpa [#allocation4], 1 }
 0x14e   :  { %463 = vsyncpa [#allocation7], 1 }
 0x14f   :  { %464 = vsyncpa [#allocation5], 1 }

// kernel: icnet_forward.8
= control target key start
LH: loop header
LB: loop body
LE: loop exit
PB: predicated region body
PF: predicated region fallthrough
CT: control target
= control target key end

     0   :  { %8 = vsyncpa [#allocation4], 0  ;;  %s1119_s0 = inlined_call_operand.hbm [shape: bf16[8,640], index: 0, kind: input, shape index: {}]   ;;  %s1120_s1 = inlined_call_operand.hbm [shape: bf16[640,128], index: 1, kind: input, shape index: {}]   ;;  %s1121_s2 = inlined_call_operand.hbm [shape: f32[1,128], index: 2, kind: input, shape index: {}]   ;;  %s1122_s3 = inlined_call_operand.hbm [shape: bf16[8,128], index: 3, kind: output, shape index: {}]  }
   0x1   :  { %10 = vsyncpa [#allocation4 + $0x1], 0 }
   0x2   :  { %11 = vsyncpa [#allocation7], 0 }
   0x3   :  { %13 = vsyncpa [#allocation7 + $0x1], 0 }
   0x4   :  { %14 = vsyncpa [#allocation5], 0  ;;  %s866_s12 = smov 0   ;;  %s868_s13 = smov 0  }
   0x5   :  { %s870_s14 = smov 0   ;;  %s872_s15 = smov 0  }
   0x6   :  { %s874_s16 = smov 0   ;;  %s876_s17 = smov 0  }
   0x7 LB: > { %s895_s18 = sadd.s32 4294967295, %s835_s17   ;;  %s48_s19 = sadd.s32 1, %s823_s14  ;;  %s835_s17 = sphi %s876_s17, %s20_s17   ;;  %s831_s16 = sphi %s874_s16, %s1143_s16   ;;  %s827_s15 = sphi %s872_s15, %s1142_s15   ;;  %s823_s14 = sphi %s870_s14, %s1141_s14   ;;  %s819_s13 = sphi %s868_s13, %s1140_s13   ;;  %s815_s12 = sphi %s866_s12, %s1139_s12  }
   0x8   : > { %p55_p0 = scmp.ne.s32.totalorder %s823_s14, %s819_s13  ;;  %p61_p1 = scmp.ne.s32.totalorder %s819_s13, %s815_s12 }
   0x9   : > { %p1123_p2 = scmp.eq.s32.totalorder %s895_s18, 0  ;;  %p511_p3 = scmp.ge.s32.totalorder %s835_s17, 1 }
   0xa   : > { %p154_p4 = scmp.lt.s32.totalorder %s835_s17, 6  ;;  %s837_s22 = smov [#allocation8]  }
   0xb   : > { %p906_p5 = por %p1123_p2, %p61_p1  ;;  %s169_s23 = sshll.u32 %s837_s22, 4  ;;  %s170_s23 = int_to_ptr.vmem [resolvable:$true] %s169_s23 }
   0xc   : > { %p910_p6 = pnand %p511_p3, %p154_p4  ;;  %p56_p8 = scmp.eq.s32.totalorder %s835_s17, 0 }
   0xd   : > { %s1126_s20 = scalar_select %p906_p5, 1, 0 }
   0xe   : > { %s1127_s21 = scalar_select %p910_p6, 1, 0 }
   0xf   : > { %p580_p7 = pneg %p910_p6  ;;  %s32_s25 = sadd.s32 1, %s831_s16 }
  0x10   : > { %p924_p10 = scmp.ge.s32.totalorder %s32_s25, 5  ;;  %p931_p11 = por %p56_p8, %p55_p0 }
  0x11   : > { %p919_p9 = pnand %p580_p7, %p1123_p2  ;;  %s659_s30 = scalar_lea.hbm %s1121_s2, 16 }
  0x12   : > { %s1129_s26 = scalar_select %p924_p10, 1, 0 }
  0x13   : > { %s1130_s27 = scalar_select %p931_p11, 1, 0 }
  0x14   : > { %p660_p13 = scmp.ne.s32.totalorder %s1121_s2, %s659_s30  ;;  %p661_p1 = pneg %p919_p9 }
  0x15   : > { %p666_p0 = scmp.lt.u32.totalorder %s659_s30, %s1121_s2 }
  0x16   : > { %p662_p3 = pnand %p661_p1, %p660_p13 }
  0x18   : > { %p663_p4 = pneg %p662_p3 }
  0x1a   : > { %p668_p7 = pnand %p666_p0, %p663_p4 }
  0x1c   : > { %671 = shalt.err (!%p668_p7)
}
  0x1d   : > { %s672_s8 = scalar_lea.vmem %s170_s23, 16  ;;  %s679_s9 = scalar_lea.vmem %s170_s23, 32 }
  0x1e   : > { %p673_p8 = scmp.ne.s32.totalorder %s170_s23, %s672_s8  ;;  %p680_p5 = scmp.lt.s32.totalorder %s170_s23, %s170_s23 }
  0x1f   : > { %p681_p6 = scmp.lt.s32.totalorder %s679_s9, %s672_s8 }
  0x20   : > { %p675_p2 = pnand %p673_p8, %p661_p1 }
  0x21   : > { %p682_p11 = por %p681_p6, %p680_p5 }
  0x22   : > { %p676_p12 = pneg %p675_p2 }
  0x24   : > { %p683_p10 = pnand %p682_p11, %p676_p12 }
  0x26   : > { %686 = shalt.err (!%p683_p10)
}
  0x27   : > { %583 = dma.hbm_to_vmem [thread:$0]  (!%p919_p9), %s1121_s2, 16, %s170_s23, [#allocation7]  }
  0x28   : > { %p1131_p2 = scmp.ne.s32.totalorder %s1129_s26, 0  ;;  %s957_s12 = sand.u32 1, %s823_s14  }
  0x29   : > { %s515_s22 = sshll.u32 %s831_s16, 6  ;;  %s514_s28 = sshll.u32 %s957_s12, 2 }
  0x2a   : > { %s1145_s25 = smov (%p1131_p2, %s32_s25), 0  ;;  %s966_s4 = scalar_lea.hbm %s1119_s0, %s515_s22 }
  0x2b   : > { %s44_s24 = ssub.s32 %s831_s16, %s1145_s25  ;;  %s184_s26 = scalar_lea.vmem [#allocation3], %s514_s28 }
  0x2c   : > { %p46_p5 = scmp.eq.s32.totalorder %s44_s24, 0  ;;  %s193_s5 = sshll.u32 %s184_s26, 4  ;;  %s981_s5 = int_to_ptr.vmem [resolvable:$true] %s193_s5 }
  0x2d   : > { %p1132_p6 = scmp.ne.s32.totalorder %s1130_s27, 0  ;;  %p1133_p9 = scmp.lt.s32.totalorder %s835_s17, 5 }
  0x2e   : > { %s971_s23 = scalar_select %p46_p5, %s823_s14, %s48_s19  }
  0x2f   : > { %p977_p10 = pnand %p1133_p9, %p1132_p6  ;;  %s516_s7 = sshll.u32 %s957_s12, 6 }
  0x30   : > { %s181_s8 = scalar_lea.sflag [#allocation4], %s957_s12  ;;  %s687_s9 = scalar_lea.hbm %s966_s4, 64 }
  0x31   : > { %p688_p11 = scmp.ne.s32.totalorder %s966_s4, %s687_s9  ;;  %p689_p12 = pneg %p977_p10 }
  0x32   : > { %s692_s10 = scalar_lea.hbm %s1119_s0, 320  ;;  %p693_p3 = scmp.lt.u32.totalorder %s966_s4, %s1119_s0 }
  0x33   : > { %p690_p13 = pnand %p689_p12, %p688_p11  ;;  %p694_p4 = scmp.lt.u32.totalorder %s692_s10, %s687_s9 }
  0x34   : > { %p696_p7 = scmp.lt.u32.totalorder %s687_s9, %s966_s4 }
  0x35   : > { %p691_p1 = pneg %p690_p13  ;;  %p695_p0 = por %p694_p4, %p693_p3 }
  0x37   : > { %p697_p8 = por %p696_p7, %p695_p0 }
  0x39   : > { %p698_p2 = pnand %p697_p8, %p691_p1 }
  0x3b   : > { %701 = shalt.err (!%p698_p2)
}
  0x3c   : > { %s702_s24 = scalar_lea.vmem %s981_s5, 64  ;;  %s838_s28 = smov [#allocation3]  }
  0x3d   : > { %p703_p5 = scmp.ne.s32.totalorder %s981_s5, %s702_s24  ;;  %s707_s29 = sshll.u32 %s838_s28, 4  ;;  %s708_s29 = int_to_ptr.vmem [resolvable:$false] %s707_s29 }
  0x3e   : > { %s709_s30 = scalar_lea.vmem %s708_s29, 128  ;;  %p710_p11 = scmp.lt.s32.totalorder %s981_s5, %s708_s29 }
  0x3f   : > { %p705_p6 = pnand %p703_p5, %p689_p12  ;;  %p711_p13 = scmp.lt.s32.totalorder %s709_s30, %s702_s24 }
  0x41   : > { %p706_p9 = pneg %p705_p6  ;;  %p712_p3 = por %p711_p13, %p710_p11 }
  0x43   : > { %p713_p4 = pnand %p712_p3, %p706_p9 }
  0x45   : > { %716 = shalt.err (!%p713_p4)
}
  0x46   : > { %587 = dma.hbm_to_vmem [thread:$0]  (!%p977_p10), %s966_s4, 64, %s981_s5, %s181_s8  }
  0x47   : > { %s538_s26 = sshll.u32 %s831_s16, 10  ;;  %s204_s9 = scalar_lea.vmem [#allocation6], %s516_s7 }
  0x48   : > { %s212_s19 = sshll.u32 %s204_s9, 4  ;;  %s200_s27 = sand.u32 1, %s835_s17   ;;  %s1013_s19 = int_to_ptr.vmem [resolvable:$true] %s212_s19 }
  0x49   : > { %s1019_s22 = scalar_lea.hbm %s1120_s1, %s538_s26  ;;  %s1021_s24 = scalar_lea.sflag [#allocation7], %s200_s27 }
  0x4a   : > { %s717_s28 = scalar_lea.hbm %s1019_s22, 1024  ;;  %s722_s5 = scalar_lea.hbm %s1120_s1, 5120 }
  0x4b   : > { %p718_p1 = scmp.ne.s32.totalorder %s1019_s22, %s717_s28  ;;  %p723_p8 = scmp.lt.u32.totalorder %s1019_s22, %s1120_s1 }
  0x4c   : > { %p724_p2 = scmp.lt.u32.totalorder %s722_s5, %s717_s28  ;;  %p726_p6 = scmp.lt.u32.totalorder %s717_s28, %s1019_s22 }
  0x4d   : > { %p720_p0 = pnand %p718_p1, %p689_p12 }
  0x4e   : > { %p725_p5 = por %p724_p2, %p723_p8 }
  0x4f   : > { %p721_p7 = pneg %p720_p0 }
  0x50   : > { %p727_p9 = por %p726_p6, %p725_p5 }
  0x52   : > { %p728_p11 = pnand %p727_p9, %p721_p7 }
  0x54   : > { %731 = shalt.err (!%p728_p11)
}
  0x55   : > { %s732_s29 = scalar_lea.vmem %s1013_s19, 1024  ;;  %s839_s30 = smov [#allocation6]  }
  0x56   : > { %p733_p13 = scmp.ne.s32.totalorder %s1013_s19, %s732_s29  ;;  %s737_s26 = sshll.u32 %s839_s30, 4  ;;  %s738_s26 = int_to_ptr.vmem [resolvable:$false] %s737_s26 }
  0x57   : > { %s739_s9 = scalar_lea.vmem %s738_s26, 2048  ;;  %p740_p1 = scmp.lt.s32.totalorder %s1013_s19, %s738_s26 }
  0x58   : > { %p735_p3 = pnand %p733_p13, %p689_p12  ;;  %p741_p0 = scmp.lt.s32.totalorder %s739_s9, %s732_s29 }
  0x5a   : > { %p736_p4 = pneg %p735_p3  ;;  %p742_p8 = por %p741_p0, %p740_p1 }
  0x5c   : > { %p743_p2 = pnand %p742_p8, %p736_p4 }
  0x5e   : > { %746 = shalt.err (!%p743_p2)
}
  0x5f   : > { %s840_s27 = smov 64   ;;  %s841_s10 = smov 4  }
  0x60   : > { %590 = dma.hbm_to_vmem [thread:$0]  (!%p977_p10), %s1019_s22, 1024, %s1013_s19, %s1021_s24, %s840_s27, %s840_s27, %s841_s10  }
  0x61   : > { %p1135_p12 = scmp.ne.s32.totalorder %s1127_s21, 0 }
  0x62   : > { %s226_s11 = sand.u32 (!%p1135_p12), 1, %s819_s13   ;;  %p1136_p7 = scmp.ne.s32.totalorder (!%p1135_p12), %s1126_s20, 0 }
  0x63   : > { %224 = sbr.rel (%p1135_p12) target bundleno = 409 (0x199), region = 32  ;;  %s520_s28 = sshll.u32 (!%p1135_p12), %s226_s11, 2 }
  0x64   : > { %s227_s12 = scalar_lea.sflag (!%p1135_p12), [#allocation4], %s226_s11  ;;  %s1050_s4 = scalar_lea.vmem (!%p1135_p12), [#allocation3], %s520_s28 }
  0x6a   : > { %798 = dma.done.wait (%p1136_p7), %s227_s12, 64  }
  0x6b   : > { %800 = vsyncadd (%p1136_p7), %s227_s12, 4294967232  ;;  %s235_s5 = sand.u32 1, %s895_s18   ;;  %s521_s6 = sshll.u32 %s226_s11, 6 }
  0x6c   : > { %s236_s19 = scalar_lea.sflag [#allocation7], %s235_s5  ;;  %s1057_s22 = scalar_lea.vmem [#allocation6], %s521_s6 }
  0x6d   : > { %802 = dma.done.wait (%p1136_p7), %s236_s19, 1024  }
  0x6e   : > { %804 = vsyncadd (%p1136_p7), %s236_s19, 4294966272  ;;  %p1137_p10 = scmp.eq.s32.totalorder %s895_s18, 0 }
  0x70   : > { %806 = dma.done.wait (%p1137_p10), [#allocation7], 16   ;;  %p1138_p5 = pmov %p1137_p10 }
  0x71   : > { %p523_p6 = scmp.ne.s32.totalorder %s827_s15, 0 }
  0x72   : > { %808 = vsyncadd (%p1138_p5), [#allocation7], 4294967280  ;;  %v842_v0 = vmov (!%p523_p6), 0.0  }
  0x73   : > { %271 = sbr.rel (%p523_p6) target bundleno = 122 (0x7a), region = 48  ;;  %272 = vst [vmem:[#allocation2] sm:$0xff] (!%p523_p6), %v842_v0 }
  0x7a PF: > { %v651_v1 = vld [vmem:[%s1057_s22] sm:$0xff]   ;;  %v843_v2 = vmov 0.0   ;;  %v652_v3 = vld [vmem:[%s1057_s22 + $0x8] sm:$0xff]   ;;  %vm844_vm0 = vmmov 0   ;;  %v653_v4 = vld [vmem:[%s1057_s22 + $0x10] sm:$0xff]   ;;  %p532_p9 = scmp.ne.s32.totalorder %s827_s15, 4 }
  0x7b   : > { %548 = vmatprep.subr.bf16.mxu0 %v843_v2  ;;  %564 = vmatprep.mubr.msk.bf16.mxu0 %vm844_vm0, %v843_v2  ;;  %v654_v5 = vld [vmem:[%s1057_s22 + $0x18] sm:$0xff]   ;;  %v655_v6 = vld [vmem:[%s1057_s22 + $0x20] sm:$0xff]   ;;  %v656_v7 = vld [vmem:[%s1057_s22 + $0x28] sm:$0xff]  }
  0x7c   : > { %549 = vmatpush3.bf16.msra.mxu0 %v651_v1  ;;  %v657_v8 = vld [vmem:[%s1057_s22 + $0x30] sm:$0xff]   ;;  %v658_v9 = vld [vmem:[%s1057_s22 + $0x38] sm:$0xff]   ;;  %v533_v18 = vld [vmem:[#allocation8] ss:$0 sm:$0xff] (!%p532_p9) }
  0x7d   : > { %550 = vmatprep.subr.bf16.mxu0 %v843_v2  ;;  %v274_v10 = vld [vmem:[%s1050_s4] sm:$0xf]  ;;  %v273_v11 = vld [vmem:[#allocation2] sm:$0xff] }
  0x80   : > { %551 = vmatpush3.bf16.msra.mxu0 %v652_v3 }
  0x81   : > { %552 = vmatprep.subr.bf16.mxu0 %v843_v2 }
  0x84   : > { %553 = vmatpush3.bf16.msra.mxu0 %v653_v4 }
  0x85   : > { %554 = vmatprep.subr.bf16.mxu0 %v843_v2 }
  0x88   : > { %555 = vmatpush3.bf16.msra.mxu0 %v654_v5 }
  0x89   : > { %556 = vmatprep.subr.bf16.mxu0 %v843_v2 }
  0x8c   : > { %557 = vmatpush3.bf16.msra.mxu0 %v655_v6 }
  0x8d   : > { %558 = vmatprep.subr.bf16.mxu0 %v843_v2 }
  0x90   : > { %559 = vmatpush3.bf16.msra.mxu0 %v656_v7 }
  0x91   : > { %560 = vmatprep.subr.bf16.mxu0 %v843_v2 }
  0x94   : > { %561 = vmatpush3.bf16.msra.mxu0 %v657_v8 }
  0x95   : > { %562 = vmatprep.subr.bf16.mxu0 %v843_v2 }
  0x98   : > { %563 = vmatpush3.bf16.msra.mxu0 %v658_v9 }
  0x9b   : > { %565 = vmatmul.mubr.bf16.vlgmr.msra.gmra.mrb[0].mxu0 %v274_v10 }
 0x16b   : > { %384 = sbr.rel (%p532_p9) target bundleno = 384 (0x180), region = 52 }
 0x16e   : > { %v373_v12 = vpop.f32.mrb[0].mxu0 }
 0x16f   : > { %v379_v13 = vadd.f32 %v373_v12, %v273_v11  ;;  %v566_v14 = vpop.f32.mrb[1].mxu0 }
 0x170   : > { %v376_v15 = vpop.f32.mrb[2].mxu0 }
 0x171   : > { %380 = vst [vmem:[#allocation2] sm:$0xff] %v379_v13  ;;  %v567_v16 = vpop.f32.mrb[3].mxu0 }
 0x178   : > { %v385_v17 = vld [vmem:[#allocation2] sm:$0xff] }
 0x179   : > { %v393_v19 = vadd.f32 %v533_v18, %v385_v17 }
 0x17b   : > { %v394_v20 = vmax.f32 %v393_v19, 0.0 }
 0x17d   : > { %v395_v21 = vpack.c.bf16 %v394_v20, %v394_v20 }
 0x17f   : > { %396 = vst [vmem:[#allocation9] sm:$0xf] %v395_v21 }
 0x180 PF: > { %p594_p11 = scmp.eq.s32.totalorder %s895_s18, 4  ;;  %s845_s20 = smov [#allocation9]  }
 0x181   : > { %s407_s21 = sshll.u32 %s845_s20, 4  ;;  %s408_s21 = int_to_ptr.vmem [resolvable:$true] %s407_s21 }
 0x182   : > { %s747_s24 = scalar_lea.vmem %s408_s21, 64  ;;  %p754_p1 = scmp.lt.s32.totalorder %s408_s21, %s408_s21 }
 0x183   : > { %p748_p13 = scmp.ne.s32.totalorder %s408_s21, %s747_s24  ;;  %p755_p0 = scmp.lt.s32.totalorder %s747_s24, %s747_s24 }
 0x185   : > { %p749_p3 = pnand %p748_p13, %p594_p11  ;;  %p756_p8 = por %p755_p0, %p754_p1 }
 0x187   : > { %p750_p4 = pneg %p749_p3 }
 0x189   : > { %p757_p2 = pnand %p756_p8, %p750_p4 }
 0x18b   : > { %760 = shalt.err (!%p757_p2)
}
 0x18c   : > { %s761_s8 = scalar_lea.hbm %s1122_s3, 64 }
 0x18d   : > { %p762_p12 = scmp.ne.s32.totalorder %s1122_s3, %s761_s8  ;;  %p767_p5 = scmp.lt.u32.totalorder %s761_s8, %s1122_s3 }
 0x18f   : > { %p763_p7 = pnand %p762_p12, %p594_p11 }
 0x191   : > { %p764_p10 = pneg %p763_p7 }
 0x193   : > { %p769_p6 = pnand %p767_p5, %p764_p10 }
 0x195   : > { %772 = shalt.err (!%p769_p6)
}
 0x196   : > { %577 = dma.vmem_to_hbm [thread:$0]  (%p594_p11), %s408_s21, 64, %s1122_s3, [#allocation5]  }
 0x197   : > { %810 = dma.done.wait (%p594_p11), [#allocation5], 64  }
 0x198   : > { %812 = vsyncadd (%p594_p11), [#allocation5], 4294967232 }
 0x199 PF: > { %s20_s17 = sadd.s32 1, %s835_s17   ;;  %s1139_s12 = smov %s819_s13 }
 0x19a   : > { %p17_p9 = scmp.ge.s32.totalorder %s20_s17, 7   ;;  %s1140_s13 = smov %s823_s14 }
 0x19b   : > { %s1141_s14 = smov %s971_s23  ;;  %s1142_s15 = smov %s831_s16 }
 0x19c   : > { %s1143_s16 = smov %s1145_s25  ;;  %19 = sbr.rel (!%p17_p9) target bundleno = 7 (0x7), region = 96 }
 0x1a3   :  { %420 = vsyncpa [#allocation4], 1 }
 0x1a4   :  { %422 = vsyncpa [#allocation4 + $0x1], 1 }
 0x1a5   :  { %423 = vsyncpa [#allocation7], 1 }
 0x1a6   :  { %425 = vsyncpa [#allocation7 + $0x1], 1 }
 0x1a7   :  { %426 = vsyncpa [#allocation5], 1 }
 0x1a8   :  { %428 = vsyncpa [#allocation5 + $0x1], 1 }

// kernel: icnet_forward.9
= control target key start
LH: loop header
LB: loop body
LE: loop exit
PB: predicated region body
PF: predicated region fallthrough
CT: control target
= control target key end

     0   :  { %s2455_s0 = inlined_call_operand.hbm [shape: bf16[2,64,32], index: 0, kind: input, shape index: {}]   ;;  %s2456_s1 = inlined_call_operand.hbm [shape: bf16[2,16,64], index: 1, kind: input, shape index: {}]   ;;  %s2457_s2 = inlined_call_operand.hbm [shape: bf16[2,4,128], index: 2, kind: input, shape index: {}]   ;;  %s2458_s3 = inlined_call_operand.hbm [shape: bf16[4,64], index: 3, kind: input, shape index: {}]   ;;  %s2459_s4 = inlined_call_operand.hbm [shape: bf16[4,16], index: 4, kind: input, shape index: {}]   ;;  %s2460_s5 = inlined_call_operand.hbm [shape: bf16[128,128], index: 5, kind: input, shape index: {}]   ;;  %s2461_s6 = inlined_call_operand.hbm [shape: f32[1,128], index: 6, kind: input, shape index: {}]   ;;  %s2462_s7 = inlined_call_operand.hbm [shape: bf16[56,4], index: 7, kind: input, shape index: {}]   ;;  %s2463_s8 = inlined_call_operand.hbm [shape: bf16[4,56], index: 8, kind: input, shape index: {}]   ;;  %s2464_s9 = inlined_call_operand.hbm [shape: f32[56,128], index: 9, kind: input, shape index: {}]   ;;  %s2465_s10 = inlined_call_operand.hbm [shape: bf16[2,4,384], index: 10, kind: output, shape index: {}]  }
   0x1   :  { %2492 = sst [smem:[#allocation34_spill]] %s2456_s1 }
   0x2   :  { %2493 = sst [smem:[#allocation35_spill]] %s2458_s3 }
   0x3   :  { %2494 = sst [smem:[#allocation36_spill]] %s2460_s5 }
   0x4   :  { %2495 = sst [smem:[#allocation37_spill]] %s2462_s7 }
   0x5   :  { %2496 = sst [smem:[#allocation38_spill]] %s2465_s10 }
   0x6   :  { %15 = vsyncpa [#allocation3], 0 }
   0x7   :  { %17 = vsyncpa [#allocation3 + $0x1], 0 }
   0x8   :  { %18 = vsyncpa [#allocation6], 0 }
   0x9   :  { %20 = vsyncpa [#allocation6 + $0x1], 0 }
   0xa   :  { %21 = vsyncpa [#allocation9], 0 }
   0xb   :  { %22 = vsyncpa [#allocation12], 0 }
   0xc   :  { %23 = vsyncpa [#allocation15], 0 }
   0xd   :  { %24 = vsyncpa [#allocation18], 0 }
   0xe   :  { %25 = vsyncpa [#allocation4], 0 }
   0xf   :  { %27 = vsyncpa [#allocation4 + $0x1], 0  ;;  %s2000_s13 = smov 0   ;;  %s2002_s14 = smov 0  }
  0x10   :  { %s2004_s15 = smov 0   ;;  %s2006_s16 = smov 0  }
  0x11 LB: > { %2497 = sst [smem:[#allocation27_spill]] %s1911_s13  ;;  %s1925_s17 = smov [#allocation8]   ;;  %s1923_s16 = sphi %s2006_s16, %s2542_s16   ;;  %s1919_s15 = sphi %s2004_s15, %s2544_s15   ;;  %s1915_s14 = sphi %s2002_s14, %s2546_s14   ;;  %s1911_s13 = sphi %s2000_s13, %s2545_s13  }
  0x12   : > { %2498 = sst [smem:[#allocation28_spill]] %s1919_s15  ;;  %s302_s18 = sshll.u32 %s1925_s17, 4  ;;  %s303_s18 = int_to_ptr.vmem [resolvable:$true] %s302_s18 }
  0x13   : > { %s2021_s19 = sadd.s32 4294967295, %s1923_s16   ;;  %p1244_p0 = scmp.ge.s32.totalorder %s1923_s16, 1 }
  0x14   : > { %2499 = sst [smem:[#allocation29_spill]] %s2021_s19  ;;  %p2466_p1 = scmp.eq.s32.totalorder %s2021_s19, 0 }
  0x15   : > { %p289_p2 = scmp.lt.s32.totalorder %s1923_s16, 3  ;;  %s1926_s21 = smov [#allocation11]  }
  0x16   : > { %s323_s22 = sshll.u32 %s1926_s21, 4  ;;  %s1927_s24 = smov [#allocation14]   ;;  %s2033_s22 = int_to_ptr.vmem [resolvable:$true] %s323_s22 }
  0x17   : > { %p2026_p3 = pnand %p1244_p0, %p289_p2  ;;  %s347_s25 = sshll.u32 %s1927_s24, 4  ;;  %s2041_s25 = int_to_ptr.vmem [resolvable:$true] %s347_s25 }
  0x18   : > { %s2502_s3 = sld [smem:[#allocation35_spill]] }
  0x19   : > { %s2500_s20 = scalar_select %p2026_p3, 1, 0 }
  0x1a   : > { %p1434_p5 = pneg %p2026_p3 }
  0x1c   : > { %p2037_p6 = pnand %p1434_p5, %p2466_p1 }
  0x1e   : > { %s2501_s23 = scalar_select %p2037_p6, 1, 0 }
  0x1f   : > { %s1551_s28 = scalar_lea.hbm %s2502_s3, 32  ;;  %p2051_p8 = pneg %p2037_p6 }
  0x20   : > { %p1552_p7 = scmp.ne.s32.totalorder %s2502_s3, %s1551_s28  ;;  %p1558_p11 = scmp.lt.u32.totalorder %s1551_s28, %s2502_s3 }
  0x21   : > { %s2503_s11 = scalar_select %p2051_p8, 1, 0 }
  0x22   : > { %p1554_p9 = pnand %p2051_p8, %p1552_p7 }
  0x24   : > { %p1555_p10 = pneg %p1554_p9 }
  0x26   : > { %p1560_p12 = pnand %p1558_p11, %p1555_p10 }
  0x28   : > { %1563 = shalt.err (!%p1560_p12)
}
  0x29   : > { %s1564_s21 = scalar_lea.vmem %s303_s18, 32  ;;  %p1572_p5 = scmp.lt.s32.totalorder %s303_s18, %s303_s18 }
  0x2a   : > { %p1565_p13 = scmp.ne.s32.totalorder %s303_s18, %s1564_s21  ;;  %p1573_p4 = scmp.lt.s32.totalorder %s1564_s21, %s1564_s21 }
  0x2c   : > { %p1567_p0 = pnand %p1565_p13, %p2051_p8  ;;  %p1574_p1 = por %p1573_p4, %p1572_p5 }
  0x2e   : > { %p1568_p2 = pneg %p1567_p0 }
  0x30   : > { %p1575_p3 = pnand %p1574_p1, %p1568_p2 }
  0x32   : > { %1578 = shalt.err (!%p1575_p3)
}
  0x33   : > { %1437 = dma.hbm_to_vmem [thread:$0]  (!%p2037_p6), %s2502_s3, 32, %s303_s18, [#allocation9]  }
  0x34   : > { %s2504_s5 = sld [smem:[#allocation36_spill]] }
  0x3a   : > { %s1579_s29 = scalar_lea.hbm %s2504_s5, 1024 }
  0x3b   : > { %p1580_p7 = scmp.ne.s32.totalorder %s2504_s5, %s1579_s29  ;;  %p1586_p1 = scmp.lt.u32.totalorder %s1579_s29, %s2504_s5 }
  0x3d   : > { %p1582_p9 = pnand %p1580_p7, %p2051_p8 }
  0x3f   : > { %p1583_p4 = pneg %p1582_p9 }
  0x41   : > { %p1588_p3 = pnand %p1586_p1, %p1583_p4 }
  0x43   : > { %1591 = shalt.err (!%p1588_p3)
}
  0x44   : > { %s1592_s18 = scalar_lea.vmem %s2033_s22, 1024  ;;  %p1600_p13 = scmp.lt.s32.totalorder %s2033_s22, %s2033_s22 }
  0x45   : > { %p1593_p10 = scmp.ne.s32.totalorder %s2033_s22, %s1592_s18  ;;  %p1601_p0 = scmp.lt.s32.totalorder %s1592_s18, %s1592_s18 }
  0x47   : > { %p1595_p11 = pnand %p1593_p10, %p2051_p8  ;;  %p1602_p2 = por %p1601_p0, %p1600_p13 }
  0x49   : > { %p1596_p12 = pneg %p1595_p11 }
  0x4b   : > { %p1603_p5 = pnand %p1602_p2, %p1596_p12 }
  0x4d   : > { %1606 = shalt.err (!%p1603_p5)
}
  0x4e   : > { %s2468_s24 = smov 64   ;;  %s2470_s26 = smov 4  }
  0x4f   : > { %1443 = dma.hbm_to_vmem [thread:$0]  (!%p2037_p6), %s2504_s5, 1024, %s2033_s22, [#allocation12], %s2468_s24, %s2468_s24, %s2470_s26  }
  0x50   : > { %s2505_s7 = sld [smem:[#allocation37_spill]] }
  0x56   : > { %s1607_s12 = scalar_lea.hbm %s2505_s7, 448 }
  0x57   : > { %p1608_p7 = scmp.ne.s32.totalorder %s2505_s7, %s1607_s12  ;;  %p1614_p1 = scmp.lt.u32.totalorder %s1607_s12, %s2505_s7 }
  0x59   : > { %p1610_p9 = pnand %p1608_p7, %p2051_p8 }
  0x5b   : > { %p1611_p4 = pneg %p1610_p9 }
  0x5d   : > { %p1616_p3 = pnand %p1614_p1, %p1611_p4 }
  0x5f   : > { %1619 = shalt.err (!%p1616_p3)
}
  0x60   : > { %s1620_s22 = scalar_lea.vmem %s2041_s25, 448  ;;  %p1628_p13 = scmp.lt.s32.totalorder %s2041_s25, %s2041_s25 }
  0x61   : > { %p1621_p10 = scmp.ne.s32.totalorder %s2041_s25, %s1620_s22  ;;  %p1629_p0 = scmp.lt.s32.totalorder %s1620_s22, %s1620_s22 }
  0x63   : > { %p1623_p11 = pnand %p1621_p10, %p2051_p8  ;;  %p1630_p2 = por %p1629_p0, %p1628_p13 }
  0x65   : > { %p1624_p12 = pneg %p1623_p11 }
  0x67   : > { %p1631_p5 = pnand %p1630_p2, %p1624_p12 }
  0x69   : > { %1634 = shalt.err (!%p1631_p5)
}
  0x6a   : > { %1449 = dma.hbm_to_vmem [thread:$0]  (!%p2037_p6), %s2505_s7, 448, %s2041_s25, [#allocation15], %s2468_s24, %s2468_s24, %s2470_s26  }
  0x6b   : > { %s1243_s28 = sadd.s32 4294967294, %s1923_s16   ;;  %s2121_s29 = sadd.s32 1, %s1923_s16  }
  0x6c   : > { %2506 = sst [smem:[#allocation30_spill]] %s2121_s29  ;;  %s40_s30 = sadd.s32 1, %s1919_s15 }
  0x6d   : > { %s37_s12 = ssub.s32 %s1923_s16, %s2121_s29  ;;  %p47_p7 = scmp.ne.s32.totalorder %s1919_s15, %s1915_s14 }
  0x6e   : > { %p38_p9 = scmp.eq.s32.totalorder %s37_s12, 0  ;;  %p48_p4 = scmp.eq.s32.totalorder %s1923_s16, 0 }
  0x6f   : > { %p53_p1 = scmp.ne.s32.totalorder %s1915_s14, %s1911_s13  ;;  %p276_p3 = scmp.eq.s32.totalorder %s2021_s19, 1 }
  0x70   : > { %s2133_s17 = scalar_select %p38_p9, %s1919_s15, %s40_s30  }
  0x71   : > { %p49_p10 = por %p48_p4, %p47_p7  ;;  %p2508_p11 = scmp.eq.s32.totalorder %s2021_s19, 0 }
  0x72   : > { %2507 = sst [smem:[#allocation31_spill]] %s2133_s17  ;;  %p2141_p13 = por %p276_p3, %p47_p7 }
  0x73   : > { %p2137_p12 = por %p2508_p11, %p53_p1  ;;  %p282_p0 = scmp.eq.s32.totalorder %s1243_s28, 1 }
  0x74   : > { %s2510_s21 = scalar_select %p2141_p13, 1, 0 }
  0x75   : > { %s2509_s25 = scalar_select %p2137_p12, 1, 0 }
  0x76   : > { %2511 = sst [smem:[#allocation32_spill]] %s2510_s21  ;;  %p1477_p2 = scmp.lt.s32.totalorder %s1923_s16, 2 }
  0x77   : > { %s2147_s18 = sand.u32 1, %s1919_s15   ;;  %p2149_p5 = por %p282_p0, %p53_p1 }
  0x78   : > { %s406_s3 = sand.u32 1, %s1923_s16   ;;  %p2154_p9 = pnand %p1477_p2, %p49_p10 }
  0x79   : > { %s2512_s22 = scalar_select %p2149_p5, 1, 0 }
  0x7a   : > { %s2514_s27 = scalar_select %p2154_p9, 1, 0 }
  0x7b   : > { %2513 = sst [smem:[#allocation33_spill]] %s2512_s22  ;;  %s1256_s30 = sshll.u32 %s2147_s18, 3 }
  0x7c   : > { %s1301_s12 = sshll.u32 %s1923_s16, 7  ;;  %s2515_s1 = sld [smem:[#allocation34_spill]] }
  0x7d   : > { %s410_s5 = scalar_lea.vmem [#allocation5], %s1256_s30  ;;  %s2167_s17 = scalar_lea.sflag [#allocation6], %s406_s3 }
  0x7e   : > { %s417_s7 = sshll.u32 %s410_s5, 4  ;;  %p2173_p4 = pneg %p2154_p9  ;;  %s2165_s7 = int_to_ptr.vmem [resolvable:$true] %s417_s7 }
  0x80   : > { %s2516_s29 = scalar_select %p2173_p4, 1, 0 }
  0x82   : > { %s2163_s28 = scalar_lea.hbm %s2515_s1, %s1301_s12  ;;  %s1640_s30 = scalar_lea.hbm %s2515_s1, 256 }
  0x83   : > { %s1635_s15 = scalar_lea.hbm %s2163_s28, 128  ;;  %p1641_p10 = scmp.lt.u32.totalorder %s2163_s28, %s2515_s1 }
  0x84   : > { %p1636_p7 = scmp.ne.s32.totalorder %s2163_s28, %s1635_s15  ;;  %p1642_p11 = scmp.lt.u32.totalorder %s1640_s30, %s1635_s15 }
  0x85   : > { %p1644_p2 = scmp.lt.u32.totalorder %s1635_s15, %s2163_s28 }
  0x86   : > { %p1638_p1 = pnand %p2173_p4, %p1636_p7  ;;  %p1643_p0 = por %p1642_p11, %p1641_p10 }
  0x88   : > { %p1639_p3 = pneg %p1638_p1  ;;  %p1645_p5 = por %p1644_p2, %p1643_p0 }
  0x8a   : > { %p1646_p13 = pnand %p1645_p5, %p1639_p3 }
  0x8c   : > { %1649 = shalt.err (!%p1646_p13)
}
  0x8d   : > { %s1650_s3 = scalar_lea.vmem %s2165_s7, 128  ;;  %s1930_s24 = smov [#allocation5]  }
  0x8e   : > { %p1651_p7 = scmp.ne.s32.totalorder %s2165_s7, %s1650_s3  ;;  %s1655_s26 = sshll.u32 %s1930_s24, 4  ;;  %s1656_s26 = int_to_ptr.vmem [resolvable:$false] %s1655_s26 }
  0x8f   : > { %s1657_s5 = scalar_lea.vmem %s1656_s26, 256  ;;  %p1658_p6 = scmp.lt.s32.totalorder %s2165_s7, %s1656_s26 }
  0x90   : > { %p1653_p1 = pnand %p1651_p7, %p2173_p4  ;;  %p1659_p8 = scmp.lt.s32.totalorder %s1657_s5, %s1650_s3 }
  0x92   : > { %p1654_p12 = pneg %p1653_p1  ;;  %p1660_p10 = por %p1659_p8, %p1658_p6 }
  0x94   : > { %p1661_p11 = pnand %p1660_p10, %p1654_p12 }
  0x96   : > { %1664 = shalt.err (!%p1661_p11)
}
  0x97   : > { %s2517_s15 = smov 4   ;;  %s2518_s30 = smov 64  }
  0x98   : > { %1462 = dma.hbm_to_vmem [thread:$0]  (!%p2154_p9), %s2163_s28, 128, %s2165_s7, %s2167_s17, %s2518_s30, %s2518_s30, %s2517_s15  }
  0x99   : > { %s1931_s12 = smov [#allocation10]   ;;  %s1932_s24 = smov [#allocation13]  }
  0x9a   : > { %s313_s1 = sshll.u32 %s1931_s12, 4  ;;  %s337_s22 = sshll.u32 %s1932_s24, 4  ;;  %s314_s1 = int_to_ptr.vmem [resolvable:$true] %s313_s1  ;;  %s338_s22 = int_to_ptr.vmem [resolvable:$true] %s337_s22 }
  0x9b   : > { %s1665_s5 = scalar_lea.hbm %s2459_s4, 32  ;;  %p2519_p8 = scmp.ne.s32.totalorder %s2503_s11, 0 }
  0x9c   : > { %p1666_p6 = scmp.ne.s32.totalorder %s2459_s4, %s1665_s5  ;;  %p1672_p5 = scmp.lt.u32.totalorder %s1665_s5, %s2459_s4 }
  0x9e   : > { %p1668_p12 = pnand %p1666_p6, %p2519_p8 }
  0xa0   : > { %p1669_p13 = pneg %p1668_p12 }
  0xa2   : > { %p1674_p3 = pnand %p1672_p5, %p1669_p13 }
  0xa4   : > { %1677 = shalt.err (!%p1674_p3)
}
  0xa5   : > { %s1678_s7 = scalar_lea.vmem %s314_s1, 32  ;;  %p1686_p1 = scmp.lt.s32.totalorder %s314_s1, %s314_s1 }
  0xa6   : > { %p1679_p0 = scmp.ne.s32.totalorder %s314_s1, %s1678_s7  ;;  %p1687_p10 = scmp.lt.s32.totalorder %s1678_s7, %s1678_s7 }
  0xa8   : > { %p1681_p2 = pnand %p1679_p0, %p2519_p8  ;;  %p1688_p11 = por %p1687_p10, %p1686_p1 }
  0xaa   : > { %p1682_p7 = pneg %p1681_p2 }
  0xac   : > { %p1689_p9 = pnand %p1688_p11, %p1682_p7 }
  0xae   : > { %1692 = shalt.err (!%p1689_p9)
}
  0xaf   : > { %p2520_p6 = scmp.ne.s32.totalorder %s2501_s23, 0  ;;  %s1693_s28 = scalar_lea.hbm %s2461_s6, 16 }
  0xb0   : > { %p1694_p12 = scmp.ne.s32.totalorder %s2461_s6, %s1693_s28  ;;  %p1700_p9 = scmp.lt.u32.totalorder %s1693_s28, %s2461_s6 }
  0xb1   : > { %1440 = dma.hbm_to_vmem [thread:$0]  (!%p2520_p6), %s2459_s4, 32, %s314_s1, [#allocation9]  }
  0xb2   : > { %p1696_p13 = pnand %p1694_p12, %p2519_p8 }
  0xb4   : > { %p1697_p5 = pneg %p1696_p13 }
  0xb6   : > { %p1702_p3 = pnand %p1700_p9, %p1697_p5 }
  0xb8   : > { %1705 = shalt.err (!%p1702_p3)
}
  0xb9   : > { %s1706_s5 = scalar_lea.vmem %s338_s22, 16  ;;  %s1713_s1 = scalar_lea.vmem %s338_s22, 32 }
  0xba   : > { %p1707_p0 = scmp.ne.s32.totalorder %s338_s22, %s1706_s5  ;;  %p1714_p1 = scmp.lt.s32.totalorder %s338_s22, %s338_s22 }
  0xbb   : > { %p1715_p10 = scmp.lt.s32.totalorder %s1713_s1, %s1706_s5 }
  0xbc   : > { %p1709_p2 = pnand %p1707_p0, %p2519_p8 }
  0xbd   : > { %p1716_p11 = por %p1715_p10, %p1714_p1 }
  0xbe   : > { %p1710_p7 = pneg %p1709_p2 }
  0xc0   : > { %p1717_p4 = pnand %p1716_p11, %p1710_p7 }
  0xc2   : > { %1720 = shalt.err (!%p1717_p4)
}
  0xc3   : > { %1446 = dma.hbm_to_vmem [thread:$0]  (!%p2520_p6), %s2461_s6, 16, %s338_s22, [#allocation12]  }
  0xc4   : > { %s1933_s13 = smov [#allocation16]   ;;  %s1934_s21 = smov [#allocation17]  }
  0xc5   : > { %s361_s19 = sshll.u32 %s1933_s13, 4  ;;  %s371_s28 = sshll.u32 %s1934_s21, 4  ;;  %s362_s19 = int_to_ptr.vmem [resolvable:$true] %s361_s19  ;;  %s372_s28 = int_to_ptr.vmem [resolvable:$true] %s371_s28 }
  0xc6   : > { %s1721_s26 = scalar_lea.hbm %s2463_s8, 32 }
  0xc7   : > { %p1722_p4 = scmp.ne.s32.totalorder %s2463_s8, %s1721_s26  ;;  %p1728_p5 = scmp.lt.u32.totalorder %s1721_s26, %s2463_s8 }
  0xc9   : > { %p1724_p12 = pnand %p1722_p4, %p2519_p8 }
  0xcb   : > { %p1725_p13 = pneg %p1724_p12 }
  0xcd   : > { %p1730_p9 = pnand %p1728_p5, %p1725_p13 }
  0xcf   : > { %1733 = shalt.err (!%p1730_p9)
}
  0xd0   : > { %s1734_s22 = scalar_lea.vmem %s362_s19, 32  ;;  %p1742_p7 = scmp.lt.s32.totalorder %s362_s19, %s362_s19 }
  0xd1   : > { %p1735_p3 = scmp.ne.s32.totalorder %s362_s19, %s1734_s22  ;;  %p1743_p1 = scmp.lt.s32.totalorder %s1734_s22, %s1734_s22 }
  0xd3   : > { %p1737_p0 = pnand %p1735_p3, %p2519_p8  ;;  %p1744_p10 = por %p1743_p1, %p1742_p7 }
  0xd5   : > { %p1738_p2 = pneg %p1737_p0 }
  0xd7   : > { %p1745_p11 = pnand %p1744_p10, %p1738_p2 }
  0xd9   : > { %1748 = shalt.err (!%p1745_p11)
}
  0xda   : > { %1452 = dma.hbm_to_vmem [thread:$0]  (!%p2520_p6), %s2463_s8, 32, %s362_s19, [#allocation15]  }
  0xdb   : > { %s1749_s24 = scalar_lea.hbm %s2464_s9, 896 }
  0xdc   : > { %p1750_p4 = scmp.ne.s32.totalorder %s2464_s9, %s1749_s24  ;;  %p1756_p5 = scmp.lt.u32.totalorder %s1749_s24, %s2464_s9 }
  0xde   : > { %p1752_p12 = pnand %p1750_p4, %p2519_p8 }
  0xe0   : > { %p1753_p13 = pneg %p1752_p12 }
  0xe2   : > { %p1758_p9 = pnand %p1756_p5, %p1753_p13 }
  0xe4   : > { %1761 = shalt.err (!%p1758_p9)
}
  0xe5   : > { %s1762_s7 = scalar_lea.vmem %s372_s28, 896  ;;  %p1770_p7 = scmp.lt.s32.totalorder %s372_s28, %s372_s28 }
  0xe6   : > { %p1763_p3 = scmp.ne.s32.totalorder %s372_s28, %s1762_s7  ;;  %p1771_p1 = scmp.lt.s32.totalorder %s1762_s7, %s1762_s7 }
  0xe8   : > { %p1765_p0 = pnand %p1763_p3, %p2519_p8  ;;  %p1772_p10 = por %p1771_p1, %p1770_p7 }
  0xea   : > { %p1766_p2 = pneg %p1765_p0 }
  0xec   : > { %p1773_p11 = pnand %p1772_p10, %p1766_p2 }
  0xee   : > { %1776 = shalt.err (!%p1773_p11)
}
  0xef   : > { %s1935_s19 = smov 128   ;;  %s1936_s22 = smov 8  }
  0xf0   : > { %1455 = dma.hbm_to_vmem [thread:$0]  (!%p2520_p6), %s2464_s9, 896, %s372_s28, [#allocation18], %s1935_s19, %s1935_s19, %s1936_s22  }
  0xf1   : > { %s1253_s11 = sshll.u32 %s2147_s18, 5  ;;  %s1300_s21 = sshll.u32 %s1923_s16, 9 }
  0xf2   : > { %s2277_s26 = scalar_lea.hbm %s2455_s0, %s1300_s21  ;;  %s389_s3 = scalar_lea.vmem [#allocation2], %s1253_s11 }
  0xf3   : > { %s396_s5 = sshll.u32 %s389_s3, 4  ;;  %s1259_s1 = sshll.u32 %s2147_s18, 1  ;;  %s2280_s5 = int_to_ptr.vmem [resolvable:$true] %s396_s5 }
  0xf4   : > { %s386_s23 = scalar_lea.sflag [#allocation3], %s2147_s18  ;;  %s1777_s7 = scalar_lea.hbm %s2277_s26, 512 }
  0xf5   : > { %p1778_p8 = scmp.ne.s32.totalorder %s2277_s26, %s1777_s7  ;;  %p2521_p6 = scmp.ne.s32.totalorder %s2516_s29, 0 }
  0xf6   : > { %s1782_s22 = scalar_lea.hbm %s2455_s0, 1024  ;;  %p1783_p13 = scmp.lt.u32.totalorder %s2277_s26, %s2455_s0 }
  0xf7   : > { %p1780_p4 = pnand %p1778_p8, %p2521_p6  ;;  %p1784_p5 = scmp.lt.u32.totalorder %s1782_s22, %s1777_s7 }
  0xf8   : > { %p1786_p3 = scmp.lt.u32.totalorder %s1777_s7, %s2277_s26 }
  0xf9   : > { %p1781_p12 = pneg %p1780_p4  ;;  %p1785_p9 = por %p1784_p5, %p1783_p13 }
  0xfb   : > { %p1787_p0 = por %p1786_p3, %p1785_p9 }
  0xfd   : > { %p1788_p2 = pnand %p1787_p0, %p1781_p12 }
  0xff   : > { %1791 = shalt.err (!%p1788_p2)
}
 0x100   : > { %s1792_s11 = scalar_lea.vmem %s2280_s5, 512  ;;  %s1937_s21 = smov [#allocation2]  }
 0x101   : > { %p1793_p7 = scmp.ne.s32.totalorder %s2280_s5, %s1792_s11  ;;  %s1797_s12 = sshll.u32 %s1937_s21, 4  ;;  %s1798_s12 = int_to_ptr.vmem [resolvable:$false] %s1797_s12 }
 0x102   : > { %s1799_s24 = scalar_lea.vmem %s1798_s12, 1024  ;;  %p1800_p11 = scmp.lt.s32.totalorder %s2280_s5, %s1798_s12 }
 0x103   : > { %p1795_p1 = pnand %p1793_p7, %p2521_p6  ;;  %p1801_p8 = scmp.lt.s32.totalorder %s1799_s24, %s1792_s11 }
 0x105   : > { %p1796_p10 = pneg %p1795_p1  ;;  %p1802_p4 = por %p1801_p8, %p1800_p11 }
 0x107   : > { %p1803_p13 = pnand %p1802_p4, %p1796_p10 }
 0x109   : > { %1806 = shalt.err (!%p1803_p13)
}
 0x10a   : > { %p2522_p12 = scmp.ne.s32.totalorder %s2514_s27, 0  ;;  %s1260_s3 = sshll.u32 %s1923_s16, 5 }
 0x10b   : > { %s431_s7 = scalar_lea.vmem [#allocation7], %s1259_s1  ;;  %s436_s10 = scalar_lea.hbm %s2457_s2, %s1260_s3 }
 0x10c   : > { %1459 = dma.hbm_to_vmem [thread:$0]  (!%p2522_p12), %s2277_s26, 512, %s2280_s5, %s386_s23, %s2518_s30, %s2518_s30, %s2517_s15  }
 0x10d   : > { %s438_s28 = sshll.u32 %s431_s7, 4  ;;  %s1807_s13 = scalar_lea.hbm %s436_s10, 32  ;;  %s439_s28 = int_to_ptr.vmem [resolvable:$true] %s438_s28 }
 0x10e   : > { %p1808_p5 = scmp.ne.s32.totalorder %s436_s10, %s1807_s13  ;;  %s1812_s12 = scalar_lea.hbm %s2457_s2, 64 }
 0x10f   : > { %p1813_p0 = scmp.lt.u32.totalorder %s436_s10, %s2457_s2  ;;  %p1814_p2 = scmp.lt.u32.totalorder %s1812_s12, %s1807_s13 }
 0x110   : > { %p1810_p9 = pnand %p1808_p5, %p2521_p6  ;;  %p1816_p1 = scmp.lt.u32.totalorder %s1807_s13, %s436_s10 }
 0x111   : > { %p1815_p7 = por %p1814_p2, %p1813_p0 }
 0x112   : > { %p1811_p3 = pneg %p1810_p9 }
 0x113   : > { %p1817_p10 = por %p1816_p1, %p1815_p7 }
 0x115   : > { %p1818_p11 = pnand %p1817_p10, %p1811_p3 }
 0x117   : > { %1821 = shalt.err (!%p1818_p11)
}
 0x118   : > { %s1822_s18 = scalar_lea.vmem %s439_s28, 32  ;;  %s1938_s30 = smov [#allocation7]  }
 0x119   : > { %p1823_p8 = scmp.ne.s32.totalorder %s439_s28, %s1822_s18  ;;  %s1827_s26 = sshll.u32 %s1938_s30, 4  ;;  %s1828_s26 = int_to_ptr.vmem [resolvable:$false] %s1827_s26 }
 0x11a   : > { %s1829_s5 = scalar_lea.vmem %s1828_s26, 64  ;;  %p1830_p5 = scmp.lt.s32.totalorder %s439_s28, %s1828_s26 }
 0x11b   : > { %p1825_p4 = pnand %p1823_p8, %p2521_p6  ;;  %p1831_p9 = scmp.lt.s32.totalorder %s1829_s5, %s1822_s18 }
 0x11d   : > { %p1826_p13 = pneg %p1825_p4  ;;  %p1832_p12 = por %p1831_p9, %p1830_p5 }
 0x11f   : > { %p1833_p0 = pnand %p1832_p12, %p1826_p13 }
 0x121   : > { %1836 = shalt.err (!%p1833_p0)
}
 0x122   : > { %p2523_p2 = scmp.ne.s32.totalorder %s2514_s27, 0  ;;  %p2524_p3 = scmp.ne.s32.totalorder %s2500_s20, 0 }
 0x123   : > { %s2331_s29 = sand.u32 (!%p2524_p3), 1, %s1915_s14   ;;  %p2525_p6 = scmp.ne.s32.totalorder (!%p2524_p3), %s2509_s25, 0 }
 0x124   : > { %1465 = dma.hbm_to_vmem [thread:$0]  (!%p2523_p2), %s436_s10, 32, %s439_s28, %s2167_s17  }
 0x125   : > { %447 = sbr.rel (%p2524_p3) target bundleno = 1134 (0x46e), region = 60  ;;  %s1262_s1 = sshll.u32 (!%p2524_p3), %s2331_s29, 5 }
 0x126   : > { %s450_s23 = scalar_lea.sflag (!%p2524_p3), [#allocation3], %s2331_s29  ;;  %s2335_s3 = scalar_lea.vmem (!%p2524_p3), [#allocation2], %s1262_s1 }
 0x12c   : > { %1882 = dma.done.wait (%p2525_p6), %s450_s23, 512  }
 0x12d   : > { %1884 = vsyncadd (%p2525_p6), %s450_s23, 4294966784  ;;  %s2526_s27 = sld [smem:[#allocation29_spill]]  ;;  %s1263_s17 = sshll.u32 %s2331_s29, 3 }
 0x12e   : > { %s2343_s28 = scalar_lea.vmem [#allocation5], %s1263_s17 }
 0x133   : > { %s458_s20 = sand.u32 1, %s2526_s27  }
 0x134   : > { %s459_s7 = scalar_lea.sflag [#allocation6], %s458_s20 }
 0x135   : > { %1886 = dma.done.wait (%p2525_p6), %s459_s7, 160  }
 0x136   : > { %1888 = vsyncadd (%p2525_p6), %s459_s7, 4294967136  ;;  %s1264_s19 = sshll.u32 %s2331_s29, 1  ;;  %p2527_p12 = scmp.eq.s32.totalorder %s2526_s27, 0 }
 0x137   : > { %s471_s22 = scalar_lea.vmem [#allocation7], %s1264_s19 }
 0x138   : > { %1890 = dma.done.wait (%p2527_p12), [#allocation9], 64   ;;  %p2528_p7 = pmov %p2527_p12 }
 0x13a   : > { %1892 = vsyncadd (%p2528_p7), [#allocation9], 4294967232  ;;  %p2529_p1 = pmov %p2528_p7 }
 0x13c   : > { %1894 = dma.done.wait (%p2529_p1), [#allocation12], 1040   ;;  %p2530_p10 = pmov %p2529_p1 }
 0x13d   : > { %p2531_p11 = pmov %p2529_p1 }
 0x13e   : > { %1896 = vsyncadd (%p2530_p10), [#allocation12], 4294966256 }
 0x13f   : > { %1898 = dma.done.wait (%p2531_p11), [#allocation15], 480   ;;  %p2532_p8 = pmov %p2529_p1 }
 0x140   : > { %p2533_p4 = pmov %p2529_p1 }
 0x141   : > { %1900 = vsyncadd (%p2532_p8), [#allocation15], 4294966816 }
 0x142   : > { %1902 = dma.done.wait (%p2533_p4), [#allocation18], 896   ;;  %p2534_p13 = pmov %p2529_p1 }
 0x143   : > { %vm716_vm0 = vcmask 1041408   ;;  %vm703_vm1 = vcmask 31744   ;;  %v2366_v0 = vld [vmem:[%s471_s22] sm:$0x3]  ;;  %v1534_v2 = vld [vmem:[#allocation14] sm:$0xff]   ;;  %v1535_v3 = vld [vmem:[#allocation14 + $0x8] sm:$0xff]   ;;  %v1007_v35 = vlaneseq }
 0x144   : > { %1904 = vsyncadd (%p2534_p13), [#allocation18], 4294966400  ;;  %1395 = vmatprep.subr.msk.bf16.mxu1 %vm716_vm0, %v2366_v0  ;;  %v718_v1 = vsel %vm716_vm0, %v2366_v0, 0  ;;  %1351 = vmatprep.mubr.msk.bf16.mxu1 %vm703_vm1, %v1534_v2  ;;  %v1536_v4 = vld [vmem:[#allocation14 + $0x10] sm:$0xff]   ;;  %v1538_v5 = vld [vmem:[#allocation11] sm:$0xff]   ;;  %v1939_v15 = vmov 0.0  }
 0x145   : > { %1350 = vmatpush3.bf16.msra.mxu1 %v718_v1  ;;  %v1539_v6 = vld [vmem:[#allocation11 + $0x8] sm:$0xff]   ;;  %v1540_v7 = vld [vmem:[#allocation11 + $0x10] sm:$0xff]   ;;  %v1537_v8 = vld [vmem:[#allocation14 + $0x18] ss:$0 sps:$4 sm:$0xff]   ;;  %1331 = vmatprep.subr.bf16.mxu0 %v1939_v15  ;;  %vm1940_vm2 = vmmov 0   ;;  %vm581_vm3 = vcmask 523264  }
 0x146   : > { %1359 = vmatprep.subr.bf16.mxu1 %v1538_v5  ;;  %v1541_v9 = vld [vmem:[#allocation11 + $0x18] sm:$0xff]   ;;  %v1542_v10 = vld [vmem:[#allocation11 + $0x20] sm:$0xff]   ;;  %v1543_v11 = vld [vmem:[#allocation11 + $0x28] sm:$0xff]   ;;  %1339 = vmatprep.mubr.msk.bf16.mxu0 %vm1940_vm2, %v1939_v15  ;;  %vm634_vm4 = vcmask 130048   ;;  %v1941_v37 = vmov 1983009808  }
 0x147   : > { %v1544_v12 = vld [vmem:[#allocation11 + $0x30] sm:$0xff]   ;;  %v1545_v13 = vld [vmem:[#allocation11 + $0x38] sm:$0xff]   ;;  %v1546_v14 = vld [vmem:[%s2335_s3] sm:$0xff]   ;;  %v1005_v38 = vunpack.c.l.s4 %v1941_v37  ;;  %v1008_v40 = vshrl.u32 %v1007_v35, 7  ;;  %s1942_s25 = smov 32   ;;  %s1943_s10 = smov 96  }
 0x148   : > { %1352 = vmatmul.mubr.msk.bf16.vlgmr.msra.gmra.mrb[0].mxu1 %vm703_vm1, %v1535_v3  ;;  %1332 = vmatpush3.bf16.msra.mxu0 %v1546_v14  ;;  %v1547_v16 = vld [vmem:[%s2335_s3 + $0x8] sm:$0xff]   ;;  %v1548_v17 = vld [vmem:[%s2335_s3 + $0x10] sm:$0xff]   ;;  %v1549_v18 = vld [vmem:[%s2335_s3 + $0x18] sm:$0xff]   ;;  %vm953_vm5 = vcmask 1043456   ;;  %vm949_vm6 = vcmask 457728   ;;  %vm1016_vm7 = vcmask 261120  }
 0x149   : > { %1355 = vmatprep.mubr.msk.bf16.mxu1 %vm703_vm1, %v1536_v4  ;;  %1360 = vmatpush3.bf16.msra.mxu1 %v1538_v5  ;;  %v548_v19 = vld [vmem:[#allocation8] sm:$0x3]  ;;  %v1550_v20 = vld [vmem:[%s2343_s28] sm:$0xff]   ;;  %v625_v21 = vld [vmem:[#allocation10] sm:$0x3]  ;;  %v1006_v42 = vunpack.c.0.s8 %v1005_v38  ;;  %s1396_s13 = smul.u32 6, %s2331_s29 }
 0x14a   : > { %1361 = vmatprep.subr.bf16.mxu1 %v1539_v6  ;;  %1333 = vmatprep.subr.bf16.mxu0 %v1939_v15  ;;  %v1287_v50 = vld [vmem:[#allocation13] ss:$0 sm:$0xff]  ;;  %v932_v59 = vld [vmem:[#allocation17 + $0x10] sm:$0xff]  ;;  %v933_v61 = vld [vmem:[#allocation17 + $0x18] sm:$0xff]  ;;  %vm1020_vm8 = vcmask 785408   ;;  %s2535_s11 = sld [smem:[#allocation32_spill]] }
 0x14b   : > { %v2393_v43 = vsub.s32 %v1006_v42, %v1008_v40  ;;  %v930_v63 = vld [vmem:[#allocation17] sm:$0xff]  ;;  %s1397_s21 = smul.u32 96, %s2526_s27  ;;  %s545_s12 = scalar_lea.vmem [#allocation19], %s1396_s13 }
 0x14c   : > { %1334 = vmatpush3.bf16.msra.mxu0 %v1547_v16  ;;  %s1063_s24 = sshll.u32 %s545_s12, 4  ;;  %s2536_s30 = sld [smem:[#allocation38_spill]]  ;;  %s2413_s24 = int_to_ptr.vmem [resolvable:$true] %s1063_s24 }
 0x14d   : > { %1362 = vmatpush3.bf16.msra.mxu1 %v1539_v6  ;;  %1335 = vmatprep.subr.bf16.mxu0 %v1939_v15  ;;  %v1010_v48 = vrot.slane %v2366_v0, %v2393_v43  ;;  %v931_v0 = vld [vmem:[#allocation17 + $0x8] sm:$0xff]  ;;  %s1049_s5 = scalar_lea.sflag [#allocation4], %s2331_s29  ;;  %s1837_s1 = scalar_lea.vmem %s2413_s24, 96 }
 0x14e   : > { %1363 = vmatprep.subr.bf16.mxu1 %v1540_v7  ;;  %p1838_p5 = scmp.ne.s32.totalorder %s2413_s24, %s1837_s1  ;;  %s1944_s23 = smov [#allocation19]  }
 0x14f   : > { %s1841_s3 = sshll.u32 %s1944_s23, 4  ;;  %s1842_s3 = int_to_ptr.vmem [resolvable:$false] %s1841_s3 }
 0x150   : > { %1356 = vmatmul.mubr.msk.bf16.gmra.mrb[4].mxu1 %vm703_vm1, %v1537_v8  ;;  %1336 = vmatpush3.bf16.msra.mxu0 %v1548_v17  ;;  %v936_v17 = vld [vmem:[#allocation17 + $0x30] sm:$0xff]  ;;  %p2537_p9 = scmp.ne.s32.totalorder %s2535_s11, 0  ;;  %s1843_s27 = scalar_lea.vmem %s1842_s3, 192 }
 0x151   : > { %1364 = vmatpush3.bf16.msra.mxu1 %v1540_v7  ;;  %1337 = vmatprep.subr.bf16.mxu0 %v1939_v15  ;;  %p1844_p3 = scmp.lt.s32.totalorder %s2413_s24, %s1842_s3  ;;  %p1845_p6 = scmp.lt.s32.totalorder %s1843_s27, %s1837_s1 }
 0x152   : > { %1365 = vmatprep.subr.bf16.mxu1 %v1541_v9  ;;  %s2411_s26 = scalar_lea.hbm %s2536_s30, %s1397_s21  ;;  %p1839_p0 = pnand %p1838_p5, %p2537_p9 }
 0x153   : > { %p1846_p12 = por %p1845_p6, %p1844_p3 }
 0x154   : > { %1338 = vmatpush3.bf16.msra.mxu0 %v1549_v18  ;;  %p1840_p2 = pneg %p1839_p0 }
 0x155   : > { %1366 = vmatpush3.bf16.msra.mxu1 %v1541_v9  ;;  %1343 = vmatprep.subr.bf16.mxu0 %v1939_v15 }
 0x156   : > { %1367 = vmatprep.subr.bf16.mxu1 %v1542_v10  ;;  %p1847_p7 = pnand %p1846_p12, %p1840_p2 }
 0x157   : > { %1340 = vmatmul.mubr.msk.bf16.vlgmr.msra.gmra.mrb[0].mxu0 %vm581_vm3, %v548_v19 }
 0x158   : > { %1344 = vmatpush3.bf16.msra.mxu0 %v1550_v20  ;;  %1345 = vmatprep.mubr.msk.bf16.mxu0 %vm1940_vm2, %v1939_v15  ;;  %v934_v20 = vld [vmem:[#allocation17 + $0x20] sm:$0xff] }
 0x159   : > { %1368 = vmatpush3.bf16.msra.mxu1 %v1542_v10  ;;  %1383 = vmatprep.subr.bf16.mxu0 %v1939_v15 }
 0x15a   : > { %1369 = vmatprep.subr.bf16.mxu1 %v1543_v11 }
 0x15d   : > { %1370 = vmatpush3.bf16.msra.mxu1 %v1543_v11 }
 0x15e   : > { %1371 = vmatprep.subr.bf16.mxu1 %v1544_v12 }
 0x15f   : > { %1346 = vmatmul.mubr.msk.bf16.vlgmr.msra.gmra.mrb[4].mxu0 %vm634_vm4, %v625_v21  ;;  %v935_v21 = vld [vmem:[#allocation17 + $0x28] sm:$0xff] }
 0x160   : > { %1391 = vmatprep.mubr.msk.bf16.mxu0 %vm1940_vm2, %v1939_v15 }
 0x161   : > { %1372 = vmatpush3.bf16.msra.mxu1 %v1544_v12 }
 0x162   : > { %1373 = vmatprep.subr.bf16.mxu1 %v1545_v13 }
 0x165   : > { %1374 = vmatpush3.bf16.msra.mxu1 %v1545_v13 }
 0x21b   : > { %v1353_v22 = vpop.f32.mrb[0].mxu1 }
 0x21c   : > { %v754_v23 = vpop.f32.mrb[1].mxu1 }
 0x21d   : > { %v1354_v24 = vpop.f32.mrb[2].mxu1 }
 0x21e   : > { %v785_v25 = vpack.c.bf16 %v1354_v24, %v1353_v22  ;;  %v757_v26 = vpop.f32.mrb[3].mxu1 }
 0x21f   : > { %v784_v27 = vpack.c.bf16 %v757_v26, %v754_v23 }
 0x221   : > { %1375 = vmatprep.mubr.bf16.mxu1 %v784_v27 }
 0x222   : > { %1376 = vmatmul.mubr.bf16.vlgmr.msra.gmra.mrb[8].mxu1 %v785_v25 }
 0x223   : > { %v1357_v28 = vpop.f32.mrb[4].mxu1 }
 0x224   : > { %v770_v29 = vpop.f32.mrb[5].mxu1  ;;  %v787_v33 = vpack.c.bf16 %v1357_v28, %v1357_v28 }
 0x225   : > { %v1358_v30 = vpop.f32.mrb[6].mxu1 }
 0x226   : > { %v773_v31 = vpop.f32.mrb[7].mxu1 }
 0x227   : > { %v786_v32 = vpack.c.bf16 %v773_v31, %v770_v29  ;;  %v944_v29 = vld [vmem:[#allocation16] sm:$0x3] }
 0x229   : > { %1379 = vmatprep.mubr.bf16.mxu1 %v786_v32 }
 0x22a   : > { %1380 = vmatmul.mubr.bf16.gmra.mrb[12].mxu1 %v787_v33  ;;  %v2391_v34 = vpop.f32.mrb[0].mxu0 }
 0x22b   : > { %v1341_v36 = vpop.f32.mrb[1].mxu0  ;;  %v997_v37 = vpack.c.bf16 %v2391_v34, %v2391_v34 }
 0x22c   : > { %v622_v39 = vpop.f32.mrb[2].mxu0 }
 0x22d   : > { %v1342_v41 = vpop.f32.mrb[3].mxu0 }
 0x232   : > { %v672_v44 = vpop.f32.mrb[4].mxu0 }
 0x233   : > { %v998_v45 = vpack.c.bf16 %v672_v44, %v672_v44  ;;  %v1347_v46 = vpop.f32.mrb[5].mxu0 }
 0x234   : > { %v675_v47 = vpop.f32.mrb[6].mxu0 }
 0x235   : > { %1001 = vrot.lane.b32.xlu0 %v998_v45, %s1942_s25  ;;  %v1348_v49 = vpop.f32.mrb[7].mxu0 }
 0x239   : > { %1011 = vrot.lane.b32.xlu0 %v1010_v48, %s1943_s10 }
 0x2a7   : > { %v1002_v36 = vpop.permute.xlu0 %1001 }
 0x2ab   : > { %v1012_v38 = vpop.permute.xlu0 %1011 }
 0x2f5   : > { %v1377_v51 = vpop.f32.mrb[8].mxu1 }
 0x2f6   : > { %v902_v52 = vadd.f32 %v1377_v51, %v1287_v50  ;;  %v893_v53 = vpop.f32.mrb[9].mxu1 }
 0x2f7   : > { %v894_v54 = vadd.f32 %v1287_v50, %v893_v53  ;;  %v1378_v55 = vpop.f32.mrb[10].mxu1 }
 0x2f8   : > { %v925_v56 = vmax.f32 %v902_v52, 0.0  ;;  %v905_v57 = vadd.f32 %v1378_v55, %v1287_v50  ;;  %v896_v58 = vpop.f32.mrb[11].mxu1 }
 0x2f9   : > { %v923_v60 = vmax.f32 %v894_v54, 0.0  ;;  %v897_v62 = vadd.f32 %v1287_v50, %v896_v58 }
 0x2fa   : > { %v926_v1 = vmax.f32 %v905_v57, 0.0  ;;  %v939_v3 = vmul.f32 %v932_v59, %v925_v56 }
 0x2fb   : > { %v924_v2 = vmax.f32 %v897_v62, 0.0  ;;  %v937_v5 = vmul.f32 %v930_v63, %v923_v60 }
 0x2fc   : > { %v940_v4 = vmul.f32 %v933_v61, %v926_v1 }
 0x2fd   : > { %v938_v6 = vmul.f32 %v931_v0, %v924_v2  ;;  %v1381_v7 = vpop.f32.mrb[12].mxu1 }
 0x2fe   : > { %v946_v8 = vpack.c.bf16 %v940_v4, %v939_v3  ;;  %v918_v9 = vadd.f32 %v1381_v7, %v1287_v50  ;;  %v909_v10 = vpop.f32.mrb[13].mxu1 }
 0x2ff   : > { %v945_v11 = vpack.c.bf16 %v938_v6, %v937_v5  ;;  %v910_v12 = vadd.f32 %v1287_v50, %v909_v10  ;;  %v1382_v13 = vpop.f32.mrb[14].mxu1 }
 0x300   : > { %v929_v14 = vmax.f32 %v918_v9, 0.0  ;;  %v912_v16 = vpop.f32.mrb[15].mxu1 }
 0x301   : > { %v927_v18 = vmax.f32 %v910_v12, 0.0  ;;  %v913_v19 = vadd.f32 %v1287_v50, %v912_v16  ;;  %1384 = vmatpush3.bf16.msra.mxu0 %v945_v11 }
 0x302   : > { %1385 = vmatprep.subr.bf16.mxu0 %v1939_v15  ;;  %v943_v23 = vmul.f32 %v936_v17, %v929_v14 }
 0x303   : > { %v928_v22 = vmax.f32 %v913_v19, 0.0  ;;  %v941_v24 = vmul.f32 %v934_v20, %v927_v18 }
 0x304   : > { %v948_v27 = vpack.c.bf16 %v943_v23, %v943_v23 }
 0x305   : > { %v942_v25 = vmul.f32 %v935_v21, %v928_v22  ;;  %1386 = vmatpush3.bf16.msra.mxu0 %v946_v8 }
 0x306   : > { %1387 = vmatprep.subr.bf16.mxu0 %v1939_v15  ;;  %v955_v28 = vsel %vm953_vm5, %v948_v27, 0 }
 0x307   : > { %v947_v26 = vpack.c.bf16 %v942_v25, %v941_v24 }
 0x309   : > { %1388 = vmatpush3.bf16.msra.mxu0 %v947_v26 }
 0x30a   : > { %1389 = vmatprep.subr.bf16.mxu0 %v1939_v15  ;;  %v1019_v15 = vsel %vm1016_vm7, %v997_v37, %v1002_v36 }
 0x30b   : > { %v1022_v40 = vsel %vm1020_vm8, %v1019_v15, %v1012_v38 }
 0x30d   : > { %1390 = vmatpush3.bf16.msra.mxu0 %v955_v28 }
 0x310   : > { %1392 = vmatmul.mubr.msk.bf16.vlgmr.msra.gmra.mrb[8].mxu0 %vm949_vm6, %v944_v29 }
 0x3e3   : > { %v991_v30 = vpop.f32.mrb[8].mxu0 }
 0x3e4   : > { %v999_v31 = vpack.c.bf16 %v991_v30, %v991_v30  ;;  %v1393_v32 = vpop.f32.mrb[9].mxu0 }
 0x3e5   : > { %v994_v33 = vpop.f32.mrb[10].mxu0 }
 0x3e6   : > { %1014 = vrot.lane.b32.xlu1 %v999_v31, %s1943_s10  ;;  %v1394_v35 = vpop.f32.mrb[11].mxu0 }
 0x458   : > { %v1015_v39 = vpop.permute.xlu1 %1014 }
 0x459   : > { %v1024_v41 = vsel %vm1020_vm8, %v1012_v38, %v1015_v39  ;;  %v1026_v42 = vsel %vm1020_vm8, %v1015_v39, 0 }
 0x45a   : > { %v1030_v44 = vcombine.low %v1022_v40, %v1024_v41  ;;  %v1044_v46 = vrot.slane %v1026_v42, %v2393_v43 }
 0x45c   : > { %v1037_v45 = vrot.slane %v1030_v44, %v2393_v43 }
 0x45e   : > { %v1045_v34 = vcombine.low %v1037_v45, %v1044_v46 }
 0x460   : > { %1047 = vst [vmem:[%s545_s12] sm:$0x3f] %v1045_v34 }
 0x461   : > { %1850 = shalt.err (!%p1847_p7)
}
 0x462   : > { %s1851_s29 = scalar_lea.hbm %s2411_s26, 96  ;;  %s1855_s7 = scalar_lea.hbm %s2536_s30, 192 }
 0x463   : > { %p1852_p1 = scmp.ne.s32.totalorder %s2411_s26, %s1851_s29  ;;  %p1856_p8 = scmp.lt.u32.totalorder %s2411_s26, %s2536_s30 }
 0x464   : > { %p1857_p4 = scmp.lt.u32.totalorder %s1855_s7, %s1851_s29  ;;  %p1859_p5 = scmp.lt.u32.totalorder %s1851_s29, %s2411_s26 }
 0x465   : > { %p1853_p10 = pnand %p1852_p1, %p2537_p9 }
 0x466   : > { %p1858_p13 = por %p1857_p4, %p1856_p8 }
 0x467   : > { %p1854_p11 = pneg %p1853_p10 }
 0x468   : > { %p1860_p0 = por %p1859_p5, %p1858_p13 }
 0x46a   : > { %p1861_p2 = pnand %p1860_p0, %p1854_p11 }
 0x46c   : > { %1864 = shalt.err (!%p1861_p2)
}
 0x46d   : > { %1432 = dma.vmem_to_hbm [thread:$0]  (%p2537_p9), %s2413_s24, 96, %s2411_s26, %s1049_s5  }
 0x46e PF: > { %s2538_s22 = sld [smem:[#allocation27_spill]]  ;;  %s2539_s25 = sld [smem:[#allocation33_spill]] }
 0x46f   : > { %p2541_p6 = scmp.ge.s32.totalorder %s1923_s16, 2 }
 0x474   : > { %s1075_s10 = sand.u32 1, %s2538_s22   ;;  %p2540_p3 = scmp.ne.s32.totalorder %s2539_s25, 0 }
 0x475   : > { %s1076_s13 = scalar_lea.sflag [#allocation4], %s1075_s10 }
 0x476   : > { %p1467_p12 = pnand %p2541_p6, %p2540_p3 }
 0x478   : > { %1906 = dma.done.wait (!%p1467_p12), %s1076_s13, 96  }
 0x479   : > { %1908 = vsyncadd (!%p1467_p12), %s1076_s13, 4294967200  ;;  %s2542_s16 = sld [smem:[#allocation30_spill]]  ;;  %s2543_s21 = sld [smem:[#allocation28_spill]] }
 0x47a   : > { %s2544_s15 = sld [smem:[#allocation31_spill]]  ;;  %s2545_s13 = smov %s1915_s14 }
 0x47f   : > { %p30_p7 = scmp.ge.s32.totalorder %s2542_s16, 4   ;;  %s2546_s14 = smov %s2543_s21 }
 0x481   :  { %32 = sbr.rel (!%p30_p7) target bundleno = 17 (0x11), region = 157 }
 0x488   :  { %1081 = vsyncpa [#allocation3], 1 }
 0x489   :  { %1083 = vsyncpa [#allocation3 + $0x1], 1 }
 0x48a   :  { %1084 = vsyncpa [#allocation6], 1 }
 0x48b   :  { %1086 = vsyncpa [#allocation6 + $0x1], 1 }
 0x48c   :  { %1087 = vsyncpa [#allocation9], 1 }
 0x48d   :  { %1088 = vsyncpa [#allocation12], 1 }
 0x48e   :  { %1089 = vsyncpa [#allocation15], 1 }
 0x48f   :  { %1090 = vsyncpa [#allocation18], 1 }
 0x490   :  { %1091 = vsyncpa [#allocation4], 1 }
 0x491   :  { %1093 = vsyncpa [#allocation4 + $0x1], 1 }

// kernel: icnet_forward.10
= control target key start
LH: loop header
LB: loop body
LE: loop exit
PB: predicated region body
PF: predicated region fallthrough
CT: control target
= control target key end

     0   :  { %8 = vsyncpa [#allocation4], 0  ;;  %s1556_s0 = inlined_call_operand.hbm [shape: bf16[8,3456], index: 0, kind: input, shape index: {}]   ;;  %s1557_s1 = inlined_call_operand.hbm [shape: bf16[3456,256], index: 1, kind: input, shape index: {}]   ;;  %s1558_s2 = inlined_call_operand.hbm [shape: f32[1,256], index: 2, kind: input, shape index: {}]   ;;  %s1559_s3 = inlined_call_operand.hbm [shape: bf16[8,256], index: 3, kind: output, shape index: {}]  }
   0x1   :  { %10 = vsyncpa [#allocation4 + $0x1], 0 }
   0x2   :  { %11 = vsyncpa [#allocation7], 0 }
   0x3   :  { %13 = vsyncpa [#allocation7 + $0x1], 0 }
   0x4   :  { %14 = vsyncpa [#allocation5], 0  ;;  %s1260_s12 = smov 0   ;;  %s1262_s13 = smov 0  }
   0x5   :  { %s1264_s14 = smov 0   ;;  %s1266_s15 = smov 0  }
   0x6   :  { %s1268_s16 = smov 0   ;;  %s1270_s17 = smov 0  }
   0x7 LB: > { %s1289_s18 = sadd.s32 4294967295, %s1230_s17   ;;  %s48_s19 = sadd.s32 1, %s1218_s14  ;;  %s1230_s17 = sphi %s1270_s17, %s20_s17   ;;  %s1226_s16 = sphi %s1268_s16, %s1580_s16   ;;  %s1222_s15 = sphi %s1266_s15, %s1579_s15   ;;  %s1218_s14 = sphi %s1264_s14, %s1578_s14   ;;  %s1214_s13 = sphi %s1262_s13, %s1577_s13   ;;  %s1210_s12 = sphi %s1260_s12, %s1576_s12  }
   0x8   : > { %p55_p0 = scmp.ne.s32.totalorder %s1218_s14, %s1214_s13  ;;  %p61_p1 = scmp.ne.s32.totalorder %s1214_s13, %s1210_s12 }
   0x9   : > { %p1560_p2 = scmp.eq.s32.totalorder %s1289_s18, 0  ;;  %p822_p3 = scmp.ge.s32.totalorder %s1230_s17, 1 }
   0xa   : > { %p154_p4 = scmp.lt.s32.totalorder %s1230_s17, 10  ;;  %s1232_s22 = smov [#allocation8]  }
   0xb   : > { %p1300_p5 = por %p1560_p2, %p61_p1  ;;  %s170_s23 = sshll.u32 %s1232_s22, 4  ;;  %s171_s23 = int_to_ptr.vmem [resolvable:$true] %s170_s23 }
   0xc   : > { %p1304_p6 = pnand %p822_p3, %p154_p4  ;;  %p56_p8 = scmp.eq.s32.totalorder %s1230_s17, 0 }
   0xd   : > { %s1563_s20 = scalar_select %p1300_p5, 1, 0 }
   0xe   : > { %s1564_s21 = scalar_select %p1304_p6, 1, 0 }
   0xf   : > { %p909_p7 = pneg %p1304_p6  ;;  %s32_s25 = sadd.s32 1, %s1226_s16 }
  0x10   : > { %p1318_p10 = scmp.ge.s32.totalorder %s32_s25, 9  ;;  %p1325_p11 = por %p56_p8, %p55_p0 }
  0x11   : > { %p1313_p9 = pnand %p909_p7, %p1560_p2  ;;  %s1054_s30 = scalar_lea.hbm %s1558_s2, 32 }
  0x12   : > { %s1566_s26 = scalar_select %p1318_p10, 1, 0 }
  0x13   : > { %s1567_s27 = scalar_select %p1325_p11, 1, 0 }
  0x14   : > { %p1055_p13 = scmp.ne.s32.totalorder %s1558_s2, %s1054_s30  ;;  %p1056_p1 = pneg %p1313_p9 }
  0x15   : > { %p1061_p0 = scmp.lt.u32.totalorder %s1054_s30, %s1558_s2 }
  0x16   : > { %p1057_p3 = pnand %p1056_p1, %p1055_p13 }
  0x18   : > { %p1058_p4 = pneg %p1057_p3 }
  0x1a   : > { %p1063_p7 = pnand %p1061_p0, %p1058_p4 }
  0x1c   : > { %1066 = shalt.err (!%p1063_p7)
}
  0x1d   : > { %s1067_s8 = scalar_lea.vmem %s171_s23, 32  ;;  %p1075_p5 = scmp.lt.s32.totalorder %s171_s23, %s171_s23 }
  0x1e   : > { %p1068_p8 = scmp.ne.s32.totalorder %s171_s23, %s1067_s8  ;;  %p1076_p6 = scmp.lt.s32.totalorder %s1067_s8, %s1067_s8 }
  0x20   : > { %p1070_p2 = pnand %p1068_p8, %p1056_p1  ;;  %p1077_p11 = por %p1076_p6, %p1075_p5 }
  0x22   : > { %p1071_p12 = pneg %p1070_p2 }
  0x24   : > { %p1078_p10 = pnand %p1077_p11, %p1071_p12 }
  0x26   : > { %1081 = shalt.err (!%p1078_p10)
}
  0x27   : > { %912 = dma.hbm_to_vmem [thread:$0]  (!%p1313_p9), %s1558_s2, 32, %s171_s23, [#allocation7]  }
  0x28   : > { %p1568_p2 = scmp.ne.s32.totalorder %s1566_s26, 0  ;;  %s1351_s11 = sand.u32 1, %s1218_s14  }
  0x29   : > { %s888_s12 = smul.u32 192, %s1226_s16  ;;  %p1569_p6 = scmp.ne.s32.totalorder %s1567_s27, 0 }
  0x2a   : > { %s1582_s25 = smov (%p1568_p2, %s32_s25), 0  ;;  %s893_s24 = smul.u32 12, %s1351_s11 }
  0x2b   : > { %s44_s22 = ssub.s32 %s1226_s16, %s1582_s25  ;;  %s1360_s30 = scalar_lea.hbm %s1556_s0, %s888_s12 }
  0x2c   : > { %p46_p5 = scmp.eq.s32.totalorder %s44_s22, 0  ;;  %p1570_p9 = scmp.lt.s32.totalorder %s1230_s17, 9 }
  0x2d   : > { %s185_s4 = scalar_lea.vmem [#allocation3], %s893_s24  ;;  %s894_s6 = smul.u32 384, %s1351_s11 }
  0x2e   : > { %p1366_p10 = pnand %p1570_p9, %p1569_p6  ;;  %s195_s5 = sshll.u32 %s185_s4, 4  ;;  %s1376_s5 = int_to_ptr.vmem [resolvable:$true] %s195_s5 }
  0x2f   : > { %s1373_s26 = scalar_select %p46_p5, %s1218_s14, %s48_s19  }
  0x30   : > { %s892_s27 = smul.u32 6144, %s1226_s16  ;;  %s182_s7 = scalar_lea.sflag [#allocation4], %s1351_s11 }
  0x31   : > { %s1082_s8 = scalar_lea.hbm %s1360_s30, 192  ;;  %p1084_p12 = pneg %p1366_p10 }
  0x32   : > { %p1083_p11 = scmp.ne.s32.totalorder %s1360_s30, %s1082_s8  ;;  %s1087_s19 = scalar_lea.hbm %s1556_s0, 1728 }
  0x33   : > { %p1088_p3 = scmp.lt.u32.totalorder %s1360_s30, %s1556_s0  ;;  %p1089_p4 = scmp.lt.u32.totalorder %s1087_s19, %s1082_s8 }
  0x34   : > { %p1085_p13 = pnand %p1084_p12, %p1083_p11  ;;  %p1091_p7 = scmp.lt.u32.totalorder %s1082_s8, %s1360_s30 }
  0x35   : > { %p1090_p0 = por %p1089_p4, %p1088_p3 }
  0x36   : > { %p1086_p1 = pneg %p1085_p13 }
  0x37   : > { %p1092_p8 = por %p1091_p7, %p1090_p0 }
  0x39   : > { %p1093_p2 = pnand %p1092_p8, %p1086_p1 }
  0x3b   : > { %1096 = shalt.err (!%p1093_p2)
}
  0x3c   : > { %s1097_s24 = scalar_lea.vmem %s1376_s5, 192  ;;  %s1233_s28 = smov [#allocation3]  }
  0x3d   : > { %p1098_p5 = scmp.ne.s32.totalorder %s1376_s5, %s1097_s24  ;;  %s1102_s29 = sshll.u32 %s1233_s28, 4  ;;  %s1103_s29 = int_to_ptr.vmem [resolvable:$false] %s1102_s29 }
  0x3e   : > { %s1104_s4 = scalar_lea.vmem %s1103_s29, 384  ;;  %p1105_p11 = scmp.lt.s32.totalorder %s1376_s5, %s1103_s29 }
  0x3f   : > { %p1100_p6 = pnand %p1098_p5, %p1084_p12  ;;  %p1106_p13 = scmp.lt.s32.totalorder %s1104_s4, %s1097_s24 }
  0x41   : > { %p1101_p9 = pneg %p1100_p6  ;;  %p1107_p3 = por %p1106_p13, %p1105_p11 }
  0x43   : > { %p1108_p4 = pnand %p1107_p3, %p1101_p9 }
  0x45   : > { %1111 = shalt.err (!%p1108_p4)
}
  0x46   : > { %916 = dma.hbm_to_vmem [thread:$0]  (!%p1366_p10), %s1360_s30, 192, %s1376_s5, %s182_s7  }
  0x47   : > { %s202_s8 = sand.u32 1, %s1230_s17   ;;  %s206_s9 = scalar_lea.vmem [#allocation6], %s894_s6 }
  0x48   : > { %s216_s10 = sshll.u32 %s206_s9, 4  ;;  %s1415_s22 = scalar_lea.hbm %s1557_s1, %s892_s27  ;;  %s1408_s10 = int_to_ptr.vmem [resolvable:$true] %s216_s10 }
  0x49   : > { %s1417_s24 = scalar_lea.sflag [#allocation7], %s202_s8  ;;  %s1112_s28 = scalar_lea.hbm %s1415_s22, 6144 }
  0x4a   : > { %p1113_p1 = scmp.ne.s32.totalorder %s1415_s22, %s1112_s28  ;;  %s1117_s5 = scalar_lea.hbm %s1557_s1, 55296 }
  0x4b   : > { %p1118_p8 = scmp.lt.u32.totalorder %s1415_s22, %s1557_s1  ;;  %p1119_p2 = scmp.lt.u32.totalorder %s1117_s5, %s1112_s28 }
  0x4c   : > { %p1115_p0 = pnand %p1113_p1, %p1084_p12  ;;  %p1121_p6 = scmp.lt.u32.totalorder %s1112_s28, %s1415_s22 }
  0x4d   : > { %p1120_p5 = por %p1119_p2, %p1118_p8 }
  0x4e   : > { %p1116_p7 = pneg %p1115_p0 }
  0x4f   : > { %p1122_p9 = por %p1121_p6, %p1120_p5 }
  0x51   : > { %p1123_p11 = pnand %p1122_p9, %p1116_p7 }
  0x53   : > { %1126 = shalt.err (!%p1123_p11)
}
  0x54   : > { %s1127_s27 = scalar_lea.vmem %s1408_s10, 6144  ;;  %s1234_s29 = smov [#allocation6]  }
  0x55   : > { %p1128_p13 = scmp.ne.s32.totalorder %s1408_s10, %s1127_s27  ;;  %s1132_s4 = sshll.u32 %s1234_s29, 4  ;;  %s1133_s4 = int_to_ptr.vmem [resolvable:$false] %s1132_s4 }
  0x56   : > { %s1134_s8 = scalar_lea.vmem %s1133_s4, 12288  ;;  %p1135_p1 = scmp.lt.s32.totalorder %s1408_s10, %s1133_s4 }
  0x57   : > { %p1130_p3 = pnand %p1128_p13, %p1084_p12  ;;  %p1136_p0 = scmp.lt.s32.totalorder %s1134_s8, %s1127_s27 }
  0x59   : > { %p1131_p4 = pneg %p1130_p3  ;;  %p1137_p8 = por %p1136_p0, %p1135_p1 }
  0x5b   : > { %p1138_p2 = pnand %p1137_p8, %p1131_p4 }
  0x5d   : > { %1141 = shalt.err (!%p1138_p2)
}
  0x5e   : > { %s1235_s9 = smov 128   ;;  %s1236_s19 = smov 8  }
  0x5f   : > { %919 = dma.hbm_to_vmem [thread:$0]  (!%p1366_p10), %s1415_s22, 6144, %s1408_s10, %s1417_s24, %s1235_s9, %s1235_s9, %s1236_s19  }
  0x60   : > { %p1572_p12 = scmp.ne.s32.totalorder %s1564_s21, 0 }
  0x61   : > { %s230_s12 = sand.u32 (!%p1572_p12), 1, %s1214_s13   ;;  %p1573_p7 = scmp.ne.s32.totalorder (!%p1572_p12), %s1563_s20, 0 }
  0x62   : > { %228 = sbr.rel (%p1572_p12) target bundleno = 444 (0x1bc), region = 32  ;;  %s231_s11 = scalar_lea.sflag (!%p1572_p12), [#allocation4], %s230_s12 }
  0x63   : > { %s895_s28 = smul.u32 (!%p1572_p12), 12, %s230_s12 }
  0x65   : > { %s1446_s30 = scalar_lea.vmem (!%p1572_p12), [#allocation3], %s895_s28 }
  0x69   : > { %1193 = dma.done.wait (%p1573_p7), %s231_s11, 192  }
  0x6a   : > { %1195 = vsyncadd (%p1573_p7), %s231_s11, 4294967104  ;;  %s239_s5 = sand.u32 1, %s1289_s18   ;;  %s896_s23 = smul.u32 384, %s230_s12 }
  0x6b   : > { %s240_s10 = scalar_lea.sflag [#allocation7], %s239_s5 }
  0x6c   : > { %s1453_s22 = scalar_lea.vmem [#allocation6], %s896_s23 }
  0x6d   : > { %1197 = dma.done.wait (%p1573_p7), %s240_s10, 6144  }
  0x6e   : > { %1199 = vsyncadd (%p1573_p7), %s240_s10, 4294961152  ;;  %p1574_p10 = scmp.eq.s32.totalorder %s1289_s18, 0 }
  0x70   : > { %1201 = dma.done.wait (%p1574_p10), [#allocation7], 32   ;;  %p1575_p5 = pmov %p1574_p10 }
  0x71   : > { %p830_p6 = scmp.ne.s32.totalorder %s1222_s15, 0 }
  0x72   : > { %1203 = vsyncadd (%p1575_p5), [#allocation7], 4294967264  ;;  %v1237_v0 = vmov (!%p830_p6), 0.0  }
  0x73   : > { %279 = sbr.rel (%p830_p6) target bundleno = 122 (0x7a), region = 48  ;;  %280 = vst [vmem:[#allocation2] sm:$0xff] (!%p830_p6), %v1237_v0  ;;  %281 = vst [vmem:[#allocation2 + $0x8] sm:$0xff] (!%p830_p6), %v1237_v0 }
  0x7a PF: > { %v979_v1 = vld [vmem:[%s1453_s22 + $0x4] ss:$8 sps:$4 sm:$0xff]   ;;  %v981_v2 = vld [vmem:[%s1453_s22] ss:$8 sps:$4 sm:$0xff]   ;;  %v1238_v3 = vmov 0   ;;  %v282_v58 = vld [vmem:[#allocation2] sm:$0xff] }
  0x7b   : > { %658 = vmatprep.mubr.bf16.mxu1 %v1238_v3  ;;  %585 = vmatprep.subr.bf16.mxu0 %v979_v1  ;;  %v982_v4 = vld [vmem:[%s1453_s22 + $0x14] ss:$8 sps:$4 sm:$0xff]   ;;  %v984_v5 = vld [vmem:[%s1453_s22 + $0x10] ss:$8 sps:$4 sm:$0xff]   ;;  %v985_v6 = vld [vmem:[%s1453_s22 + $0x24] ss:$8 sps:$4 sm:$0xff]  }
  0x7c   : > { %586 = vmatpush1.bf16.msra.mxu0 %v981_v2  ;;  %v987_v7 = vld [vmem:[%s1453_s22 + $0x20] ss:$8 sps:$4 sm:$0xff]   ;;  %v988_v8 = vld [vmem:[%s1453_s22 + $0x34] ss:$8 sps:$4 sm:$0xff]   ;;  %v990_v9 = vld [vmem:[%s1453_s22 + $0x30] ss:$8 sps:$4 sm:$0xff]  }
  0x7d   : > { %587 = vmatprep.subr.bf16.mxu0 %v982_v4  ;;  %v1003_v10 = vld [vmem:[%s1453_s22 + $0x104] ss:$8 sps:$4 sm:$0xff]   ;;  %v1005_v11 = vld [vmem:[%s1453_s22 + $0x100] ss:$8 sps:$4 sm:$0xff]   ;;  %v1009_v13 = vld [vmem:[%s1453_s22 + $0x114] ss:$8 sps:$4 sm:$0xff]  }
  0x7e   : > { %v991_v12 = vld [vmem:[%s1453_s22 + $0x44] ss:$8 sps:$4 sm:$0xff]   ;;  %626 = vmatprep.subr.bf16.mxu1 %v1003_v10  ;;  %v1011_v14 = vld [vmem:[%s1453_s22 + $0x110] ss:$8 sps:$4 sm:$0xff]   ;;  %v993_v15 = vld [vmem:[%s1453_s22 + $0x40] ss:$8 sps:$4 sm:$0xff]  }
  0x7f   : > { %627 = vmatpush1.bf16.msra.mxu1 %v1005_v11  ;;  %v994_v16 = vld [vmem:[%s1453_s22 + $0x54] ss:$8 sps:$4 sm:$0xff]   ;;  %v1015_v17 = vld [vmem:[%s1453_s22 + $0x124] ss:$8 sps:$4 sm:$0xff]   ;;  %v1017_v18 = vld [vmem:[%s1453_s22 + $0x120] ss:$8 sps:$4 sm:$0xff]  }
  0x80   : > { %588 = vmatpush1.bf16.msra.mxu0 %v984_v5  ;;  %628 = vmatprep.subr.bf16.mxu1 %v1009_v13  ;;  %v996_v19 = vld [vmem:[%s1453_s22 + $0x50] ss:$8 sps:$4 sm:$0xff]   ;;  %v1021_v20 = vld [vmem:[%s1453_s22 + $0x134] ss:$8 sps:$4 sm:$0xff]   ;;  %v997_v21 = vld [vmem:[%s1453_s22 + $0x64] ss:$8 sps:$4 sm:$0xff]  }
  0x81   : > { %589 = vmatprep.subr.bf16.mxu0 %v985_v6  ;;  %v1023_v22 = vld [vmem:[%s1453_s22 + $0x130] ss:$8 sps:$4 sm:$0xff]   ;;  %v999_v23 = vld [vmem:[%s1453_s22 + $0x60] ss:$8 sps:$4 sm:$0xff]   ;;  %v1027_v24 = vld [vmem:[%s1453_s22 + $0x144] ss:$8 sps:$4 sm:$0xff]  }
  0x82   : > { %v1000_v25 = vld [vmem:[%s1453_s22 + $0x74] ss:$8 sps:$4 sm:$0xff]   ;;  %v1029_v26 = vld [vmem:[%s1453_s22 + $0x140] ss:$8 sps:$4 sm:$0xff]   ;;  %v1002_v27 = vld [vmem:[%s1453_s22 + $0x70] ss:$8 sps:$4 sm:$0xff]  }
  0x83   : > { %629 = vmatpush1.bf16.msra.mxu1 %v1011_v14  ;;  %v1033_v28 = vld [vmem:[%s1453_s22 + $0x154] ss:$8 sps:$4 sm:$0xff]   ;;  %v1006_v29 = vld [vmem:[%s1453_s22 + $0x84] ss:$8 sps:$4 sm:$0xff]   ;;  %v1035_v30 = vld [vmem:[%s1453_s22 + $0x150] ss:$8 sps:$4 sm:$0xff]  }
  0x84   : > { %590 = vmatpush1.bf16.msra.mxu0 %v987_v7  ;;  %630 = vmatprep.subr.bf16.mxu1 %v1015_v17  ;;  %v1008_v31 = vld [vmem:[%s1453_s22 + $0x80] ss:$8 sps:$4 sm:$0xff]   ;;  %v1039_v32 = vld [vmem:[%s1453_s22 + $0x164] ss:$8 sps:$4 sm:$0xff]   ;;  %v1012_v33 = vld [vmem:[%s1453_s22 + $0x94] ss:$8 sps:$4 sm:$0xff]  }
  0x85   : > { %591 = vmatprep.subr.bf16.mxu0 %v988_v8  ;;  %v284_v34 = vld [vmem:[%s1446_s30] sm:$0xff]  ;;  %v1051_v43 = vld [vmem:[%s1446_s30 + $0x8] ss:$0 sps:$4 sm:$0xff]   ;;  %v283_v61 = vld [vmem:[#allocation2 + $0x8] sm:$0xff]  ;;  %p882_p9 = scmp.ne.s32.totalorder %s1222_s15, 8 }
  0x86   : > { %v832_v35 = vcombine.high %v284_v34, %v284_v34  ;;  %v1041_v36 = vld [vmem:[%s1453_s22 + $0x160] ss:$8 sps:$4 sm:$0xff]   ;;  %v1014_v37 = vld [vmem:[%s1453_s22 + $0x90] ss:$8 sps:$4 sm:$0xff]   ;;  %v1045_v38 = vld [vmem:[%s1453_s22 + $0x174] ss:$8 sps:$4 sm:$0xff]   ;;  %v831_v53 = vcombine.low %v284_v34, %v284_v34  ;;  %v679_v4 = vlaneseq (!%p882_p9) }
  0x87   : > { %631 = vmatpush1.bf16.msra.mxu1 %v1017_v18  ;;  %v1018_v39 = vld [vmem:[%s1453_s22 + $0xa4] ss:$8 sps:$4 sm:$0xff]   ;;  %v1047_v40 = vld [vmem:[%s1453_s22 + $0x170] ss:$8 sps:$4 sm:$0xff]   ;;  %v1020_v41 = vld [vmem:[%s1453_s22 + $0xa0] ss:$8 sps:$4 sm:$0xff]  }
  0x88   : > { %592 = vmatpush1.bf16.msra.mxu0 %v990_v9  ;;  %632 = vmatprep.subr.bf16.mxu1 %v1021_v20  ;;  %v1024_v42 = vld [vmem:[%s1453_s22 + $0xb4] ss:$8 sps:$4 sm:$0xff]   ;;  %v1026_v44 = vld [vmem:[%s1453_s22 + $0xb0] ss:$8 sps:$4 sm:$0xff]   ;;  %v1030_v45 = vld [vmem:[%s1453_s22 + $0xc4] ss:$8 sps:$4 sm:$0xff]  }
  0x89   : > { %593 = vmatprep.subr.bf16.mxu0 %v991_v12  ;;  %617 = vmatprep.mubr.bf16.mxu0 %v832_v35  ;;  %v1032_v46 = vld [vmem:[%s1453_s22 + $0xc0] ss:$8 sps:$4 sm:$0xff]   ;;  %v1036_v47 = vld [vmem:[%s1453_s22 + $0xd4] ss:$8 sps:$4 sm:$0xff]   ;;  %v1038_v48 = vld [vmem:[%s1453_s22 + $0xd0] ss:$8 sps:$4 sm:$0xff]  }
  0x8a   : > { %v1042_v49 = vld [vmem:[%s1453_s22 + $0xe4] ss:$8 sps:$4 sm:$0xff]   ;;  %v1044_v50 = vld [vmem:[%s1453_s22 + $0xe0] ss:$8 sps:$4 sm:$0xff]   ;;  %v1048_v51 = vld [vmem:[%s1453_s22 + $0xf4] ss:$8 sps:$4 sm:$0xff]  }
  0x8b   : > { %633 = vmatpush1.bf16.msra.mxu1 %v1023_v22  ;;  %v1050_v52 = vld [vmem:[%s1453_s22 + $0xf0] ss:$8 sps:$4 sm:$0xff]   ;;  %v680_v5 = vshrl.u32 (!%p882_p9), %v679_v4, 7  ;;  %v677_v6 = vld [vmem:[#allocation8] sm:$0x3] (!%p882_p9) }
  0x8c   : > { %594 = vmatpush1.bf16.msra.mxu0 %v993_v15  ;;  %634 = vmatprep.subr.bf16.mxu1 %v1027_v24 }
  0x8d   : > { %595 = vmatprep.subr.bf16.mxu0 %v994_v16  ;;  %v681_v7 = vsub.s32 (!%p882_p9), 0, %v680_v5  ;;  %v685_v8 = vsub.s32 (!%p882_p9), 1, %v680_v5 }
  0x8f   : > { %635 = vmatpush1.bf16.msra.mxu1 %v1029_v26  ;;  %v682_v11 = vrot.slane (!%p882_p9), %v677_v6, %v681_v7  ;;  %v686_v12 = vrot.slane (!%p882_p9), %v677_v6, %v685_v8 }
  0x90   : > { %596 = vmatpush1.bf16.msra.mxu0 %v996_v19  ;;  %636 = vmatprep.subr.bf16.mxu1 %v1033_v28 }
  0x91   : > { %597 = vmatprep.subr.bf16.mxu0 %v997_v21 }
  0x93   : > { %637 = vmatpush1.bf16.msra.mxu1 %v1035_v30 }
  0x94   : > { %598 = vmatpush1.bf16.msra.mxu0 %v999_v23  ;;  %638 = vmatprep.subr.bf16.mxu1 %v1039_v32 }
  0x95   : > { %599 = vmatprep.subr.bf16.mxu0 %v1000_v25 }
  0x97   : > { %639 = vmatpush1.bf16.msra.mxu1 %v1041_v36 }
  0x98   : > { %600 = vmatpush1.bf16.msra.mxu0 %v1002_v27  ;;  %640 = vmatprep.subr.bf16.mxu1 %v1045_v38 }
  0x99   : > { %601 = vmatprep.subr.bf16.mxu0 %v1006_v29 }
  0x9b   : > { %641 = vmatpush1.bf16.msra.mxu1 %v1047_v40 }
  0x9c   : > { %602 = vmatpush1.bf16.msra.mxu0 %v1008_v31 }
  0x9d   : > { %603 = vmatprep.subr.bf16.mxu0 %v1012_v33 }
  0x9e   : > { %659 = vmatmul.mubr.bf16.vlgmr.msra.gmra.mrb[0].mxu1 %v1051_v43 }
  0xa0   : > { %604 = vmatpush1.bf16.msra.mxu0 %v1014_v37 }
  0xa1   : > { %605 = vmatprep.subr.bf16.mxu0 %v1018_v39 }
  0xa4   : > { %606 = vmatpush1.bf16.msra.mxu0 %v1020_v41 }
  0xa5   : > { %607 = vmatprep.subr.bf16.mxu0 %v1024_v42 }
  0xa8   : > { %608 = vmatpush1.bf16.msra.mxu0 %v1026_v44 }
  0xa9   : > { %609 = vmatprep.subr.bf16.mxu0 %v1030_v45 }
  0xac   : > { %610 = vmatpush1.bf16.msra.mxu0 %v1032_v46 }
  0xad   : > { %611 = vmatprep.subr.bf16.mxu0 %v1036_v47 }
  0xb0   : > { %612 = vmatpush1.bf16.msra.mxu0 %v1038_v48 }
  0xb1   : > { %613 = vmatprep.subr.bf16.mxu0 %v1042_v49 }
  0xb4   : > { %614 = vmatpush1.bf16.msra.mxu0 %v1044_v50 }
  0xb5   : > { %615 = vmatprep.subr.bf16.mxu0 %v1048_v51 }
  0xb8   : > { %616 = vmatpush1.bf16.msra.mxu0 %v1050_v52 }
  0xbb   : > { %618 = vmatmul.mubr.bf16.vlgmr.msra.gmra.mrb[0].mxu0 %v831_v53 }
 0x171   : > { %v660_v54 = vpop.f32.mrb[0].mxu1 }
 0x172   : > { %v662_v55 = vpop.f32.mrb[1].mxu1 }
 0x173   : > { %v664_v56 = vpop.f32.mrb[2].mxu1 }
 0x174   : > { %v665_v57 = vpop.f32.mrb[3].mxu1 }
 0x18e   : > { %v619_v59 = vpop.f32.mrb[0].mxu0  ;;  %674 = sbr.rel (%p882_p9) target bundleno = 419 (0x1a3), region = 52 }
 0x18f   : > { %v661_v60 = vadd.f32 %v660_v54, %v619_v59  ;;  %v621_v62 = vpop.f32.mrb[1].mxu0 }
 0x190   : > { %v663_v63 = vadd.f32 %v662_v55, %v621_v62  ;;  %v623_v0 = vpop.f32.mrb[2].mxu0 }
 0x191   : > { %v667_v1 = vadd.f32 %v661_v60, %v282_v58  ;;  %v624_v2 = vpop.f32.mrb[3].mxu0 }
 0x192   : > { %v668_v3 = vadd.f32 %v663_v63, %v283_v61 }
 0x193   : > { %669 = vst [vmem:[#allocation2] sm:$0xff] %v667_v1 }
 0x194   : > { %670 = vst [vmem:[#allocation2 + $0x8] sm:$0xff] %v668_v3 }
 0x19a   : > { %v675_v9 = vld [vmem:[#allocation2] sm:$0xff] }
 0x19b   : > { %v676_v10 = vld [vmem:[#allocation2 + $0x8] sm:$0xff]  ;;  %v689_v13 = vadd.f32 %v682_v11, %v675_v9 }
 0x19c   : > { %v690_v14 = vadd.f32 %v686_v12, %v676_v10 }
 0x19d   : > { %v691_v15 = vmax.f32 %v689_v13, 0.0 }
 0x19e   : > { %v692_v16 = vmax.f32 %v690_v14, 0.0 }
 0x1a0   : > { %v891_v17 = vpack.c.bf16 %v692_v16, %v691_v15 }
 0x1a2   : > { %701 = vst [vmem:[#allocation9] sm:$0xff] %v891_v17 }
 0x1a3 PF: > { %p923_p11 = scmp.eq.s32.totalorder %s1289_s18, 8  ;;  %s1239_s15 = smov [#allocation9]  }
 0x1a4   : > { %s714_s20 = sshll.u32 %s1239_s15, 4  ;;  %s715_s20 = int_to_ptr.vmem [resolvable:$true] %s714_s20 }
 0x1a5   : > { %s1142_s21 = scalar_lea.vmem %s715_s20, 128  ;;  %p1149_p1 = scmp.lt.s32.totalorder %s715_s20, %s715_s20 }
 0x1a6   : > { %p1143_p13 = scmp.ne.s32.totalorder %s715_s20, %s1142_s21  ;;  %p1150_p0 = scmp.lt.s32.totalorder %s1142_s21, %s1142_s21 }
 0x1a8   : > { %p1144_p3 = pnand %p1143_p13, %p923_p11  ;;  %p1151_p8 = por %p1150_p0, %p1149_p1 }
 0x1aa   : > { %p1145_p4 = pneg %p1144_p3 }
 0x1ac   : > { %p1152_p2 = pnand %p1151_p8, %p1145_p4 }
 0x1ae   : > { %1155 = shalt.err (!%p1152_p2)
}
 0x1af   : > { %s1156_s7 = scalar_lea.hbm %s1559_s3, 128 }
 0x1b0   : > { %p1157_p12 = scmp.ne.s32.totalorder %s1559_s3, %s1156_s7  ;;  %p1162_p5 = scmp.lt.u32.totalorder %s1156_s7, %s1559_s3 }
 0x1b2   : > { %p1158_p7 = pnand %p1157_p12, %p923_p11 }
 0x1b4   : > { %p1159_p10 = pneg %p1158_p7 }
 0x1b6   : > { %p1164_p6 = pnand %p1162_p5, %p1159_p10 }
 0x1b8   : > { %1167 = shalt.err (!%p1164_p6)
}
 0x1b9   : > { %906 = dma.vmem_to_hbm [thread:$0]  (%p923_p11), %s715_s20, 128, %s1559_s3, [#allocation5]  }
 0x1ba   : > { %1205 = dma.done.wait (%p923_p11), [#allocation5], 128  }
 0x1bb   : > { %1207 = vsyncadd (%p923_p11), [#allocation5], 4294967168 }
 0x1bc PF: > { %s20_s17 = sadd.s32 1, %s1230_s17   ;;  %s1576_s12 = smov %s1214_s13 }
 0x1bd   : > { %p17_p9 = scmp.ge.s32.totalorder %s20_s17, 11   ;;  %s1577_s13 = smov %s1218_s14 }
 0x1be   : > { %s1578_s14 = smov %s1373_s26  ;;  %s1579_s15 = smov %s1226_s16 }
 0x1bf   : > { %s1580_s16 = smov %s1582_s25  ;;  %19 = sbr.rel (!%p17_p9) target bundleno = 7 (0x7), region = 96 }
 0x1c6   :  { %727 = vsyncpa [#allocation4], 1 }
 0x1c7   :  { %729 = vsyncpa [#allocation4 + $0x1], 1 }
 0x1c8   :  { %730 = vsyncpa [#allocation7], 1 }
 0x1c9   :  { %732 = vsyncpa [#allocation7 + $0x1], 1 }
 0x1ca   :  { %733 = vsyncpa [#allocation5], 1 }
 0x1cb   :  { %735 = vsyncpa [#allocation5 + $0x1], 1 }

// kernel: icnet_forward.11
= control target key start
LH: loop header
LB: loop body
LE: loop exit
PB: predicated region body
PF: predicated region fallthrough
CT: control target
= control target key end

     0   :  { %9 = vsyncpa [#allocation4], 0  ;;  %s1580_s0 = inlined_call_operand.hbm [shape: bf16[2,4,256], index: 0, kind: input, shape index: {}]   ;;  %s1581_s1 = inlined_call_operand.hbm [shape: bf16[128,256], index: 1, kind: input, shape index: {}]   ;;  %s1582_s2 = inlined_call_operand.hbm [shape: f32[128,1], index: 2, kind: input, shape index: {}]   ;;  %s1583_s3 = inlined_call_operand.hbm [shape: bf16[4,256], index: 3, kind: input, shape index: {}]   ;;  %s1584_s4 = inlined_call_operand.hbm [shape: f32[2,5,256], index: 4, kind: output, shape index: {}]  }
   0x1   :  { %11 = vsyncpa [#allocation4 + $0x1], 0 }
   0x2   :  { %12 = vsyncpa [#allocation7], 0 }
   0x3   :  { %13 = vsyncpa [#allocation10], 0 }
   0x4   :  { %14 = vsyncpa [#allocation5], 0 }
   0x5   :  { %16 = vsyncpa [#allocation5 + $0x1], 0  ;;  %s1278_s15 = smov 0   ;;  %s1280_s16 = smov 0  }
   0x6   :  { %s1282_s17 = smov 0   ;;  %s1284_s18 = smov 0  }
   0x7   :  { %s1286_s19 = smov 0   ;;  %s1288_s20 = smov 0  }
   0x8 LB: > { %s867_s21 = sadd.s32 4294967295, %s1243_s20   ;;  %s868_s22 = sadd.s32 4294967294, %s1243_s20   ;;  %s1243_s20 = sphi %s1288_s20, %s22_s20   ;;  %s1239_s19 = sphi %s1286_s19, %s1611_s19   ;;  %s1235_s18 = sphi %s1284_s18, %s1610_s18   ;;  %s1231_s17 = sphi %s1282_s17, %s1609_s17   ;;  %s1227_s16 = sphi %s1280_s16, %s1608_s16   ;;  %s1223_s15 = sphi %s1278_s15, %s1607_s15  }
   0x9   : > { %p54_p0 = scmp.ne.s32.totalorder %s1227_s16, %s1223_s15  ;;  %p1312_p1 = scmp.eq.s32.totalorder %s867_s21, 0 }
   0xa   : > { %p1316_p2 = scmp.eq.s32.totalorder %s867_s21, 1  ;;  %p154_p3 = scmp.eq.s32.totalorder %s868_s22, 1 }
   0xb   : > { %s1590_s23 = scalar_select %p1312_p1, 1, 0 }
   0xc   : > { %s1591_s24 = scalar_select %p1316_p2, 1, 0 }
   0xd   : > { %p1322_p4 = por %p1312_p1, %p54_p0  ;;  %p869_p5 = scmp.ge.s32.totalorder %s1243_s20, 1 }
   0xe   : > { %p1327_p6 = por %p154_p3, %p54_p0  ;;  %p161_p7 = scmp.lt.s32.totalorder %s1243_s20, 3 }
   0xf   : > { %s1592_s25 = scalar_select %p1322_p4, 1, 0 }
  0x10   : > { %s1593_s26 = scalar_select %p1327_p6, 1, 0 }
  0x11   : > { %p1332_p8 = pnand %p869_p5, %p161_p7  ;;  %s1245_s28 = smov [#allocation6]  }
  0x12   : > { %1594 = sst [smem:[#allocation16_spill]] %s1593_s26  ;;  %s173_s29 = sshll.u32 %s1245_s28, 4  ;;  %s1336_s29 = int_to_ptr.vmem [resolvable:$true] %s173_s29 }
  0x13   : > { %s1595_s27 = scalar_select %p1332_p8, 1, 0 }
  0x14   : > { %p933_p9 = pneg %p1332_p8  ;;  %s1246_s5 = smov [#allocation8]  }
  0x15   : > { %s186_s6 = sshll.u32 %s1246_s5, 4  ;;  %s1247_s7 = smov [#allocation9]   ;;  %s1347_s6 = int_to_ptr.vmem [resolvable:$true] %s186_s6 }
  0x16   : > { %p1343_p11 = pnand %p933_p9, %p1312_p1  ;;  %s1349_s8 = sshll.u32 %s1247_s7, 4  ;;  %s204_s8 = int_to_ptr.vmem [resolvable:$true] %s1349_s8 }
  0x17   : > { %s1039_s11 = scalar_lea.hbm %s1581_s1, 2048 }
  0x18   : > { %p1040_p12 = scmp.ne.s32.totalorder %s1581_s1, %s1039_s11  ;;  %p1359_p13 = pneg %p1343_p11 }
  0x19   : > { %p1046_p5 = scmp.lt.u32.totalorder %s1039_s11, %s1581_s1 }
  0x1a   : > { %p1042_p0 = pnand %p1359_p13, %p1040_p12 }
  0x1c   : > { %p1043_p3 = pneg %p1042_p0 }
  0x1e   : > { %p1048_p7 = pnand %p1046_p5, %p1043_p3 }
  0x20   : > { %1051 = shalt.err (!%p1048_p7)
}
  0x21   : > { %s1052_s28 = scalar_lea.vmem %s1336_s29, 2048  ;;  %p1060_p1 = scmp.lt.s32.totalorder %s1336_s29, %s1336_s29 }
  0x22   : > { %p1053_p9 = scmp.ne.s32.totalorder %s1336_s29, %s1052_s28  ;;  %p1061_p4 = scmp.lt.s32.totalorder %s1052_s28, %s1052_s28 }
  0x24   : > { %p1055_p10 = pnand %p1053_p9, %p1359_p13  ;;  %p1062_p12 = por %p1061_p4, %p1060_p1 }
  0x26   : > { %p1056_p6 = pneg %p1055_p10 }
  0x28   : > { %p1063_p0 = pnand %p1062_p12, %p1056_p6 }
  0x2a   : > { %1066 = shalt.err (!%p1063_p0)
}
  0x2b   : > { %s1248_s5 = smov 128   ;;  %s1249_s7 = smov 8  }
  0x2c   : > { %936 = dma.hbm_to_vmem [thread:$0]  (!%p1343_p11), %s1581_s1, 2048, %s1336_s29, [#allocation7], %s1248_s5, %s1248_s5, %s1249_s7  }
  0x2d   : > { %s1067_s13 = scalar_lea.hbm %s1582_s2, 2048 }
  0x2e   : > { %p1068_p1 = scmp.ne.s32.totalorder %s1582_s2, %s1067_s13  ;;  %p1074_p10 = scmp.lt.u32.totalorder %s1067_s13, %s1582_s2 }
  0x30   : > { %p1070_p4 = pnand %p1068_p1, %p1359_p13 }
  0x32   : > { %p1071_p6 = pneg %p1070_p4 }
  0x34   : > { %p1076_p3 = pnand %p1074_p10, %p1071_p6 }
  0x36   : > { %1079 = shalt.err (!%p1076_p3)
}
  0x37   : > { %s1080_s29 = scalar_lea.vmem %s1347_s6, 2048  ;;  %p1088_p12 = scmp.lt.s32.totalorder %s1347_s6, %s1347_s6 }
  0x38   : > { %p1081_p5 = scmp.ne.s32.totalorder %s1347_s6, %s1080_s29  ;;  %p1089_p0 = scmp.lt.s32.totalorder %s1080_s29, %s1080_s29 }
  0x3a   : > { %p1083_p7 = pnand %p1081_p5, %p1359_p13  ;;  %p1090_p1 = por %p1089_p0, %p1088_p12 }
  0x3c   : > { %p1084_p9 = pneg %p1083_p7 }
  0x3e   : > { %p1091_p4 = pnand %p1090_p1, %p1084_p9 }
  0x40   : > { %1094 = shalt.err (!%p1091_p4)
}
  0x41   : > { %939 = dma.hbm_to_vmem [thread:$0]  (!%p1343_p11), %s1582_s2, 2048, %s1347_s6, [#allocation7], %s1248_s5, %s1248_s5, %s1249_s7  }
  0x42   : > { %s1095_s12 = scalar_lea.hbm %s1583_s3, 64 }
  0x43   : > { %p1096_p6 = scmp.ne.s32.totalorder %s1583_s3, %s1095_s12  ;;  %p1102_p5 = scmp.lt.u32.totalorder %s1095_s12, %s1583_s3 }
  0x45   : > { %p1098_p10 = pnand %p1096_p6, %p1359_p13 }
  0x47   : > { %p1099_p3 = pneg %p1098_p10 }
  0x49   : > { %p1104_p7 = pnand %p1102_p5, %p1099_p3 }
  0x4b   : > { %1107 = shalt.err (!%p1104_p7)
}
  0x4c   : > { %s1108_s29 = scalar_lea.vmem %s204_s8, 64  ;;  %p1116_p1 = scmp.lt.s32.totalorder %s204_s8, %s204_s8 }
  0x4d   : > { %p1109_p9 = scmp.ne.s32.totalorder %s204_s8, %s1108_s29  ;;  %p1117_p4 = scmp.lt.s32.totalorder %s1108_s29, %s1108_s29 }
  0x4f   : > { %p1111_p12 = pnand %p1109_p9, %p1359_p13  ;;  %p1118_p8 = por %p1117_p4, %p1116_p1 }
  0x51   : > { %p1112_p0 = pneg %p1111_p12 }
  0x53   : > { %p1119_p2 = pnand %p1118_p8, %p1112_p0 }
  0x55   : > { %1122 = shalt.err (!%p1119_p2)
}
  0x56   : > { %942 = dma.hbm_to_vmem [thread:$0]  (!%p1343_p11), %s1583_s3, 64, %s204_s8, [#allocation10]  }
  0x57   : > { %s41_s14 = sadd.s32 1, %s1231_s17  ;;  %s34_s7 = sadd.s32 1, %s1239_s19 }
  0x58   : > { %p48_p2 = scmp.ne.s32.totalorder %s1231_s17, %s1227_s16  ;;  %p36_p8 = scmp.ge.s32.totalorder %s34_s7, 2 }
  0x59   : > { %p49_p13 = scmp.eq.s32.totalorder %s1243_s20, 0  ;;  %p1598_p6 = scmp.ne.s32.totalorder %s1591_s24, 0 }
  0x5a   : > { %p954_p3 = scmp.lt.s32.totalorder %s1243_s20, 2  ;;  %s1613_s7 = smov (%p36_p8, %s34_s7), 0 }
  0x5b   : > { %p1429_p10 = por %p1598_p6, %p48_p2  ;;  %p50_p5 = por %p49_p13, %p48_p2 }
  0x5c   : > { %s214_s26 = sand.u32 1, %s1231_s17   ;;  %s38_s9 = ssub.s32 %s1239_s19, %s1613_s7 }
  0x5d   : > { %p39_p7 = scmp.eq.s32.totalorder %s38_s9, 0  ;;  %s874_s8 = sshll.u32 %s214_s26, 2 }
  0x5e   : > { %s915_s10 = sshll.u32 %s1239_s19, 6  ;;  %s218_s21 = scalar_lea.vmem [#allocation3], %s874_s8 }
  0x5f   : > { %s1441_s11 = scalar_select %p39_p7, %s1231_s17, %s41_s14  }
  0x60   : > { %s1446_s24 = scalar_lea.hbm %s1580_s0, %s915_s10  ;;  %s226_s22 = sshll.u32 %s218_s21, 4  ;;  %s1448_s22 = int_to_ptr.vmem [resolvable:$true] %s226_s22 }
  0x61   : > { %p1452_p11 = pnand %p954_p3, %p50_p5  ;;  %s215_s29 = scalar_lea.sflag [#allocation4], %s214_s26 }
  0x62   : > { %s1123_s6 = scalar_lea.hbm %s1446_s24, 64  ;;  %s1128_s9 = scalar_lea.hbm %s1580_s0, 128 }
  0x63   : > { %p1124_p9 = scmp.ne.s32.totalorder %s1446_s24, %s1123_s6  ;;  %p1125_p12 = pneg %p1452_p11 }
  0x64   : > { %p1129_p4 = scmp.lt.u32.totalorder %s1446_s24, %s1580_s0  ;;  %p1130_p2 = scmp.lt.u32.totalorder %s1128_s9, %s1123_s6 }
  0x65   : > { %p1126_p0 = pnand %p1125_p12, %p1124_p9  ;;  %p1132_p13 = scmp.lt.u32.totalorder %s1123_s6, %s1446_s24 }
  0x66   : > { %p1131_p8 = por %p1130_p2, %p1129_p4 }
  0x67   : > { %p1127_p1 = pneg %p1126_p0 }
  0x68   : > { %p1133_p6 = por %p1132_p13, %p1131_p8 }
  0x6a   : > { %p1134_p3 = pnand %p1133_p6, %p1127_p1 }
  0x6c   : > { %1137 = shalt.err (!%p1134_p3)
}
  0x6d   : > { %s1138_s26 = scalar_lea.vmem %s1448_s22, 64  ;;  %s1250_s12 = smov [#allocation3]  }
  0x6e   : > { %p1139_p5 = scmp.ne.s32.totalorder %s1448_s22, %s1138_s26  ;;  %s1143_s13 = sshll.u32 %s1250_s12, 4  ;;  %s1144_s13 = int_to_ptr.vmem [resolvable:$false] %s1143_s13 }
  0x6f   : > { %s1145_s21 = scalar_lea.vmem %s1144_s13, 128  ;;  %p1146_p0 = scmp.lt.s32.totalorder %s1448_s22, %s1144_s13 }
  0x70   : > { %p1141_p7 = pnand %p1139_p5, %p1125_p12  ;;  %p1147_p4 = scmp.lt.s32.totalorder %s1145_s21, %s1138_s26 }
  0x72   : > { %p1142_p9 = pneg %p1141_p7  ;;  %p1148_p2 = por %p1147_p4, %p1146_p0 }
  0x74   : > { %p1149_p8 = pnand %p1148_p2, %p1142_p9 }
  0x76   : > { %1152 = shalt.err (!%p1149_p8)
}
  0x77   : > { %946 = dma.hbm_to_vmem [thread:$0]  (!%p1452_p11), %s1446_s24, 64, %s1448_s22, %s215_s29  }
  0x78   : > { %p1601_p1 = scmp.ne.s32.totalorder %s1595_s27, 0 }
  0x79   : > { %s1484_s6 = sand.u32 (!%p1601_p1), 1, %s1227_s16   ;;  %p1602_p12 = scmp.ne.s32.totalorder (!%p1601_p1), %s1592_s25, 0 }
  0x7a   : > { %235 = sbr.rel (%p1601_p1) target bundleno = 644 (0x284), region = 36  ;;  %s878_s5 = sshll.u32 (!%p1601_p1), %s1484_s6, 2 }
  0x7b   : > { %s238_s14 = scalar_lea.sflag (!%p1601_p1), [#allocation4], %s1484_s6  ;;  %s241_s9 = scalar_lea.vmem (!%p1601_p1), [#allocation3], %s878_s5 }
  0x81   : > { %1206 = dma.done.wait (%p1602_p12), %s238_s14, 64  }
  0x82   : > { %1208 = vsyncadd (%p1602_p12), %s238_s14, 4294967232  ;;  %p1603_p13 = scmp.ne.s32.totalorder %s1590_s23, 0 }
  0x84   : > { %1210 = dma.done.wait (%p1603_p13), [#allocation7], 4096  }
  0x85   : > { %1212 = vsyncadd (%p1603_p13), [#allocation7], 4294963200 }
  0x86   : > { %1214 = dma.done.wait (%p1603_p13), [#allocation10], 64  }
  0x87   : > { %1216 = vsyncadd (%p1603_p13), [#allocation10], 4294967232  ;;  %v1251_v0 = vmov 0   ;;  %v1017_v3 = vld [vmem:[#allocation6 + $0x4] ss:$8 sps:$4 sm:$0xff]   ;;  %v304_v8 = vld [vmem:[#allocation8 + $0x10] sm:$0xff] }
  0x88   : > { %1013 = vset.pattern.permute.xlu0 %v1251_v0  ;;  %1014 = vset.pattern.permute.xlu1 %v1251_v0  ;;  %v899_v1 = vld.sshfl [vmem:[%s241_s9] sm:$0x33 pattern:$0x76325410]  ;;  %v1015_v4 = vld [vmem:[#allocation6] ss:$8 sps:$4 sm:$0xff]  }
  0x89   : > { %685 = vmatprep.mubr.bf16.mxu1 %v1251_v0  ;;  %v486_v2 = vcombine.high %v899_v1, %v899_v1  ;;  %521 = vmatprep.mubr.bf16.mxu0 %v1017_v3  ;;  %v1018_v5 = vld [vmem:[#allocation6 + $0x14] ss:$8 sps:$4 sm:$0xff]   ;;  %v302_v6 = vld [vmem:[#allocation8] sm:$0xff]  ;;  %v303_v7 = vld [vmem:[#allocation8 + $0x8] sm:$0xff]  ;;  %vm646_vm0 = vcmask 1041408   ;;  %vm594_vm1 = vcmask 31744  }
  0x8a   : > { %320 = vperm.xlu0 %1013, %v302_v6   ;;  %330 = vperm.xlu1 %1014, %v304_v8   ;;  %v305_v9 = vld [vmem:[#allocation8 + $0x18] sm:$0xff]  ;;  %v306_v11 = vld [vmem:[#allocation8 + $0x20] sm:$0xff]  ;;  %v307_v13 = vld [vmem:[#allocation8 + $0x28] sm:$0xff]  ;;  %s882_s23 = sshll.u32 %s1484_s6, 4  ;;  %s916_s24 = sshll.u32 %s1235_s18, 8 }
  0x8b   : > { %489 = vmatprep.subr.bf16.mxu0 %v486_v2  ;;  %v1020_v10 = vld [vmem:[#allocation6 + $0x10] ss:$8 sps:$4 sm:$0xff]   ;;  %v1021_v12 = vld [vmem:[#allocation6 + $0x24] ss:$8 sps:$4 sm:$0xff]   ;;  %v1023_v16 = vld [vmem:[#allocation6 + $0x20] ss:$8 sps:$4 sm:$0xff]   ;;  %s1533_s29 = scalar_lea.hbm %s1584_s4, %s916_s24 }
  0x8c   : > { %490 = vmatpush1.bf16.xpose.msra.mxu0 %v899_v1  ;;  %v308_v14 = vld [vmem:[#allocation8 + $0x30] sm:$0xff]  ;;  %v309_v15 = vld [vmem:[#allocation8 + $0x38] sm:$0xff]  ;;  %v310_v17 = vld [vmem:[#allocation8 + $0x40] sm:$0xff]  ;;  %s277_s25 = scalar_lea.vmem [#allocation11], %s882_s23  ;;  %s739_s8 = scalar_lea.sflag [#allocation5], %s1484_s6 }
  0x8d   : > { %v1024_v18 = vld [vmem:[#allocation6 + $0x34] ss:$8 sps:$4 sm:$0xff]   ;;  %v311_v19 = vld [vmem:[#allocation8 + $0x48] sm:$0xff]  ;;  %v1026_v22 = vld [vmem:[#allocation6 + $0x30] ss:$8 sps:$4 sm:$0xff]   ;;  %s755_s27 = sshll.u32 %s277_s25, 4  ;;  %s1528_s27 = int_to_ptr.vmem [resolvable:$true] %s755_s27 }
  0x8e   : > { %325 = vperm.xlu0 %1013, %v303_v7   ;;  %335 = vperm.xlu1 %1014, %v305_v9   ;;  %v312_v20 = vld [vmem:[#allocation8 + $0x50] sm:$0xff]  ;;  %v313_v21 = vld [vmem:[#allocation8 + $0x58] sm:$0xff]  ;;  %v314_v23 = vld [vmem:[#allocation8 + $0x60] sm:$0xff]  ;;  %s1153_s10 = scalar_lea.vmem %s1528_s27, 256  ;;  %s1252_s18 = smov [#allocation11]  }
  0x8f   : > { %v1027_v24 = vld [vmem:[#allocation6 + $0x44] ss:$8 sps:$4 sm:$0xff]   ;;  %v316_v26 = vld [vmem:[#allocation8 + $0x70] sm:$0xff]  ;;  %v317_v27 = vld [vmem:[#allocation8 + $0x78] sm:$0xff]  ;;  %p1154_p11 = scmp.ne.s32.totalorder %s1528_s27, %s1153_s10  ;;  %s1157_s26 = sshll.u32 %s1252_s18, 4  ;;  %s1158_s26 = int_to_ptr.vmem [resolvable:$false] %s1157_s26 }
  0x90   : > { %v315_v25 = vld [vmem:[#allocation8 + $0x68] sm:$0xff]  ;;  %v1030_v29 = vld [vmem:[#allocation6 + $0x54] ss:$8 sps:$4 sm:$0xff]   ;;  %v1032_v30 = vld [vmem:[#allocation6 + $0x50] ss:$8 sps:$4 sm:$0xff]   ;;  %s1159_s12 = scalar_lea.vmem %s1158_s26, 512  ;;  %p1160_p5 = scmp.lt.s32.totalorder %s1528_s27, %s1158_s26 }
  0x91   : > { %v1029_v28 = vld [vmem:[#allocation6 + $0x40] ss:$8 sps:$4 sm:$0xff]   ;;  %v1033_v31 = vld [vmem:[#allocation6 + $0x64] ss:$8 sps:$4 sm:$0xff]   ;;  %v1036_v33 = vld [vmem:[#allocation6 + $0x74] ss:$8 sps:$4 sm:$0xff]   ;;  %p1155_p6 = pnand %p1154_p11, %p1429_p10  ;;  %p1161_p7 = scmp.lt.s32.totalorder %s1159_s12, %s1153_s10 }
  0x92   : > { %340 = vperm.xlu0 %1013, %v306_v11   ;;  %345 = vperm.xlu1 %1014, %v307_v13   ;;  %v1035_v32 = vld [vmem:[#allocation6 + $0x60] ss:$8 sps:$4 sm:$0xff]   ;;  %v1038_v34 = vld [vmem:[#allocation6 + $0x70] ss:$8 sps:$4 sm:$0xff]  }
  0x93   : > { %522 = vmatmul.mubr.bf16.vlgmr.msra.gmra.mrb[0].mxu0 %v1015_v4  ;;  %v900_v35 = vld.sshfl [vmem:[#allocation9] sm:$0x33 pattern:$0x76325410]  ;;  %p1156_p3 = pneg %p1155_p6  ;;  %p1162_p9 = por %p1161_p7, %p1160_p5 }
  0x94   : > { %529 = vmatprep.mubr.bf16.mxu0 %v1018_v5  ;;  %v620_v36 = vcombine.high %v900_v35, %v900_v35  ;;  %v648_v37 = vsel %vm646_vm0, %v900_v35, 0 }
  0x95   : > { %p1163_p0 = pnand %p1162_p9, %p1156_p3 }
  0x96   : > { %350 = vperm.xlu0 %1013, %v308_v14   ;;  %355 = vperm.xlu1 %1014, %v309_v15  }
  0x97   : > { %901 = vmatprep.subr.msk.bf16.mxu1 %vm646_vm0, %v620_v36 }
  0x98   : > { %654 = vmatpush1.bf16.msra.mxu1 %v648_v37 }
  0x9a   : > { %360 = vperm.xlu0 %1013, %v310_v17   ;;  %365 = vperm.xlu1 %1014, %v311_v19  }
  0x9b   : > { %530 = vmatmul.mubr.bf16.gmra.mrb[4].mxu0 %v1020_v10 }
  0x9c   : > { %537 = vmatprep.mubr.bf16.mxu0 %v1021_v12 }
  0x9e   : > { %370 = vperm.xlu0 %1013, %v312_v20   ;;  %375 = vperm.xlu1 %1014, %v313_v21  }
  0xa2   : > { %380 = vperm.xlu0 %1013, %v314_v23   ;;  %385 = vperm.xlu1 %1014, %v315_v25  }
  0xa3   : > { %538 = vmatmul.mubr.bf16.gmra.mrb[8].mxu0 %v1023_v16 }
  0xa4   : > { %545 = vmatprep.mubr.bf16.mxu0 %v1024_v18 }
  0xa6   : > { %390 = vperm.xlu0 %1013, %v316_v26   ;;  %395 = vperm.xlu1 %1014, %v317_v27  }
  0xab   : > { %546 = vmatmul.mubr.bf16.gmra.mrb[12].mxu0 %v1026_v22 }
  0xac   : > { %553 = vmatprep.mubr.bf16.mxu0 %v1027_v24 }
  0xb3   : > { %554 = vmatmul.mubr.bf16.gmra.mrb[16].mxu0 %v1029_v28 }
  0xb4   : > { %561 = vmatprep.mubr.bf16.mxu0 %v1030_v29 }
  0xbb   : > { %562 = vmatmul.mubr.bf16.gmra.mrb[20].mxu0 %v1032_v30 }
  0xbc   : > { %569 = vmatprep.mubr.bf16.mxu0 %v1033_v31 }
  0xc3   : > { %570 = vmatmul.mubr.bf16.gmra.mrb[24].mxu0 %v1035_v32 }
  0xc4   : > { %577 = vmatprep.mubr.bf16.mxu0 %v1036_v33 }
  0xcb   : > { %578 = vmatmul.mubr.bf16.gmra.mrb[28].mxu0 %v1038_v34 }
 0x109   : > { %v321_v38 = vpop.permute.xlu0 %320  ;;  %v331_v46 = vpop.permute.xlu1 %330 }
 0x10d   : > { %v326_v41 = vpop.permute.xlu0 %325  ;;  %v336_v50 = vpop.permute.xlu1 %335 }
 0x111   : > { %v341_v58 = vpop.permute.xlu0 %340  ;;  %v346_v60 = vpop.permute.xlu1 %345 }
 0x115   : > { %v351_v5 = vpop.permute.xlu0 %350  ;;  %v356_v7 = vpop.permute.xlu1 %355 }
 0x119   : > { %v361_v15 = vpop.permute.xlu0 %360  ;;  %v366_v17 = vpop.permute.xlu1 %365 }
 0x11d   : > { %v371_v25 = vpop.permute.xlu0 %370  ;;  %v376_v27 = vpop.permute.xlu1 %375 }
 0x121   : > { %v381_v35 = vpop.permute.xlu0 %380  ;;  %v386_v37 = vpop.permute.xlu1 %385 }
 0x166   : > { %v523_v39 = vpop.f32.mrb[0].mxu0 }
 0x167   : > { %v525_v40 = vpop.f32.mrb[1].mxu0  ;;  %v524_v43 = vadd.f32 %v523_v39, %v321_v38 }
 0x168   : > { %v526_v42 = vpop.f32.mrb[2].mxu0 }
 0x169   : > { %v527_v44 = vadd.f32 %v526_v42, %v326_v41  ;;  %v528_v45 = vpop.f32.mrb[3].mxu0 }
 0x16a   : > { %v391_v45 = vpop.permute.xlu0 %390 }
 0x16b   : > { %v586_v47 = vpack.c.bf16 %v527_v44, %v524_v43 }
 0x16d   : > { %595 = vst.msk [vmem:[#allocation2] sm:$0xff] %vm594_vm1, %v586_v47  ;;  %v396_v47 = vpop.permute.xlu1 %395 }
 0x16e   : > { %v531_v48 = vpop.f32.mrb[4].mxu0 }
 0x16f   : > { %v533_v49 = vpop.f32.mrb[5].mxu0  ;;  %v532_v52 = vadd.f32 %v531_v48, %v331_v46 }
 0x170   : > { %v534_v51 = vpop.f32.mrb[6].mxu0 }
 0x171   : > { %v535_v53 = vadd.f32 %v534_v51, %v336_v50  ;;  %v536_v54 = vpop.f32.mrb[7].mxu0 }
 0x173   : > { %v587_v55 = vpack.c.bf16 %v535_v53, %v532_v52 }
 0x174   : > { %v603_v56 = vld [vmem:[#allocation2] sm:$0xff] }
 0x175   : > { %596 = vst.msk [vmem:[#allocation2 + $0x8] sm:$0xff] %vm594_vm1, %v587_v55  ;;  %902 = vmatmul.mubr.msk.bf16.vlgmr.msra.gmra.mrb[0].mxu1 %vm594_vm1, %v603_v56 }
 0x176   : > { %v539_v57 = vpop.f32.mrb[8].mxu0  ;;  %693 = vmatprep.mubr.bf16.mxu1 %v1251_v0 }
 0x177   : > { %v541_v59 = vpop.f32.mrb[9].mxu0  ;;  %v540_v62 = vadd.f32 %v539_v57, %v341_v58 }
 0x178   : > { %v542_v61 = vpop.f32.mrb[10].mxu0 }
 0x179   : > { %v543_v63 = vadd.f32 %v542_v61, %v346_v60  ;;  %v544_v1 = vpop.f32.mrb[11].mxu0 }
 0x17b   : > { %v588_v2 = vpack.c.bf16 %v543_v63, %v540_v62 }
 0x17c   : > { %v604_v3 = vld [vmem:[#allocation2 + $0x8] sm:$0xff] }
 0x17d   : > { %597 = vst.msk [vmem:[#allocation2 + $0x10] sm:$0xff] %vm594_vm1, %v588_v2  ;;  %903 = vmatmul.mubr.msk.bf16.gmra.mrb[4].mxu1 %vm594_vm1, %v604_v3 }
 0x17e   : > { %v547_v4 = vpop.f32.mrb[12].mxu0  ;;  %699 = vmatprep.mubr.bf16.mxu1 %v1251_v0 }
 0x17f   : > { %v549_v6 = vpop.f32.mrb[13].mxu0  ;;  %v548_v9 = vadd.f32 %v547_v4, %v351_v5 }
 0x180   : > { %v550_v8 = vpop.f32.mrb[14].mxu0 }
 0x181   : > { %v551_v10 = vadd.f32 %v550_v8, %v356_v7  ;;  %v552_v11 = vpop.f32.mrb[15].mxu0 }
 0x183   : > { %v589_v12 = vpack.c.bf16 %v551_v10, %v548_v9 }
 0x184   : > { %v605_v13 = vld [vmem:[#allocation2 + $0x10] sm:$0xff] }
 0x185   : > { %598 = vst.msk [vmem:[#allocation2 + $0x18] sm:$0xff] %vm594_vm1, %v589_v12  ;;  %904 = vmatmul.mubr.msk.bf16.gmra.mrb[8].mxu1 %vm594_vm1, %v605_v13 }
 0x186   : > { %v555_v14 = vpop.f32.mrb[16].mxu0  ;;  %705 = vmatprep.mubr.bf16.mxu1 %v1251_v0 }
 0x187   : > { %v557_v16 = vpop.f32.mrb[17].mxu0  ;;  %v556_v19 = vadd.f32 %v555_v14, %v361_v15 }
 0x188   : > { %v558_v18 = vpop.f32.mrb[18].mxu0 }
 0x189   : > { %v559_v20 = vadd.f32 %v558_v18, %v366_v17  ;;  %v560_v21 = vpop.f32.mrb[19].mxu0 }
 0x18b   : > { %v590_v22 = vpack.c.bf16 %v559_v20, %v556_v19 }
 0x18c   : > { %v606_v23 = vld [vmem:[#allocation2 + $0x18] sm:$0xff] }
 0x18d   : > { %599 = vst.msk [vmem:[#allocation2 + $0x20] sm:$0xff] %vm594_vm1, %v590_v22  ;;  %905 = vmatmul.mubr.msk.bf16.gmra.mrb[12].mxu1 %vm594_vm1, %v606_v23 }
 0x18e   : > { %v563_v24 = vpop.f32.mrb[20].mxu0  ;;  %711 = vmatprep.mubr.bf16.mxu1 %v1251_v0 }
 0x18f   : > { %v565_v26 = vpop.f32.mrb[21].mxu0  ;;  %v564_v29 = vadd.f32 %v563_v24, %v371_v25 }
 0x190   : > { %v566_v28 = vpop.f32.mrb[22].mxu0 }
 0x191   : > { %v567_v30 = vadd.f32 %v566_v28, %v376_v27  ;;  %v568_v31 = vpop.f32.mrb[23].mxu0 }
 0x193   : > { %v591_v32 = vpack.c.bf16 %v567_v30, %v564_v29 }
 0x194   : > { %v607_v33 = vld [vmem:[#allocation2 + $0x20] sm:$0xff] }
 0x195   : > { %600 = vst.msk [vmem:[#allocation2 + $0x28] sm:$0xff] %vm594_vm1, %v591_v32  ;;  %906 = vmatmul.mubr.msk.bf16.gmra.mrb[16].mxu1 %vm594_vm1, %v607_v33 }
 0x196   : > { %v571_v34 = vpop.f32.mrb[24].mxu0  ;;  %717 = vmatprep.mubr.bf16.mxu1 %v1251_v0 }
 0x197   : > { %v573_v36 = vpop.f32.mrb[25].mxu0  ;;  %v572_v39 = vadd.f32 %v571_v34, %v381_v35 }
 0x198   : > { %v574_v38 = vpop.f32.mrb[26].mxu0 }
 0x199   : > { %v575_v40 = vadd.f32 %v574_v38, %v386_v37  ;;  %v576_v41 = vpop.f32.mrb[27].mxu0 }
 0x19b   : > { %v592_v42 = vpack.c.bf16 %v575_v40, %v572_v39 }
 0x19c   : > { %v608_v43 = vld [vmem:[#allocation2 + $0x28] sm:$0xff] }
 0x19d   : > { %601 = vst.msk [vmem:[#allocation2 + $0x30] sm:$0xff] %vm594_vm1, %v592_v42  ;;  %907 = vmatmul.mubr.msk.bf16.gmra.mrb[20].mxu1 %vm594_vm1, %v608_v43 }
 0x19e   : > { %v579_v44 = vpop.f32.mrb[28].mxu0  ;;  %723 = vmatprep.mubr.bf16.mxu1 %v1251_v0 }
 0x19f   : > { %v581_v46 = vpop.f32.mrb[29].mxu0  ;;  %v580_v49 = vadd.f32 %v579_v44, %v391_v45 }
 0x1a0   : > { %v582_v48 = vpop.f32.mrb[30].mxu0 }
 0x1a1   : > { %v583_v50 = vadd.f32 %v582_v48, %v396_v47  ;;  %v584_v51 = vpop.f32.mrb[31].mxu0 }
 0x1a3   : > { %v593_v52 = vpack.c.bf16 %v583_v50, %v580_v49 }
 0x1a4   : > { %v609_v53 = vld [vmem:[#allocation2 + $0x30] sm:$0xff] }
 0x1a5   : > { %602 = vst.msk [vmem:[#allocation2 + $0x38] sm:$0xff] %vm594_vm1, %v593_v52  ;;  %908 = vmatmul.mubr.msk.bf16.gmra.mrb[24].mxu1 %vm594_vm1, %v609_v53 }
 0x1a6   : > { %729 = vmatprep.mubr.bf16.mxu1 %v1251_v0 }
 0x1ac   : > { %v610_v54 = vld [vmem:[#allocation2 + $0x38] sm:$0xff] }
 0x1ad   : > { %909 = vmatmul.mubr.msk.bf16.gmra.mrb[28].mxu1 %vm594_vm1, %v610_v54 }
 0x248   : > { %v687_v55 = vpop.f32.mrb[0].mxu1 }
 0x249   : > { %736 = vst [vmem:[%s277_s25] sm:$0x1f] %v687_v55  ;;  %v689_v0 = vpop.f32.mrb[1].mxu1 }
 0x24a   : > { %737 = vst [vmem:[%s277_s25 + $0x8] sm:$0x1f] %v689_v0  ;;  %v691_v56 = vpop.f32.mrb[2].mxu1 }
 0x24b   : > { %v692_v57 = vpop.f32.mrb[3].mxu1 }
 0x24c   : > { %1166 = shalt.err (!%p1163_p0)
}
 0x24d   : > { %s1167_s13 = scalar_lea.hbm %s1533_s29, 256  ;;  %s1171_s5 = scalar_lea.hbm %s1584_s4, 512 }
 0x24e   : > { %p1168_p4 = scmp.ne.s32.totalorder %s1533_s29, %s1167_s13  ;;  %p1172_p1 = scmp.lt.u32.totalorder %s1533_s29, %s1584_s4 }
 0x24f   : > { %p1173_p12 = scmp.lt.u32.totalorder %s1171_s5, %s1167_s13  ;;  %p1175_p11 = scmp.lt.u32.totalorder %s1167_s13, %s1533_s29 }
 0x250   : > { %p1169_p2 = pnand %p1168_p4, %p1429_p10 }
 0x251   : > { %p1174_p13 = por %p1173_p12, %p1172_p1 }
 0x252   : > { %p1170_p8 = pneg %p1169_p2 }
 0x253   : > { %p1176_p6 = por %p1175_p11, %p1174_p13 }
 0x255   : > { %p1177_p3 = pnand %p1176_p6, %p1170_p8 }
 0x257   : > { %1180 = shalt.err (!%p1177_p3)
}
 0x258   : > { %931 = dma.vmem_to_hbm [thread:$0]  (%p1429_p10), %s1528_s27, 256, %s1533_s29, %s739_s8   ;;  %v695_v58 = vpop.f32.mrb[4].mxu1 }
 0x259   : > { %v696_v59 = vpop.f32.mrb[5].mxu1 }
 0x25a   : > { %v697_v60 = vpop.f32.mrb[6].mxu1 }
 0x25b   : > { %v698_v61 = vpop.f32.mrb[7].mxu1 }
 0x25c   : > { %v701_v62 = vpop.f32.mrb[8].mxu1 }
 0x25d   : > { %v702_v63 = vpop.f32.mrb[9].mxu1 }
 0x25e   : > { %v703_v1 = vpop.f32.mrb[10].mxu1 }
 0x25f   : > { %v704_v2 = vpop.f32.mrb[11].mxu1 }
 0x260   : > { %v707_v3 = vpop.f32.mrb[12].mxu1 }
 0x261   : > { %v708_v4 = vpop.f32.mrb[13].mxu1 }
 0x262   : > { %v709_v5 = vpop.f32.mrb[14].mxu1 }
 0x263   : > { %v710_v6 = vpop.f32.mrb[15].mxu1 }
 0x268   : > { %v713_v7 = vpop.f32.mrb[16].mxu1 }
 0x269   : > { %v714_v8 = vpop.f32.mrb[17].mxu1 }
 0x26a   : > { %v715_v9 = vpop.f32.mrb[18].mxu1 }
 0x26b   : > { %v716_v10 = vpop.f32.mrb[19].mxu1 }
 0x270   : > { %v719_v11 = vpop.f32.mrb[20].mxu1 }
 0x271   : > { %v720_v12 = vpop.f32.mrb[21].mxu1 }
 0x272   : > { %v721_v13 = vpop.f32.mrb[22].mxu1 }
 0x273   : > { %v722_v14 = vpop.f32.mrb[23].mxu1 }
 0x278   : > { %v725_v15 = vpop.f32.mrb[24].mxu1 }
 0x279   : > { %v726_v16 = vpop.f32.mrb[25].mxu1 }
 0x27a   : > { %v727_v17 = vpop.f32.mrb[26].mxu1 }
 0x27b   : > { %v728_v18 = vpop.f32.mrb[27].mxu1 }
 0x280   : > { %v731_v19 = vpop.f32.mrb[28].mxu1 }
 0x281   : > { %v732_v20 = vpop.f32.mrb[29].mxu1 }
 0x282   : > { %v733_v21 = vpop.f32.mrb[30].mxu1 }
 0x283   : > { %v734_v22 = vpop.f32.mrb[31].mxu1 }
 0x284 PF: > { %s1604_s30 = sld [smem:[#allocation16_spill]]  ;;  %s767_s23 = sand.u32 1, %s1223_s15  }
 0x285   : > { %p1606_p5 = scmp.ge.s32.totalorder %s1243_s20, 2  ;;  %s768_s25 = scalar_lea.sflag [#allocation5], %s767_s23 }
 0x28a   : > { %p1605_p10 = scmp.ne.s32.totalorder %s1604_s30, 0 }
 0x28c   : > { %p948_p7 = pnand %p1606_p5, %p1605_p10 }
 0x28e   : > { %1218 = dma.done.wait (!%p948_p7), %s768_s25, 256  }
 0x28f   : > { %1220 = vsyncadd (!%p948_p7), %s768_s25, 4294967040  ;;  %s22_s20 = sadd.s32 1, %s1243_s20   ;;  %s1607_s15 = smov %s1227_s16 }
 0x290   : > { %p19_p9 = scmp.ge.s32.totalorder %s22_s20, 4   ;;  %s1608_s16 = smov %s1231_s17 }
 0x291   : > { %s1609_s17 = smov %s1441_s11  ;;  %s1610_s18 = smov %s1239_s19 }
 0x292   : > { %s1611_s19 = smov %s1613_s7  ;;  %21 = sbr.rel (!%p19_p9) target bundleno = 8 (0x8), region = 98 }
 0x299   :  { %773 = vsyncpa [#allocation4], 1 }
 0x29a   :  { %775 = vsyncpa [#allocation4 + $0x1], 1 }
 0x29b   :  { %776 = vsyncpa [#allocation7], 1 }
 0x29c   :  { %777 = vsyncpa [#allocation10], 1 }
 0x29d   :  { %778 = vsyncpa [#allocation5], 1 }
 0x29e   :  { %780 = vsyncpa [#allocation5 + $0x1], 1 }

</bundles_post_ra>
